<compile_context>
chip_gen: v6e
topology: v6e:2x2x1
jax: 0.10.0
libtpu: 0.0.40
codegen_flags: <defaults>
</compile_context>

<pallas_src>
import jax
import jax.numpy as jnp
import numpy as np
from jax.experimental import pallas as pl
from jax.experimental.pallas import tpu as pltpu

INPUT_DIM = 121
HIDDEN = 256
N_LAYERS = 8
OUTPUT_DIM = 55

X_PAD = 128                               # input_dim padded to a lane multiple
OUT_PAD = 128                             # output_dim padded to a lane multiple
FEAT_PAD = X_PAD + N_LAYERS * HIDDEN      # 2176
HID_ROWS = [X_PAD + i * HIDDEN for i in range(N_LAYERS)]       # rows per layer
HID_STARTS = [sum(HID_ROWS[:i]) for i in range(N_LAYERS)]      # row offsets
TOTAL_HID_ROWS = sum(HID_ROWS)            # 8192 (all offsets multiples of 128)


def _dense_skip_kernel(x_ref, wh_ref, wo_ref, bh_ref, bo_ref, o_ref):
    """One batch tile of the full DenseSkipNet forward.

    x_ref : [tile_b, 128]  f32   padded input tile
    wh_ref: [8192, 256]    bf16  all hidden-layer weights, row-packed
    wo_ref: [2176, 128]    bf16  output head (cols padded 55 -> 128)
    bh_ref: [8, 256]       f32   hidden biases
    bo_ref: [1, 128]       f32   output bias (padded)
    o_ref : [tile_b, 128]  f32
    """
    x = x_ref[...].astype(jnp.bfloat16)

    # Output-head accumulator (f32), seeded with the x contribution so head
    # accumulation overlaps the layer loop.
    out_acc = jnp.dot(x, wo_ref[0:X_PAD, :], preferred_element_type=jnp.float32)

    hs = []
    for i in range(N_LAYERS):
        base = HID_STARTS[i]
        # x chunk of layer i's weight (zero rows at padded cols 121..127).
        z = jnp.dot(x, wh_ref[base:base + X_PAD, :],
                    preferred_element_type=jnp.float32)
        # Dense-skip chunks: every previously produced hidden activation.
        for k in range(i):
            off = base + X_PAD + k * HIDDEN
            z = z + jnp.dot(hs[k], wh_ref[off:off + HIDDEN, :],
                            preferred_element_type=jnp.float32)
        h = jnp.maximum(z + bh_ref[i:i + 1, :], 0.0).astype(jnp.bfloat16)
        hs.append(h)
        # Fold this activation into the output head immediately.
        oo = X_PAD + i * HIDDEN
        out_acc = out_acc + jnp.dot(h, wo_ref[oo:oo + HIDDEN, :],
                                    preferred_element_type=jnp.float32)

    o_ref[...] = out_acc + bo_ref[...]


def _round_up(n, m):
    return ((n + m - 1) // m) * m


def _pad_hidden_weight(w):
    """[121 + k*256, N] -> [128 + k*256, N] with zero rows at rows 121..127."""
    top, rest = w[:INPUT_DIM], w[INPUT_DIM:]
    zpad = jnp.zeros((X_PAD - INPUT_DIM, w.shape[1]), w.dtype)
    return jnp.concatenate([top, zpad, rest], axis=0)


def prepare_params(params):
    """One-time pad/pack/bf16-cast of the weights (kept OUT of the per-call path)."""
    ws, bs, w_out, b_out = params
    w_hidden = jnp.concatenate([_pad_hidden_weight(w) for w in ws],
                               axis=0).astype(jnp.bfloat16)            # [8192, 256]
    wo = _pad_hidden_weight(w_out)                                     # [2176, 55]
    wo = jnp.zeros((FEAT_PAD, OUT_PAD), jnp.float32).at[:, :OUTPUT_DIM].set(wo)
    wo = wo.astype(jnp.bfloat16)                                       # [2176, 128]
    bh = jnp.stack(bs, axis=0).astype(jnp.float32)                     # [8, 256]
    bo = jnp.zeros((1, OUT_PAD), jnp.float32).at[0, :OUTPUT_DIM].set(b_out)
    return w_hidden, wo, bh, bo


@jax.jit
def student_net_forward(x, packed):
    """x: [B, 121] float32 -> [B, 55] float32 (any batch size)."""
    w_hidden, w_out, bh, bo = packed
    b = x.shape[0]

    # Batch tiling: small batches -> one tile (padded to 8 sublanes); large
    # batches -> 256-row tiles (fills the 256-wide MXU on v6e/v7x).
    tile_b = min(256, _round_up(max(b, 1), 8))
    b_pad = _round_up(b, tile_b)
    grid = (b_pad // tile_b,)

    x_pad = jnp.zeros((b_pad, X_PAD), jnp.float32)
    x_pad = x_pad.at[:b, :INPUT_DIM].set(x.astype(jnp.float32))

    out = pl.pallas_call(
        _dense_skip_kernel,
        out_shape=jax.ShapeDtypeStruct((b_pad, OUT_PAD), jnp.float32),
        grid_spec=pltpu.PrefetchScalarGridSpec(
            num_scalar_prefetch=0,
            grid=grid,
            in_specs=[
                pl.BlockSpec((tile_b, X_PAD), lambda i: (i, 0)),
                # Weights/biases: same block every grid step -> DMA'd once and
                # resident in VMEM across all batch tiles.
                pl.BlockSpec((TOTAL_HID_ROWS, HIDDEN), lambda i: (0, 0)),
                pl.BlockSpec((FEAT_PAD, OUT_PAD), lambda i: (0, 0)),
                pl.BlockSpec((N_LAYERS, HIDDEN), lambda i: (0, 0)),
                pl.BlockSpec((1, OUT_PAD), lambda i: (0, 0)),
            ],
            out_specs=pl.BlockSpec((tile_b, OUT_PAD), lambda i: (i, 0)),
        ),
        compiler_params=pltpu.CompilerParams(
            dimension_semantics=("parallel",),
            vmem_limit_bytes=32 << 20,
        ),
    )(x_pad, w_hidden, w_out, bh, bo)

    return out[:b, :OUTPUT_DIM]


def init_params(key):
    """Deterministic init matching PyTorch nn.Linear defaults (U[-1/sqrt(fan_in), ...])."""
    ws, bs = [], []
    in_dim = INPUT_DIM
    keys = jax.random.split(key, 2 * N_LAYERS + 2)
    for i in range(N_LAYERS):
        bound = 1.0 / np.sqrt(in_dim)
        ws.append(jax.random.uniform(keys[2 * i], (in_dim, HIDDEN),
                                     jnp.float32, -bound, bound))
        bs.append(jax.random.uniform(keys[2 * i + 1], (HIDDEN,),
                                     jnp.float32, -bound, bound))
        in_dim += HIDDEN
    bound = 1.0 / np.sqrt(in_dim)
    w_out = jax.random.uniform(keys[-2], (in_dim, OUTPUT_DIM),
                               jnp.float32, -bound, bound)
    b_out = jax.random.uniform(keys[-1], (OUTPUT_DIM,),
                               jnp.float32, -bound, bound)
    return ws, bs, w_out, b_out


def reference_forward(x, params):
    """Pure-JAX f32 reference of DenseSkipNet for correctness checking."""
    ws, bs, w_out, b_out = params
    feats = [x]
    for w, b in zip(ws, bs):
        cat = jnp.concatenate(feats, axis=-1)
        feats.append(jax.nn.relu(cat @ w + b))
    return jnp.concatenate(feats, axis=-1) @ w_out + b_out


if __name__ == "__main__":
    key = jax.random.PRNGKey(0)
    pkey, xkey = jax.random.split(key)
    params = init_params(pkey)
    packed = prepare_params(params)          # one-time weight pad/pack/bf16

    batch = 2
    x = jax.random.normal(xkey, (batch, INPUT_DIM), jnp.float32)

    out = student_net_forward(x, packed)
    out = jax.block_until_ready(out)

    ref = reference_forward(x, params)
    assert out.shape == (batch, OUTPUT_DIM)
    # bf16 weights / bf16 activations with f32 accumulation vs. f32 reference.
    np.testing.assert_allclose(np.asarray(out), np.asarray(ref),
                               rtol=2e-2, atol=2e-2)
    print("KERNEL_OK")
</pallas_src>

<mosaic_0001>
module attributes {stable_mosaic.version = 11 : i64} {
  func.func @_dense_skip_kernel(%arg0: i32, %arg1: memref<8x128xf32, #tpu.memory_space<vmem>>, %arg2: memref<8192x256xbf16, #tpu.memory_space<vmem>>, %arg3: memref<2176x128xbf16, #tpu.memory_space<vmem>>, %arg4: memref<8x256xf32, #tpu.memory_space<vmem>>, %arg5: memref<1x128xf32, #tpu.memory_space<vmem>>, %arg6: memref<8x128xf32, #tpu.memory_space<vmem>>) attributes {dimension_semantics = [#tpu.dimension_semantics<parallel>], iteration_bounds = array<i64: 1>, scalar_prefetch = 0 : i64, scratch_operands = 0 : i64, tpu.core_type = #tpu.core_type<tc>, window_params = [{transform_indices = @transform_0, window_bounds = array<i64: 8, 128>}, {pipeline_mode = #tpu.pipeline_mode<synchronous>, transform_indices = @transform_1, window_bounds = array<i64: 8192, 256>}, {pipeline_mode = #tpu.pipeline_mode<synchronous>, transform_indices = @transform_2, window_bounds = array<i64: 2176, 128>}, {pipeline_mode = #tpu.pipeline_mode<synchronous>, transform_indices = @transform_3, window_bounds = array<i64: 8, 256>}, {pipeline_mode = #tpu.pipeline_mode<synchronous>, transform_indices = @transform_4, window_bounds = array<i64: 1, 128>}, {transform_indices = @transform_5, window_bounds = array<i64: 8, 128>}]} {
    %c0 = arith.constant 0 : index
    %c0_0 = arith.constant 0 : index
    %0 = vector.load %arg1[%c0, %c0_0] : memref<8x128xf32, #tpu.memory_space<vmem>>, vector<8x128xf32>
    %1 = arith.truncf %0 : vector<8x128xf32> to vector<8x128xbf16>
    %c0_1 = arith.constant 0 : index
    %c0_2 = arith.constant 0 : index
    %2 = vector.load %arg3[%c0_1, %c0_2] : memref<2176x128xbf16, #tpu.memory_space<vmem>>, vector<128x128xbf16>
    %cst = arith.constant dense<0.000000e+00> : vector<8x128xf32>
    %3 = tpu.matmul %1, %2, %cst {dimension_numbers = #tpu.dot_dimension_numbers<[1], [0], [0], [1], [0, 0, 1, 1], [], []>} : vector<8x128xbf16>, vector<128x128xbf16>, vector<8x128xf32> -> vector<8x128xf32>
    %c0_3 = arith.constant 0 : index
    %c0_4 = arith.constant 0 : index
    %4 = vector.load %arg2[%c0_3, %c0_4] : memref<8192x256xbf16, #tpu.memory_space<vmem>>, vector<128x256xbf16>
    %cst_5 = arith.constant dense<0.000000e+00> : vector<8x256xf32>
    %5 = tpu.matmul %1, %4, %cst_5 {dimension_numbers = #tpu.dot_dimension_numbers<[1], [0], [0], [1], [0, 0, 1, 1], [], []>} : vector<8x128xbf16>, vector<128x256xbf16>, vector<8x256xf32> -> vector<8x256xf32>
    %c0_6 = arith.constant 0 : index
    %c0_7 = arith.constant 0 : index
    %6 = vector.load %arg4[%c0_6, %c0_7] : memref<8x256xf32, #tpu.memory_space<vmem>>, vector<1x256xf32>
    %7 = vector.broadcast %6 : vector<1x256xf32> to vector<8x256xf32>
    %8 = arith.addf %5, %7 : vector<8x256xf32>
    %cst_8 = arith.constant 0.000000e+00 : f32
    %9 = vector.broadcast %cst_8 : f32 to vector<8x256xf32>
    %10 = arith.maximumf %8, %9 : vector<8x256xf32>
    %11 = arith.truncf %10 : vector<8x256xf32> to vector<8x256xbf16>
    %c128 = arith.constant 128 : index
    %c0_9 = arith.constant 0 : index
    %12 = vector.load %arg3[%c128, %c0_9] : memref<2176x128xbf16, #tpu.memory_space<vmem>>, vector<256x128xbf16>
    %cst_10 = arith.constant dense<0.000000e+00> : vector<8x128xf32>
    %13 = tpu.matmul %11, %12, %cst_10 {dimension_numbers = #tpu.dot_dimension_numbers<[1], [0], [0], [1], [0, 0, 1, 1], [], []>} : vector<8x256xbf16>, vector<256x128xbf16>, vector<8x128xf32> -> vector<8x128xf32>
    %14 = arith.addf %3, %13 : vector<8x128xf32>
    %c128_11 = arith.constant 128 : index
    %c0_12 = arith.constant 0 : index
    %15 = vector.load %arg2[%c128_11, %c0_12] : memref<8192x256xbf16, #tpu.memory_space<vmem>>, vector<128x256xbf16>
    %cst_13 = arith.constant dense<0.000000e+00> : vector<8x256xf32>
    %16 = tpu.matmul %1, %15, %cst_13 {dimension_numbers = #tpu.dot_dimension_numbers<[1], [0], [0], [1], [0, 0, 1, 1], [], []>} : vector<8x128xbf16>, vector<128x256xbf16>, vector<8x256xf32> -> vector<8x256xf32>
    %c256 = arith.constant 256 : index
    %c0_14 = arith.constant 0 : index
    %17 = vector.load %arg2[%c256, %c0_14] : memref<8192x256xbf16, #tpu.memory_space<vmem>>, vector<256x256xbf16>
    %cst_15 = arith.constant dense<0.000000e+00> : vector<8x256xf32>
    %18 = tpu.matmul %11, %17, %cst_15 {dimension_numbers = #tpu.dot_dimension_numbers<[1], [0], [0], [1], [0, 0, 1, 1], [], []>} : vector<8x256xbf16>, vector<256x256xbf16>, vector<8x256xf32> -> vector<8x256xf32>
    %19 = arith.addf %16, %18 : vector<8x256xf32>
    %c1 = arith.constant 1 : index
    %c0_16 = arith.constant 0 : index
    %20 = vector.load %arg4[%c1, %c0_16] : memref<8x256xf32, #tpu.memory_space<vmem>>, vector<1x256xf32>
    %21 = vector.broadcast %20 : vector<1x256xf32> to vector<8x256xf32>
    %22 = arith.addf %19, %21 : vector<8x256xf32>
    %cst_17 = arith.constant 0.000000e+00 : f32
    %23 = vector.broadcast %cst_17 : f32 to vector<8x256xf32>
    %24 = arith.maximumf %22, %23 : vector<8x256xf32>
    %25 = arith.truncf %24 : vector<8x256xf32> to vector<8x256xbf16>
    %c384 = arith.constant 384 : index
    %c0_18 = arith.constant 0 : index
    %26 = vector.load %arg3[%c384, %c0_18] : memref<2176x128xbf16, #tpu.memory_space<vmem>>, vector<256x128xbf16>
    %cst_19 = arith.constant dense<0.000000e+00> : vector<8x128xf32>
    %27 = tpu.matmul %25, %26, %cst_19 {dimension_numbers = #tpu.dot_dimension_numbers<[1], [0], [0], [1], [0, 0, 1, 1], [], []>} : vector<8x256xbf16>, vector<256x128xbf16>, vector<8x128xf32> -> vector<8x128xf32>
    %28 = arith.addf %14, %27 : vector<8x128xf32>
    %c512 = arith.constant 512 : index
    %c0_20 = arith.constant 0 : index
    %29 = vector.load %arg2[%c512, %c0_20] : memref<8192x256xbf16, #tpu.memory_space<vmem>>, vector<128x256xbf16>
    %cst_21 = arith.constant dense<0.000000e+00> : vector<8x256xf32>
    %30 = tpu.matmul %1, %29, %cst_21 {dimension_numbers = #tpu.dot_dimension_numbers<[1], [0], [0], [1], [0, 0, 1, 1], [], []>} : vector<8x128xbf16>, vector<128x256xbf16>, vector<8x256xf32> -> vector<8x256xf32>
    %c640 = arith.constant 640 : index
    %c0_22 = arith.constant 0 : index
    %31 = vector.load %arg2[%c640, %c0_22] : memref<8192x256xbf16, #tpu.memory_space<vmem>>, vector<256x256xbf16>
    %cst_23 = arith.constant dense<0.000000e+00> : vector<8x256xf32>
    %32 = tpu.matmul %11, %31, %cst_23 {dimension_numbers = #tpu.dot_dimension_numbers<[1], [0], [0], [1], [0, 0, 1, 1], [], []>} : vector<8x256xbf16>, vector<256x256xbf16>, vector<8x256xf32> -> vector<8x256xf32>
    %33 = arith.addf %30, %32 : vector<8x256xf32>
    %c896 = arith.constant 896 : index
    %c0_24 = arith.constant 0 : index
    %34 = vector.load %arg2[%c896, %c0_24] : memref<8192x256xbf16, #tpu.memory_space<vmem>>, vector<256x256xbf16>
    %cst_25 = arith.constant dense<0.000000e+00> : vector<8x256xf32>
    %35 = tpu.matmul %25, %34, %cst_25 {dimension_numbers = #tpu.dot_dimension_numbers<[1], [0], [0], [1], [0, 0, 1, 1], [], []>} : vector<8x256xbf16>, vector<256x256xbf16>, vector<8x256xf32> -> vector<8x256xf32>
    %36 = arith.addf %33, %35 : vector<8x256xf32>
    %c2 = arith.constant 2 : index
    %c0_26 = arith.constant 0 : index
    %37 = vector.load %arg4[%c2, %c0_26] : memref<8x256xf32, #tpu.memory_space<vmem>>, vector<1x256xf32>
    %38 = vector.broadcast %37 : vector<1x256xf32> to vector<8x256xf32>
    %39 = arith.addf %36, %38 : vector<8x256xf32>
    %cst_27 = arith.constant 0.000000e+00 : f32
    %40 = vector.broadcast %cst_27 : f32 to vector<8x256xf32>
    %41 = arith.maximumf %39, %40 : vector<8x256xf32>
    %42 = arith.truncf %41 : vector<8x256xf32> to vector<8x256xbf16>
    %c640_28 = arith.constant 640 : index
    %c0_29 = arith.constant 0 : index
    %43 = vector.load %arg3[%c640_28, %c0_29] : memref<2176x128xbf16, #tpu.memory_space<vmem>>, vector<256x128xbf16>
    %cst_30 = arith.constant dense<0.000000e+00> : vector<8x128xf32>
    %44 = tpu.matmul %42, %43, %cst_30 {dimension_numbers = #tpu.dot_dimension_numbers<[1], [0], [0], [1], [0, 0, 1, 1], [], []>} : vector<8x256xbf16>, vector<256x128xbf16>, vector<8x128xf32> -> vector<8x128xf32>
    %45 = arith.addf %28, %44 : vector<8x128xf32>
    %c1152 = arith.constant 1152 : index
    %c0_31 = arith.constant 0 : index
    %46 = vector.load %arg2[%c1152, %c0_31] : memref<8192x256xbf16, #tpu.memory_space<vmem>>, vector<128x256xbf16>
    %cst_32 = arith.constant dense<0.000000e+00> : vector<8x256xf32>
    %47 = tpu.matmul %1, %46, %cst_32 {dimension_numbers = #tpu.dot_dimension_numbers<[1], [0], [0], [1], [0, 0, 1, 1], [], []>} : vector<8x128xbf16>, vector<128x256xbf16>, vector<8x256xf32> -> vector<8x256xf32>
    %c1280 = arith.constant 1280 : index
    %c0_33 = arith.constant 0 : index
    %48 = vector.load %arg2[%c1280, %c0_33] : memref<8192x256xbf16, #tpu.memory_space<vmem>>, vector<256x256xbf16>
    %cst_34 = arith.constant dense<0.000000e+00> : vector<8x256xf32>
    %49 = tpu.matmul %11, %48, %cst_34 {dimension_numbers = #tpu.dot_dimension_numbers<[1], [0], [0], [1], [0, 0, 1, 1], [], []>} : vector<8x256xbf16>, vector<256x256xbf16>, vector<8x256xf32> -> vector<8x256xf32>
    %50 = arith.addf %47, %49 : vector<8x256xf32>
    %c1536 = arith.constant 1536 : index
    %c0_35 = arith.constant 0 : index
    %51 = vector.load %arg2[%c1536, %c0_35] : memref<8192x256xbf16, #tpu.memory_space<vmem>>, vector<256x256xbf16>
    %cst_36 = arith.constant dense<0.000000e+00> : vector<8x256xf32>
    %52 = tpu.matmul %25, %51, %cst_36 {dimension_numbers = #tpu.dot_dimension_numbers<[1], [0], [0], [1], [0, 0, 1, 1], [], []>} : vector<8x256xbf16>, vector<256x256xbf16>, vector<8x256xf32> -> vector<8x256xf32>
    %53 = arith.addf %50, %52 : vector<8x256xf32>
    %c1792 = arith.constant 1792 : index
    %c0_37 = arith.constant 0 : index
    %54 = vector.load %arg2[%c1792, %c0_37] : memref<8192x256xbf16, #tpu.memory_space<vmem>>, vector<256x256xbf16>
    %cst_38 = arith.constant dense<0.000000e+00> : vector<8x256xf32>
    %55 = tpu.matmul %42, %54, %cst_38 {dimension_numbers = #tpu.dot_dimension_numbers<[1], [0], [0], [1], [0, 0, 1, 1], [], []>} : vector<8x256xbf16>, vector<256x256xbf16>, vector<8x256xf32> -> vector<8x256xf32>
    %56 = arith.addf %53, %55 : vector<8x256xf32>
    %c3 = arith.constant 3 : index
    %c0_39 = arith.constant 0 : index
    %57 = vector.load %arg4[%c3, %c0_39] : memref<8x256xf32, #tpu.memory_space<vmem>>, vector<1x256xf32>
    %58 = vector.broadcast %57 : vector<1x256xf32> to vector<8x256xf32>
    %59 = arith.addf %56, %58 : vector<8x256xf32>
    %cst_40 = arith.constant 0.000000e+00 : f32
    %60 = vector.broadcast %cst_40 : f32 to vector<8x256xf32>
    %61 = arith.maximumf %59, %60 : vector<8x256xf32>
    %62 = arith.truncf %61 : vector<8x256xf32> to vector<8x256xbf16>
    %c896_41 = arith.constant 896 : index
    %c0_42 = arith.constant 0 : index
    %63 = vector.load %arg3[%c896_41, %c0_42] : memref<2176x128xbf16, #tpu.memory_space<vmem>>, vector<256x128xbf16>
    %cst_43 = arith.constant dense<0.000000e+00> : vector<8x128xf32>
    %64 = tpu.matmul %62, %63, %cst_43 {dimension_numbers = #tpu.dot_dimension_numbers<[1], [0], [0], [1], [0, 0, 1, 1], [], []>} : vector<8x256xbf16>, vector<256x128xbf16>, vector<8x128xf32> -> vector<8x128xf32>
    %65 = arith.addf %45, %64 : vector<8x128xf32>
    %c2048 = arith.constant 2048 : index
    %c0_44 = arith.constant 0 : index
    %66 = vector.load %arg2[%c2048, %c0_44] : memref<8192x256xbf16, #tpu.memory_space<vmem>>, vector<128x256xbf16>
    %cst_45 = arith.constant dense<0.000000e+00> : vector<8x256xf32>
    %67 = tpu.matmul %1, %66, %cst_45 {dimension_numbers = #tpu.dot_dimension_numbers<[1], [0], [0], [1], [0, 0, 1, 1], [], []>} : vector<8x128xbf16>, vector<128x256xbf16>, vector<8x256xf32> -> vector<8x256xf32>
    %c2176 = arith.constant 2176 : index
    %c0_46 = arith.constant 0 : index
    %68 = vector.load %arg2[%c2176, %c0_46] : memref<8192x256xbf16, #tpu.memory_space<vmem>>, vector<256x256xbf16>
    %cst_47 = arith.constant dense<0.000000e+00> : vector<8x256xf32>
    %69 = tpu.matmul %11, %68, %cst_47 {dimension_numbers = #tpu.dot_dimension_numbers<[1], [0], [0], [1], [0, 0, 1, 1], [], []>} : vector<8x256xbf16>, vector<256x256xbf16>, vector<8x256xf32> -> vector<8x256xf32>
    %70 = arith.addf %67, %69 : vector<8x256xf32>
    %c2432 = arith.constant 2432 : index
    %c0_48 = arith.constant 0 : index
    %71 = vector.load %arg2[%c2432, %c0_48] : memref<8192x256xbf16, #tpu.memory_space<vmem>>, vector<256x256xbf16>
    %cst_49 = arith.constant dense<0.000000e+00> : vector<8x256xf32>
    %72 = tpu.matmul %25, %71, %cst_49 {dimension_numbers = #tpu.dot_dimension_numbers<[1], [0], [0], [1], [0, 0, 1, 1], [], []>} : vector<8x256xbf16>, vector<256x256xbf16>, vector<8x256xf32> -> vector<8x256xf32>
    %73 = arith.addf %70, %72 : vector<8x256xf32>
    %c2688 = arith.constant 2688 : index
    %c0_50 = arith.constant 0 : index
    %74 = vector.load %arg2[%c2688, %c0_50] : memref<8192x256xbf16, #tpu.memory_space<vmem>>, vector<256x256xbf16>
    %cst_51 = arith.constant dense<0.000000e+00> : vector<8x256xf32>
    %75 = tpu.matmul %42, %74, %cst_51 {dimension_numbers = #tpu.dot_dimension_numbers<[1], [0], [0], [1], [0, 0, 1, 1], [], []>} : vector<8x256xbf16>, vector<256x256xbf16>, vector<8x256xf32> -> vector<8x256xf32>
    %76 = arith.addf %73, %75 : vector<8x256xf32>
    %c2944 = arith.constant 2944 : index
    %c0_52 = arith.constant 0 : index
    %77 = vector.load %arg2[%c2944, %c0_52] : memref<8192x256xbf16, #tpu.memory_space<vmem>>, vector<256x256xbf16>
    %cst_53 = arith.constant dense<0.000000e+00> : vector<8x256xf32>
    %78 = tpu.matmul %62, %77, %cst_53 {dimension_numbers = #tpu.dot_dimension_numbers<[1], [0], [0], [1], [0, 0, 1, 1], [], []>} : vector<8x256xbf16>, vector<256x256xbf16>, vector<8x256xf32> -> vector<8x256xf32>
    %79 = arith.addf %76, %78 : vector<8x256xf32>
    %c4 = arith.constant 4 : index
    %c0_54 = arith.constant 0 : index
    %80 = vector.load %arg4[%c4, %c0_54] : memref<8x256xf32, #tpu.memory_space<vmem>>, vector<1x256xf32>
    %81 = vector.broadcast %80 : vector<1x256xf32> to vector<8x256xf32>
    %82 = arith.addf %79, %81 : vector<8x256xf32>
    %cst_55 = arith.constant 0.000000e+00 : f32
    %83 = vector.broadcast %cst_55 : f32 to vector<8x256xf32>
    %84 = arith.maximumf %82, %83 : vector<8x256xf32>
    %85 = arith.truncf %84 : vector<8x256xf32> to vector<8x256xbf16>
    %c1152_56 = arith.constant 1152 : index
    %c0_57 = arith.constant 0 : index
    %86 = vector.load %arg3[%c1152_56, %c0_57] : memref<2176x128xbf16, #tpu.memory_space<vmem>>, vector<256x128xbf16>
    %cst_58 = arith.constant dense<0.000000e+00> : vector<8x128xf32>
    %87 = tpu.matmul %85, %86, %cst_58 {dimension_numbers = #tpu.dot_dimension_numbers<[1], [0], [0], [1], [0, 0, 1, 1], [], []>} : vector<8x256xbf16>, vector<256x128xbf16>, vector<8x128xf32> -> vector<8x128xf32>
    %88 = arith.addf %65, %87 : vector<8x128xf32>
    %c3200 = arith.constant 3200 : index
    %c0_59 = arith.constant 0 : index
    %89 = vector.load %arg2[%c3200, %c0_59] : memref<8192x256xbf16, #tpu.memory_space<vmem>>, vector<128x256xbf16>
    %cst_60 = arith.constant dense<0.000000e+00> : vector<8x256xf32>
    %90 = tpu.matmul %1, %89, %cst_60 {dimension_numbers = #tpu.dot_dimension_numbers<[1], [0], [0], [1], [0, 0, 1, 1], [], []>} : vector<8x128xbf16>, vector<128x256xbf16>, vector<8x256xf32> -> vector<8x256xf32>
    %c3328 = arith.constant 3328 : index
    %c0_61 = arith.constant 0 : index
    %91 = vector.load %arg2[%c3328, %c0_61] : memref<8192x256xbf16, #tpu.memory_space<vmem>>, vector<256x256xbf16>
    %cst_62 = arith.constant dense<0.000000e+00> : vector<8x256xf32>
    %92 = tpu.matmul %11, %91, %cst_62 {dimension_numbers = #tpu.dot_dimension_numbers<[1], [0], [0], [1], [0, 0, 1, 1], [], []>} : vector<8x256xbf16>, vector<256x256xbf16>, vector<8x256xf32> -> vector<8x256xf32>
    %93 = arith.addf %90, %92 : vector<8x256xf32>
    %c3584 = arith.constant 3584 : index
    %c0_63 = arith.constant 0 : index
    %94 = vector.load %arg2[%c3584, %c0_63] : memref<8192x256xbf16, #tpu.memory_space<vmem>>, vector<256x256xbf16>
    %cst_64 = arith.constant dense<0.000000e+00> : vector<8x256xf32>
    %95 = tpu.matmul %25, %94, %cst_64 {dimension_numbers = #tpu.dot_dimension_numbers<[1], [0], [0], [1], [0, 0, 1, 1], [], []>} : vector<8x256xbf16>, vector<256x256xbf16>, vector<8x256xf32> -> vector<8x256xf32>
    %96 = arith.addf %93, %95 : vector<8x256xf32>
    %c3840 = arith.constant 3840 : index
    %c0_65 = arith.constant 0 : index
    %97 = vector.load %arg2[%c3840, %c0_65] : memref<8192x256xbf16, #tpu.memory_space<vmem>>, vector<256x256xbf16>
    %cst_66 = arith.constant dense<0.000000e+00> : vector<8x256xf32>
    %98 = tpu.matmul %42, %97, %cst_66 {dimension_numbers = #tpu.dot_dimension_numbers<[1], [0], [0], [1], [0, 0, 1, 1], [], []>} : vector<8x256xbf16>, vector<256x256xbf16>, vector<8x256xf32> -> vector<8x256xf32>
    %99 = arith.addf %96, %98 : vector<8x256xf32>
    %c4096 = arith.constant 4096 : index
    %c0_67 = arith.constant 0 : index
    %100 = vector.load %arg2[%c4096, %c0_67] : memref<8192x256xbf16, #tpu.memory_space<vmem>>, vector<256x256xbf16>
    %cst_68 = arith.constant dense<0.000000e+00> : vector<8x256xf32>
    %101 = tpu.matmul %62, %100, %cst_68 {dimension_numbers = #tpu.dot_dimension_numbers<[1], [0], [0], [1], [0, 0, 1, 1], [], []>} : vector<8x256xbf16>, vector<256x256xbf16>, vector<8x256xf32> -> vector<8x256xf32>
    %102 = arith.addf %99, %101 : vector<8x256xf32>
    %c4352 = arith.constant 4352 : index
    %c0_69 = arith.constant 0 : index
    %103 = vector.load %arg2[%c4352, %c0_69] : memref<8192x256xbf16, #tpu.memory_space<vmem>>, vector<256x256xbf16>
    %cst_70 = arith.constant dense<0.000000e+00> : vector<8x256xf32>
    %104 = tpu.matmul %85, %103, %cst_70 {dimension_numbers = #tpu.dot_dimension_numbers<[1], [0], [0], [1], [0, 0, 1, 1], [], []>} : vector<8x256xbf16>, vector<256x256xbf16>, vector<8x256xf32> -> vector<8x256xf32>
    %105 = arith.addf %102, %104 : vector<8x256xf32>
    %c5 = arith.constant 5 : index
    %c0_71 = arith.constant 0 : index
    %106 = vector.load %arg4[%c5, %c0_71] : memref<8x256xf32, #tpu.memory_space<vmem>>, vector<1x256xf32>
    %107 = vector.broadcast %106 : vector<1x256xf32> to vector<8x256xf32>
    %108 = arith.addf %105, %107 : vector<8x256xf32>
    %cst_72 = arith.constant 0.000000e+00 : f32
    %109 = vector.broadcast %cst_72 : f32 to vector<8x256xf32>
    %110 = arith.maximumf %108, %109 : vector<8x256xf32>
    %111 = arith.truncf %110 : vector<8x256xf32> to vector<8x256xbf16>
    %c1408 = arith.constant 1408 : index
    %c0_73 = arith.constant 0 : index
    %112 = vector.load %arg3[%c1408, %c0_73] : memref<2176x128xbf16, #tpu.memory_space<vmem>>, vector<256x128xbf16>
    %cst_74 = arith.constant dense<0.000000e+00> : vector<8x128xf32>
    %113 = tpu.matmul %111, %112, %cst_74 {dimension_numbers = #tpu.dot_dimension_numbers<[1], [0], [0], [1], [0, 0, 1, 1], [], []>} : vector<8x256xbf16>, vector<256x128xbf16>, vector<8x128xf32> -> vector<8x128xf32>
    %114 = arith.addf %88, %113 : vector<8x128xf32>
    %c4608 = arith.constant 4608 : index
    %c0_75 = arith.constant 0 : index
    %115 = vector.load %arg2[%c4608, %c0_75] : memref<8192x256xbf16, #tpu.memory_space<vmem>>, vector<128x256xbf16>
    %cst_76 = arith.constant dense<0.000000e+00> : vector<8x256xf32>
    %116 = tpu.matmul %1, %115, %cst_76 {dimension_numbers = #tpu.dot_dimension_numbers<[1], [0], [0], [1], [0, 0, 1, 1], [], []>} : vector<8x128xbf16>, vector<128x256xbf16>, vector<8x256xf32> -> vector<8x256xf32>
    %c4736 = arith.constant 4736 : index
    %c0_77 = arith.constant 0 : index
    %117 = vector.load %arg2[%c4736, %c0_77] : memref<8192x256xbf16, #tpu.memory_space<vmem>>, vector<256x256xbf16>
    %cst_78 = arith.constant dense<0.000000e+00> : vector<8x256xf32>
    %118 = tpu.matmul %11, %117, %cst_78 {dimension_numbers = #tpu.dot_dimension_numbers<[1], [0], [0], [1], [0, 0, 1, 1], [], []>} : vector<8x256xbf16>, vector<256x256xbf16>, vector<8x256xf32> -> vector<8x256xf32>
    %119 = arith.addf %116, %118 : vector<8x256xf32>
    %c4992 = arith.constant 4992 : index
    %c0_79 = arith.constant 0 : index
    %120 = vector.load %arg2[%c4992, %c0_79] : memref<8192x256xbf16, #tpu.memory_space<vmem>>, vector<256x256xbf16>
    %cst_80 = arith.constant dense<0.000000e+00> : vector<8x256xf32>
    %121 = tpu.matmul %25, %120, %cst_80 {dimension_numbers = #tpu.dot_dimension_numbers<[1], [0], [0], [1], [0, 0, 1, 1], [], []>} : vector<8x256xbf16>, vector<256x256xbf16>, vector<8x256xf32> -> vector<8x256xf32>
    %122 = arith.addf %119, %121 : vector<8x256xf32>
    %c5248 = arith.constant 5248 : index
    %c0_81 = arith.constant 0 : index
    %123 = vector.load %arg2[%c5248, %c0_81] : memref<8192x256xbf16, #tpu.memory_space<vmem>>, vector<256x256xbf16>
    %cst_82 = arith.constant dense<0.000000e+00> : vector<8x256xf32>
    %124 = tpu.matmul %42, %123, %cst_82 {dimension_numbers = #tpu.dot_dimension_numbers<[1], [0], [0], [1], [0, 0, 1, 1], [], []>} : vector<8x256xbf16>, vector<256x256xbf16>, vector<8x256xf32> -> vector<8x256xf32>
    %125 = arith.addf %122, %124 : vector<8x256xf32>
    %c5504 = arith.constant 5504 : index
    %c0_83 = arith.constant 0 : index
    %126 = vector.load %arg2[%c5504, %c0_83] : memref<8192x256xbf16, #tpu.memory_space<vmem>>, vector<256x256xbf16>
    %cst_84 = arith.constant dense<0.000000e+00> : vector<8x256xf32>
    %127 = tpu.matmul %62, %126, %cst_84 {dimension_numbers = #tpu.dot_dimension_numbers<[1], [0], [0], [1], [0, 0, 1, 1], [], []>} : vector<8x256xbf16>, vector<256x256xbf16>, vector<8x256xf32> -> vector<8x256xf32>
    %128 = arith.addf %125, %127 : vector<8x256xf32>
    %c5760 = arith.constant 5760 : index
    %c0_85 = arith.constant 0 : index
    %129 = vector.load %arg2[%c5760, %c0_85] : memref<8192x256xbf16, #tpu.memory_space<vmem>>, vector<256x256xbf16>
    %cst_86 = arith.constant dense<0.000000e+00> : vector<8x256xf32>
    %130 = tpu.matmul %85, %129, %cst_86 {dimension_numbers = #tpu.dot_dimension_numbers<[1], [0], [0], [1], [0, 0, 1, 1], [], []>} : vector<8x256xbf16>, vector<256x256xbf16>, vector<8x256xf32> -> vector<8x256xf32>
    %131 = arith.addf %128, %130 : vector<8x256xf32>
    %c6016 = arith.constant 6016 : index
    %c0_87 = arith.constant 0 : index
    %132 = vector.load %arg2[%c6016, %c0_87] : memref<8192x256xbf16, #tpu.memory_space<vmem>>, vector<256x256xbf16>
    %cst_88 = arith.constant dense<0.000000e+00> : vector<8x256xf32>
    %133 = tpu.matmul %111, %132, %cst_88 {dimension_numbers = #tpu.dot_dimension_numbers<[1], [0], [0], [1], [0, 0, 1, 1], [], []>} : vector<8x256xbf16>, vector<256x256xbf16>, vector<8x256xf32> -> vector<8x256xf32>
    %134 = arith.addf %131, %133 : vector<8x256xf32>
    %c6 = arith.constant 6 : index
    %c0_89 = arith.constant 0 : index
    %135 = vector.load %arg4[%c6, %c0_89] : memref<8x256xf32, #tpu.memory_space<vmem>>, vector<1x256xf32>
    %136 = vector.broadcast %135 : vector<1x256xf32> to vector<8x256xf32>
    %137 = arith.addf %134, %136 : vector<8x256xf32>
    %cst_90 = arith.constant 0.000000e+00 : f32
    %138 = vector.broadcast %cst_90 : f32 to vector<8x256xf32>
    %139 = arith.maximumf %137, %138 : vector<8x256xf32>
    %140 = arith.truncf %139 : vector<8x256xf32> to vector<8x256xbf16>
    %c1664 = arith.constant 1664 : index
    %c0_91 = arith.constant 0 : index
    %141 = vector.load %arg3[%c1664, %c0_91] : memref<2176x128xbf16, #tpu.memory_space<vmem>>, vector<256x128xbf16>
    %cst_92 = arith.constant dense<0.000000e+00> : vector<8x128xf32>
    %142 = tpu.matmul %140, %141, %cst_92 {dimension_numbers = #tpu.dot_dimension_numbers<[1], [0], [0], [1], [0, 0, 1, 1], [], []>} : vector<8x256xbf16>, vector<256x128xbf16>, vector<8x128xf32> -> vector<8x128xf32>
    %143 = arith.addf %114, %142 : vector<8x128xf32>
    %c6272 = arith.constant 6272 : index
    %c0_93 = arith.constant 0 : index
    %144 = vector.load %arg2[%c6272, %c0_93] : memref<8192x256xbf16, #tpu.memory_space<vmem>>, vector<128x256xbf16>
    %cst_94 = arith.constant dense<0.000000e+00> : vector<8x256xf32>
    %145 = tpu.matmul %1, %144, %cst_94 {dimension_numbers = #tpu.dot_dimension_numbers<[1], [0], [0], [1], [0, 0, 1, 1], [], []>} : vector<8x128xbf16>, vector<128x256xbf16>, vector<8x256xf32> -> vector<8x256xf32>
    %c6400 = arith.constant 6400 : index
    %c0_95 = arith.constant 0 : index
    %146 = vector.load %arg2[%c6400, %c0_95] : memref<8192x256xbf16, #tpu.memory_space<vmem>>, vector<256x256xbf16>
    %cst_96 = arith.constant dense<0.000000e+00> : vector<8x256xf32>
    %147 = tpu.matmul %11, %146, %cst_96 {dimension_numbers = #tpu.dot_dimension_numbers<[1], [0], [0], [1], [0, 0, 1, 1], [], []>} : vector<8x256xbf16>, vector<256x256xbf16>, vector<8x256xf32> -> vector<8x256xf32>
    %148 = arith.addf %145, %147 : vector<8x256xf32>
    %c6656 = arith.constant 6656 : index
    %c0_97 = arith.constant 0 : index
    %149 = vector.load %arg2[%c6656, %c0_97] : memref<8192x256xbf16, #tpu.memory_space<vmem>>, vector<256x256xbf16>
    %cst_98 = arith.constant dense<0.000000e+00> : vector<8x256xf32>
    %150 = tpu.matmul %25, %149, %cst_98 {dimension_numbers = #tpu.dot_dimension_numbers<[1], [0], [0], [1], [0, 0, 1, 1], [], []>} : vector<8x256xbf16>, vector<256x256xbf16>, vector<8x256xf32> -> vector<8x256xf32>
    %151 = arith.addf %148, %150 : vector<8x256xf32>
    %c6912 = arith.constant 6912 : index
    %c0_99 = arith.constant 0 : index
    %152 = vector.load %arg2[%c6912, %c0_99] : memref<8192x256xbf16, #tpu.memory_space<vmem>>, vector<256x256xbf16>
    %cst_100 = arith.constant dense<0.000000e+00> : vector<8x256xf32>
    %153 = tpu.matmul %42, %152, %cst_100 {dimension_numbers = #tpu.dot_dimension_numbers<[1], [0], [0], [1], [0, 0, 1, 1], [], []>} : vector<8x256xbf16>, vector<256x256xbf16>, vector<8x256xf32> -> vector<8x256xf32>
    %154 = arith.addf %151, %153 : vector<8x256xf32>
    %c7168 = arith.constant 7168 : index
    %c0_101 = arith.constant 0 : index
    %155 = vector.load %arg2[%c7168, %c0_101] : memref<8192x256xbf16, #tpu.memory_space<vmem>>, vector<256x256xbf16>
    %cst_102 = arith.constant dense<0.000000e+00> : vector<8x256xf32>
    %156 = tpu.matmul %62, %155, %cst_102 {dimension_numbers = #tpu.dot_dimension_numbers<[1], [0], [0], [1], [0, 0, 1, 1], [], []>} : vector<8x256xbf16>, vector<256x256xbf16>, vector<8x256xf32> -> vector<8x256xf32>
    %157 = arith.addf %154, %156 : vector<8x256xf32>
    %c7424 = arith.constant 7424 : index
    %c0_103 = arith.constant 0 : index
    %158 = vector.load %arg2[%c7424, %c0_103] : memref<8192x256xbf16, #tpu.memory_space<vmem>>, vector<256x256xbf16>
    %cst_104 = arith.constant dense<0.000000e+00> : vector<8x256xf32>
    %159 = tpu.matmul %85, %158, %cst_104 {dimension_numbers = #tpu.dot_dimension_numbers<[1], [0], [0], [1], [0, 0, 1, 1], [], []>} : vector<8x256xbf16>, vector<256x256xbf16>, vector<8x256xf32> -> vector<8x256xf32>
    %160 = arith.addf %157, %159 : vector<8x256xf32>
    %c7680 = arith.constant 7680 : index
    %c0_105 = arith.constant 0 : index
    %161 = vector.load %arg2[%c7680, %c0_105] : memref<8192x256xbf16, #tpu.memory_space<vmem>>, vector<256x256xbf16>
    %cst_106 = arith.constant dense<0.000000e+00> : vector<8x256xf32>
    %162 = tpu.matmul %111, %161, %cst_106 {dimension_numbers = #tpu.dot_dimension_numbers<[1], [0], [0], [1], [0, 0, 1, 1], [], []>} : vector<8x256xbf16>, vector<256x256xbf16>, vector<8x256xf32> -> vector<8x256xf32>
    %163 = arith.addf %160, %162 : vector<8x256xf32>
    %c7936 = arith.constant 7936 : index
    %c0_107 = arith.constant 0 : index
    %164 = vector.load %arg2[%c7936, %c0_107] : memref<8192x256xbf16, #tpu.memory_space<vmem>>, vector<256x256xbf16>
    %cst_108 = arith.constant dense<0.000000e+00> : vector<8x256xf32>
    %165 = tpu.matmul %140, %164, %cst_108 {dimension_numbers = #tpu.dot_dimension_numbers<[1], [0], [0], [1], [0, 0, 1, 1], [], []>} : vector<8x256xbf16>, vector<256x256xbf16>, vector<8x256xf32> -> vector<8x256xf32>
    %166 = arith.addf %163, %165 : vector<8x256xf32>
    %c7 = arith.constant 7 : index
    %c0_109 = arith.constant 0 : index
    %167 = vector.load %arg4[%c7, %c0_109] : memref<8x256xf32, #tpu.memory_space<vmem>>, vector<1x256xf32>
    %168 = vector.broadcast %167 : vector<1x256xf32> to vector<8x256xf32>
    %169 = arith.addf %166, %168 : vector<8x256xf32>
    %cst_110 = arith.constant 0.000000e+00 : f32
    %170 = vector.broadcast %cst_110 : f32 to vector<8x256xf32>
    %171 = arith.maximumf %169, %170 : vector<8x256xf32>
    %172 = arith.truncf %171 : vector<8x256xf32> to vector<8x256xbf16>
    %c1920 = arith.constant 1920 : index
    %c0_111 = arith.constant 0 : index
    %173 = vector.load %arg3[%c1920, %c0_111] : memref<2176x128xbf16, #tpu.memory_space<vmem>>, vector<256x128xbf16>
    %cst_112 = arith.constant dense<0.000000e+00> : vector<8x128xf32>
    %174 = tpu.matmul %172, %173, %cst_112 {dimension_numbers = #tpu.dot_dimension_numbers<[1], [0], [0], [1], [0, 0, 1, 1], [], []>} : vector<8x256xbf16>, vector<256x128xbf16>, vector<8x128xf32> -> vector<8x128xf32>
    %175 = arith.addf %143, %174 : vector<8x128xf32>
    %c0_113 = arith.constant 0 : index
    %c0_114 = arith.constant 0 : index
    %176 = vector.load %arg5[%c0_113, %c0_114] : memref<1x128xf32, #tpu.memory_space<vmem>>, vector<1x128xf32>
    %177 = vector.broadcast %176 : vector<1x128xf32> to vector<8x128xf32>
    %178 = arith.addf %175, %177 : vector<8x128xf32>
    %c0_115 = arith.constant 0 : index
    %c0_116 = arith.constant 0 : index
    %179 = vector.load %arg6[%c0_115, %c0_116] : memref<8x128xf32, #tpu.memory_space<vmem>>, vector<8x128xf32>
    tpu.vector_store %arg6[%c0_115, %c0_116], %178 {strides = array<i32>} : memref<8x128xf32, #tpu.memory_space<vmem>>, vector<8x128xf32>,
    return
  }
  func.func @transform_0(%arg0: i32) -> (i32, i32) {
    %c0_i32 = arith.constant 0 : i32
    %c0_i32_0 = arith.constant 0 : i32
    return %arg0, %c0_i32 : i32, i32
  }
  func.func @transform_1(%arg0: i32) -> (i32, i32) {
    %c0_i32 = arith.constant 0 : i32
    %c0_i32_0 = arith.constant 0 : i32
    %c0_i32_1 = arith.constant 0 : i32
    return %c0_i32, %c0_i32_0 : i32, i32
  }
  func.func @transform_2(%arg0: i32) -> (i32, i32) {
    %c0_i32 = arith.constant 0 : i32
    %c0_i32_0 = arith.constant 0 : i32
    %c0_i32_1 = arith.constant 0 : i32
    return %c0_i32, %c0_i32_0 : i32, i32
  }
  func.func @transform_3(%arg0: i32) -> (i32, i32) {
    %c0_i32 = arith.constant 0 : i32
    %c0_i32_0 = arith.constant 0 : i32
    %c0_i32_1 = arith.constant 0 : i32
    return %c0_i32, %c0_i32_0 : i32, i32
  }
  func.func @transform_4(%arg0: i32) -> (i32, i32) {
    %c0_i32 = arith.constant 0 : i32
    %c0_i32_0 = arith.constant 0 : i32
    %c0_i32_1 = arith.constant 0 : i32
    return %c0_i32, %c0_i32_0 : i32, i32
  }
  func.func @transform_5(%arg0: i32) -> (i32, i32) {
    %c0_i32 = arith.constant 0 : i32
    %c0_i32_0 = arith.constant 0 : i32
    return %arg0, %c0_i32 : i32, i32
  }
}

</mosaic_0001>

<bundles_post_ra>
// kernel: student_net_forward.1
= control target key start
LH: loop header
LB: loop body
LE: loop exit
PB: predicated region body
PF: predicated region fallthrough
CT: control target
= control target key end

     0   :  { %10 = vsyncpa [#allocation3], 0  ;;  %s12837_s0 = inlined_call_operand.vmem [shape: f32[8,128], index: 0, kind: input, shape index: {}]   ;;  %s12838_s1 = inlined_call_operand.hbm [shape: bf16[8192,256], index: 1, kind: input, shape index: {}]   ;;  %s12839_s2 = inlined_call_operand.hbm [shape: bf16[2176,128], index: 2, kind: input, shape index: {}]   ;;  %s12840_s3 = inlined_call_operand.hbm [shape: f32[8,256], index: 3, kind: input, shape index: {}]   ;;  %s12841_s4 = inlined_call_operand.hbm [shape: f32[1,128], index: 4, kind: input, shape index: {}]   ;;  %s12842_s5 = inlined_call_operand.vmem [shape: f32[8,128], index: 5, kind: output, shape index: {}]  }
   0x1   :  { %11 = vsyncpa [#allocation5], 0 }
   0x2   :  { %12 = vsyncpa [#allocation8], 0  ;;  %s12491_s18 = smov [#allocation4]  }
   0x3   :  { %s32_s19 = sshll.u32 %s12491_s18, 4  ;;  %s33_s19 = int_to_ptr.vmem [resolvable:$true] %s32_s19 }
   0x4   :  { %s12413_s20 = scalar_lea.vmem %s33_s19, 17408  ;;  %p12418_p1 = scmp.lt.s32.totalorder %s33_s19, %s33_s19 }
   0x5   :  { %p12414_p0 = scmp.ne.s32.totalorder %s33_s19, %s12413_s20  ;;  %p12419_p2 = scmp.lt.s32.totalorder %s12413_s20, %s12413_s20 }
   0x7   :  { %p12420_p3 = por %p12419_p2, %p12418_p1 }
   0x9   :  { %p12421_p4 = pnand %p12420_p3, %p12414_p0 }
   0xb   :  { %12424 = shalt.err (!%p12421_p4)
}
   0xc   :  { %s12492_s21 = smov 64   ;;  %s12493_s22 = smov 4  }
   0xd   :  { %38 = dma.hbm_to_vmem [thread:$0]  %s12839_s2, 17408, %s33_s19, [#allocation5], %s12492_s21, %s12492_s21, %s12493_s22  }
   0xe   :  { %s12494_s25 = smov [#allocation2]  }
   0xf   :  { %s20_s26 = sshll.u32 %s12494_s25, 4  ;;  %s21_s26 = int_to_ptr.vmem [resolvable:$true] %s20_s26 }
  0x10   :  { %s12433_s27 = scalar_lea.vmem %s21_s26, 131072  ;;  %p12438_p6 = scmp.lt.s32.totalorder %s21_s26, %s21_s26 }
  0x11   :  { %p12434_p5 = scmp.ne.s32.totalorder %s21_s26, %s12433_s27  ;;  %p12439_p7 = scmp.lt.s32.totalorder %s12433_s27, %s12433_s27 }
  0x13   :  { %p12440_p8 = por %p12439_p7, %p12438_p6 }
  0x15   :  { %p12441_p9 = pnand %p12440_p8, %p12434_p5 }
  0x17   :  { %12444 = shalt.err (!%p12441_p9)
}
  0x18   :  { %s12495_s28 = smov 128   ;;  %s12496_s29 = smov 8  }
  0x19   :  { %26 = dma.hbm_to_vmem [thread:$0]  %s12838_s1, 131072, %s21_s26, [#allocation3], %s12495_s28, %s12495_s28, %s12496_s29  }
  0x1a   :  { %s12497_s7 = smov [#allocation6]   ;;  %s12498_s9 = smov [#allocation7]  }
  0x1b   :  { %s45_s8 = sshll.u32 %s12497_s7, 4  ;;  %s55_s2 = sshll.u32 %s12498_s9, 4  ;;  %s46_s8 = int_to_ptr.vmem [resolvable:$true] %s45_s8  ;;  %s56_s2 = int_to_ptr.vmem [resolvable:$true] %s55_s2 }
  0x1c   :  { %s12453_s10 = scalar_lea.vmem %s46_s8, 256  ;;  %p12458_p11 = scmp.lt.s32.totalorder %s46_s8, %s46_s8 }
  0x1d   :  { %p12454_p10 = scmp.ne.s32.totalorder %s46_s8, %s12453_s10  ;;  %p12459_p12 = scmp.lt.s32.totalorder %s12453_s10, %s12453_s10 }
  0x1f   :  { %p12460_p13 = por %p12459_p12, %p12458_p11 }
  0x21   :  { %p12461_p0 = pnand %p12460_p13, %p12454_p10 }
  0x23   :  { %12464 = shalt.err (!%p12461_p0)
}
  0x24   :  { %48 = dma.hbm_to_vmem [thread:$0]  %s12840_s3, 256, %s46_s8, [#allocation5]  }
  0x25   :  { %s12473_s13 = scalar_lea.vmem %s56_s2, 16  ;;  %s12477_s1 = scalar_lea.vmem %s56_s2, 32 }
  0x26   :  { %p12474_p1 = scmp.ne.s32.totalorder %s56_s2, %s12473_s13  ;;  %p12478_p2 = scmp.lt.s32.totalorder %s56_s2, %s56_s2 }
  0x27   :  { %p12479_p3 = scmp.lt.s32.totalorder %s12477_s1, %s12473_s13 }
  0x29   :  { %p12480_p4 = por %p12479_p3, %p12478_p2 }
  0x2b   :  { %p12481_p5 = pnand %p12480_p4, %p12474_p1 }
  0x2d   :  { %12484 = shalt.err (!%p12481_p5)
}
  0x2e   :  { %58 = dma.hbm_to_vmem [thread:$0]  %s12841_s4, 16, %s56_s2, [#allocation8]  }
  0x2f   :  { %12485 = dma.done.wait [#allocation3], 131072  }
  0x30   :  { %12486 = vsyncadd [#allocation3], 4294836224 }
  0x31   :  { %12487 = dma.done.wait [#allocation5], 17664  }
  0x32   :  { %12488 = vsyncadd [#allocation5], 4294949632 }
  0x33   :  { %12489 = dma.done.wait [#allocation8], 16  }
  0x34   :  { %12490 = vsyncadd [#allocation8], 4294967280  ;;  %v12499_v0 = vmov 0   ;;  %v10733_v1 = vld [vmem:[#allocation2 + $0x74] ss:$8 sps:$4 sm:$0xff]   ;;  %v10762_v16 = vld [vmem:[#allocation4 + $0xa8] sm:$0xff]   ;;  %v108_v61 = vlaneseq }
  0x35   :  { %230 = vmatprep.mubr.bf16.mxu0 %v12499_v0  ;;  %v10735_v2 = vld [vmem:[#allocation2 + $0x70] ss:$8 sps:$4 sm:$0xff]   ;;  %198 = vmatprep.subr.bf16.mxu0 %v10733_v1  ;;  %v10736_v3 = vld [vmem:[#allocation2 + $0x64] ss:$8 sps:$4 sm:$0xff]   ;;  %v10738_v4 = vld [vmem:[#allocation2 + $0x60] ss:$8 sps:$4 sm:$0xff]  }
  0x36   :  { %199 = vmatpush1.bf16.msra.mxu0 %v10735_v2  ;;  %v10739_v5 = vld [vmem:[#allocation2 + $0x54] ss:$8 sps:$4 sm:$0xff]   ;;  %v10741_v6 = vld [vmem:[#allocation2 + $0x50] ss:$8 sps:$4 sm:$0xff]   ;;  %v10742_v7 = vld [vmem:[#allocation2 + $0x44] ss:$8 sps:$4 sm:$0xff]  }
  0x37   :  { %200 = vmatprep.subr.bf16.mxu0 %v10736_v3  ;;  %v10744_v8 = vld [vmem:[#allocation2 + $0x40] ss:$8 sps:$4 sm:$0xff]   ;;  %v10745_v9 = vld [vmem:[#allocation2 + $0x34] ss:$8 sps:$4 sm:$0xff]   ;;  %v10747_v12 = vld [vmem:[#allocation2 + $0x30] ss:$8 sps:$4 sm:$0xff]  }
  0x38   :  { %v10757_v10 = vld [vmem:[#allocation4 + $0xb8] sm:$0xff]   ;;  %v10759_v13 = vld [vmem:[#allocation4 + $0xb0] sm:$0xff]   ;;  %v10748_v15 = vld [vmem:[#allocation2 + $0x24] ss:$8 sps:$4 sm:$0xff]   ;;  %v12500_v32 = vmov 0.0   ;;  %vm12501_vm0 = vmmov 0  }
  0x39   :  { %v10758_v11 = vld [vmem:[#allocation4 + $0x78] sm:$0xff]   ;;  %10517 = vmatprep.subr.bf16.mxu1 %v10757_v10  ;;  %v10760_v14 = vld [vmem:[#allocation4 + $0x70] sm:$0xff]   ;;  %v10750_v17 = vld [vmem:[#allocation2 + $0x20] ss:$8 sps:$4 sm:$0xff]   ;;  %v109_v62 = vshrl.u32 %v108_v61, 7 }
  0x3a   :  { %201 = vmatpush1.bf16.msra.mxu0 %v10738_v4  ;;  %10518 = vmatpush3.bf16.msra.mxu1 %v10758_v11  ;;  %v10763_v18 = vld [vmem:[#allocation4 + $0x68] sm:$0xff]   ;;  %v10765_v19 = vld [vmem:[#allocation4 + $0xa0] sm:$0xff]   ;;  %v10751_v20 = vld [vmem:[#allocation2 + $0x14] ss:$8 sps:$4 sm:$0xff]  }
  0x3b   :  { %202 = vmatprep.subr.bf16.mxu0 %v10739_v5  ;;  %10519 = vmatprep.subr.bf16.mxu1 %v10759_v13  ;;  %v10753_v21 = vld [vmem:[#allocation2 + $0x10] ss:$8 sps:$4 sm:$0xff]   ;;  %v10766_v22 = vld [vmem:[#allocation4 + $0x60] sm:$0xff]   ;;  %v10767_v34 = vld [vmem:[#allocation4 + $0x28] sm:$0xff]   ;;  %v12554_v1 = vsub.s32 0, %v109_v62  ;;  %v12556_v2 = vsub.s32 1, %v109_v62 }
  0x3c   :  { %v10768_v23 = vld [vmem:[#allocation4 + $0x98] sm:$0xff]   ;;  %v10754_v24 = vld [vmem:[#allocation2 + $0x4] ss:$8 sps:$4 sm:$0xff]   ;;  %v10756_v25 = vld [vmem:[#allocation2] ss:$8 sps:$4 sm:$0xff]  }
  0x3d   :  { %v72_v26 = vld [vmem:[%s12837_s0] sm:$0xff]  ;;  %v10769_v27 = vld [vmem:[#allocation4 + $0x58] sm:$0xff]   ;;  %v10771_v28 = vld [vmem:[#allocation4 + $0x90] sm:$0xff]  }
  0x3e   :  { %203 = vmatpush1.bf16.msra.mxu0 %v10741_v6  ;;  %10520 = vmatpush3.bf16.msra.mxu1 %v10760_v14  ;;  %v10772_v29 = vld [vmem:[#allocation4 + $0x50] sm:$0xff]   ;;  %v10761_v30 = vld [vmem:[#allocation4 + $0x38] sm:$0xff]   ;;  %v12548_v31 = vpack.c.bf16 %v72_v26, %v72_v26  ;;  %v10770_v35 = vld [vmem:[#allocation4 + $0x20] sm:$0xff]  }
  0x3f   :  { %204 = vmatprep.subr.bf16.mxu0 %v10742_v7  ;;  %10521 = vmatprep.subr.bf16.mxu1 %v10762_v16  ;;  %v10764_v33 = vld [vmem:[#allocation4 + $0x30] sm:$0xff]   ;;  %v10773_v36 = vld [vmem:[#allocation4 + $0x18] sm:$0xff]   ;;  %v10774_v37 = vld [vmem:[#allocation4 + $0x88] sm:$0xff]  }
  0x40   :  { %v10775_v38 = vld [vmem:[#allocation4 + $0x48] sm:$0xff]   ;;  %v10776_v39 = vld [vmem:[#allocation4 + $0x10] sm:$0xff]   ;;  %v10777_v40 = vld [vmem:[#allocation4 + $0x80] sm:$0xff]  }
  0x41   :  { %v10778_v41 = vld [vmem:[#allocation4 + $0x40] sm:$0xff]   ;;  %v10779_v42 = vld [vmem:[#allocation4 + $0x8] sm:$0xff]   ;;  %v10782_v43 = vld [vmem:[#allocation2 + $0x174] ss:$8 sps:$4 sm:$0xff]  }
  0x42   :  { %205 = vmatpush1.bf16.msra.mxu0 %v10744_v8  ;;  %10522 = vmatpush3.bf16.msra.mxu1 %v10763_v18  ;;  %v10783_v44 = vld [vmem:[#allocation4] sm:$0xff]   ;;  %v10804_v45 = vld [vmem:[#allocation2 + $0xf4] ss:$8 sps:$4 sm:$0xff]   ;;  %v10802_v46 = vld [vmem:[#allocation2 + $0xf0] ss:$8 sps:$4 sm:$0xff]  }
  0x43   :  { %206 = vmatprep.subr.bf16.mxu0 %v10745_v9  ;;  %10523 = vmatprep.subr.bf16.mxu1 %v10765_v19  ;;  %v10810_v47 = vld [vmem:[#allocation2 + $0xe4] ss:$8 sps:$4 sm:$0xff]   ;;  %v10808_v48 = vld [vmem:[#allocation2 + $0xe0] ss:$8 sps:$4 sm:$0xff]   ;;  %v10816_v49 = vld [vmem:[#allocation2 + $0xd4] ss:$8 sps:$4 sm:$0xff]  }
  0x44   :  { %v10814_v50 = vld [vmem:[#allocation2 + $0xd0] ss:$8 sps:$4 sm:$0xff]   ;;  %v10822_v51 = vld [vmem:[#allocation2 + $0xc4] ss:$8 sps:$4 sm:$0xff]   ;;  %v10820_v52 = vld [vmem:[#allocation2 + $0xc0] ss:$8 sps:$4 sm:$0xff]  }
  0x45   :  { %v10828_v53 = vld [vmem:[#allocation2 + $0xb4] ss:$8 sps:$4 sm:$0xff]   ;;  %v10826_v54 = vld [vmem:[#allocation2 + $0xb0] ss:$8 sps:$4 sm:$0xff]   ;;  %v10834_v55 = vld [vmem:[#allocation2 + $0xa4] ss:$8 sps:$4 sm:$0xff]  }
  0x46   :  { %207 = vmatpush1.bf16.msra.mxu0 %v10747_v12  ;;  %10524 = vmatpush3.bf16.msra.mxu1 %v10766_v22  ;;  %v10832_v56 = vld [vmem:[#allocation2 + $0xa0] ss:$8 sps:$4 sm:$0xff]   ;;  %v10840_v57 = vld [vmem:[#allocation2 + $0x94] ss:$8 sps:$4 sm:$0xff]   ;;  %v10838_v58 = vld [vmem:[#allocation2 + $0x90] ss:$8 sps:$4 sm:$0xff]  }
  0x47   :  { %208 = vmatprep.subr.bf16.mxu0 %v10748_v15  ;;  %10525 = vmatprep.subr.bf16.mxu1 %v10768_v23  ;;  %v10846_v59 = vld [vmem:[#allocation2 + $0x84] ss:$8 sps:$4 sm:$0xff]   ;;  %v10844_v60 = vld [vmem:[#allocation2 + $0x80] ss:$8 sps:$4 sm:$0xff]   ;;  %v10780_v12 = vld [vmem:[#allocation2 + $0x170] ss:$8 sps:$4 sm:$0xff]  }
  0x48   :  { %v106_v63 = vld [vmem:[#allocation6] ss:$8 sm:$0x3]  ;;  %v10786_v14 = vld [vmem:[#allocation2 + $0x164] ss:$8 sps:$4 sm:$0xff]   ;;  %v10904_v62 = vld [vmem:[#allocation4 + $0xf0] sm:$0xff]  }
  0x49   :  { %v111_v3 = vrot.slane %v106_v63, %v12554_v1  ;;  %v115_v4 = vrot.slane %v106_v63, %v12556_v2  ;;  %v10789_v18 = vld [vmem:[#allocation2 + $0x154] ss:$8 sps:$4 sm:$0xff]   ;;  %v10787_v19 = vld [vmem:[#allocation2 + $0x150] ss:$8 sps:$4 sm:$0xff]   ;;  %v10905_v63 = vld [vmem:[#allocation4 + $0x128] sm:$0xff]  }
  0x4a   :  { %209 = vmatpush1.bf16.msra.mxu0 %v10750_v17  ;;  %10526 = vmatpush3.bf16.msra.mxu1 %v10769_v27  ;;  %v10784_v17 = vld [vmem:[#allocation2 + $0x160] ss:$8 sps:$4 sm:$0xff]   ;;  %v10795_v22 = vld [vmem:[#allocation2 + $0x134] ss:$8 sps:$4 sm:$0xff]   ;;  %v10793_v23 = vld [vmem:[#allocation2 + $0x130] ss:$8 sps:$4 sm:$0xff]  }
  0x4b   :  { %210 = vmatprep.subr.bf16.mxu0 %v10751_v20  ;;  %10527 = vmatprep.subr.bf16.mxu1 %v10771_v28  ;;  %v10792_v20 = vld [vmem:[#allocation2 + $0x144] ss:$8 sps:$4 sm:$0xff]   ;;  %v10801_v26 = vld [vmem:[#allocation2 + $0x114] ss:$8 sps:$4 sm:$0xff]   ;;  %v10799_v27 = vld [vmem:[#allocation2 + $0x110] ss:$8 sps:$4 sm:$0xff]  }
  0x4c   :  { %v10807_v28 = vld [vmem:[#allocation2 + $0x104] ss:$8 sps:$4 sm:$0xff]  }
  0x4e   :  { %211 = vmatpush1.bf16.msra.mxu0 %v10753_v21  ;;  %10528 = vmatpush3.bf16.msra.mxu1 %v10772_v29  ;;  %v10790_v21 = vld [vmem:[#allocation2 + $0x140] ss:$8 sps:$4 sm:$0xff]  }
  0x4f   :  { %212 = vmatprep.subr.bf16.mxu0 %v10754_v24  ;;  %10529 = vmatprep.subr.bf16.mxu1 %v10774_v37  ;;  %v10798_v24 = vld [vmem:[#allocation2 + $0x124] ss:$8 sps:$4 sm:$0xff]   ;;  %v10805_v29 = vld [vmem:[#allocation2 + $0x100] ss:$8 sps:$4 sm:$0xff]  }
  0x50   :  { %v10831_v37 = vld [vmem:[#allocation2 + $0x1c4] ss:$8 sps:$4 sm:$0xff]  }
  0x52   :  { %213 = vmatpush1.bf16.msra.mxu0 %v10756_v25  ;;  %10530 = vmatpush3.bf16.msra.mxu1 %v10775_v38  ;;  %v10796_v25 = vld [vmem:[#allocation2 + $0x120] ss:$8 sps:$4 sm:$0xff]  }
  0x53   :  { %10702 = vmatprep.subr.bf16.mxu0 %v12500_v32  ;;  %10531 = vmatprep.subr.bf16.mxu1 %v10777_v40  ;;  %v10829_v38 = vld [vmem:[#allocation2 + $0x1c0] ss:$8 sps:$4 sm:$0xff]   ;;  %v10835_v40 = vld [vmem:[#allocation2 + $0x1b0] ss:$8 sps:$4 sm:$0xff]  }
  0x55   :  { %231 = vmatmul.mubr.bf16.vlgmr.msra.gmra.mxu0 %v12548_v31 }
  0x56   :  { %10703 = vmatpush3.bf16.msra.mxu0 %v10761_v30  ;;  %10532 = vmatpush3.bf16.msra.mxu1 %v10778_v41  ;;  %v10813_v30 = vld [vmem:[#allocation2 + $0x1f4] ss:$8 sps:$4 sm:$0xff]   ;;  %v10843_v41 = vld [vmem:[#allocation2 + $0x1a4] ss:$8 sps:$4 sm:$0xff]  }
  0x57   :  { %10704 = vmatprep.subr.bf16.mxu0 %v12500_v32  ;;  %707 = vmatprep.subr.bf16.mxu1 %v10782_v43  ;;  %v10849_v43 = vld [vmem:[#allocation2 + $0x194] ss:$8 sps:$4 sm:$0xff]  }
  0x58   :  { %10718 = vmatprep.mubr.msk.bf16.mxu0 %vm12501_vm0, %v12500_v32 }
  0x5a   :  { %10705 = vmatpush3.bf16.msra.mxu0 %v10764_v33  ;;  %v10819_v33 = vld [vmem:[#allocation2 + $0x1e4] ss:$8 sps:$4 sm:$0xff]  }
  0x5b   :  { %10706 = vmatprep.subr.bf16.mxu0 %v12500_v32 }
  0x5e   :  { %10707 = vmatpush3.bf16.msra.mxu0 %v10767_v34  ;;  %v10817_v34 = vld [vmem:[#allocation2 + $0x1e0] ss:$8 sps:$4 sm:$0xff]  }
  0x5f   :  { %10708 = vmatprep.subr.bf16.mxu0 %v12500_v32 }
  0x62   :  { %10709 = vmatpush3.bf16.msra.mxu0 %v10770_v35  ;;  %v10825_v35 = vld [vmem:[#allocation2 + $0x1d4] ss:$8 sps:$4 sm:$0xff]  }
  0x63   :  { %10710 = vmatprep.subr.bf16.mxu0 %v12500_v32 }
  0x66   :  { %10711 = vmatpush3.bf16.msra.mxu0 %v10773_v36  ;;  %v10823_v36 = vld [vmem:[#allocation2 + $0x1d0] ss:$8 sps:$4 sm:$0xff]  }
  0x67   :  { %10712 = vmatprep.subr.bf16.mxu0 %v12500_v32 }
  0x6a   :  { %10713 = vmatpush3.bf16.msra.mxu0 %v10776_v39  ;;  %v10837_v39 = vld [vmem:[#allocation2 + $0x1b4] ss:$8 sps:$4 sm:$0xff]  }
  0x6b   :  { %10714 = vmatprep.subr.bf16.mxu0 %v12500_v32 }
  0x6e   :  { %10715 = vmatpush3.bf16.msra.mxu0 %v10779_v42  ;;  %v10841_v42 = vld [vmem:[#allocation2 + $0x1a0] ss:$8 sps:$4 sm:$0xff]  }
  0x6f   :  { %10716 = vmatprep.subr.bf16.mxu0 %v12500_v32  ;;  %v10811_v32 = vld [vmem:[#allocation2 + $0x1f0] ss:$8 sps:$4 sm:$0xff]  }
  0x72   :  { %10717 = vmatpush3.bf16.msra.mxu0 %v10783_v44  ;;  %v10847_v44 = vld [vmem:[#allocation2 + $0x190] ss:$8 sps:$4 sm:$0xff]  }
  0x73   :  { %828 = vmatprep.subr.bf16.mxu0 %v10804_v45  ;;  %v10852_v45 = vld [vmem:[#allocation2 + $0x184] ss:$8 sps:$4 sm:$0xff]  }
  0x75   :  { %10719 = vmatmul.mubr.bf16.vlgmr.msra.gmra.mxu0 %v12548_v31 }
  0x76   :  { %860 = vmatprep.mubr.bf16.mxu0 %v12499_v0  ;;  %829 = vmatpush1.bf16.msra.mxu0 %v10802_v46  ;;  %v10850_v46 = vld [vmem:[#allocation2 + $0x180] ss:$8 sps:$4 sm:$0xff]  }
  0x77   :  { %830 = vmatprep.subr.bf16.mxu0 %v10810_v47  ;;  %v10855_v47 = vld [vmem:[#allocation2 + $0x2f4] ss:$8 sps:$4 sm:$0xff]  }
  0x7a   :  { %831 = vmatpush1.bf16.msra.mxu0 %v10808_v48  ;;  %v10853_v48 = vld [vmem:[#allocation2 + $0x2f0] ss:$8 sps:$4 sm:$0xff]  }
  0x7b   :  { %832 = vmatprep.subr.bf16.mxu0 %v10816_v49  ;;  %v10858_v49 = vld [vmem:[#allocation2 + $0x2e4] ss:$8 sps:$4 sm:$0xff]  }
  0x7e   :  { %833 = vmatpush1.bf16.msra.mxu0 %v10814_v50  ;;  %v10856_v50 = vld [vmem:[#allocation2 + $0x2e0] ss:$8 sps:$4 sm:$0xff]  }
  0x7f   :  { %834 = vmatprep.subr.bf16.mxu0 %v10822_v51  ;;  %v10861_v51 = vld [vmem:[#allocation2 + $0x2d4] ss:$8 sps:$4 sm:$0xff]  }
  0x82   :  { %835 = vmatpush1.bf16.msra.mxu0 %v10820_v52  ;;  %v10859_v52 = vld [vmem:[#allocation2 + $0x2d0] ss:$8 sps:$4 sm:$0xff]  }
  0x83   :  { %836 = vmatprep.subr.bf16.mxu0 %v10828_v53  ;;  %v10864_v53 = vld [vmem:[#allocation2 + $0x2c4] ss:$8 sps:$4 sm:$0xff]  }
  0x86   :  { %837 = vmatpush1.bf16.msra.mxu0 %v10826_v54 }
  0x87   :  { %838 = vmatprep.subr.bf16.mxu0 %v10834_v55  ;;  %v10901_v55 = vld [vmem:[#allocation4 + $0x138] sm:$0xff]  }
  0x8a   :  { %839 = vmatpush1.bf16.msra.mxu0 %v10832_v56  ;;  %v10902_v56 = vld [vmem:[#allocation4 + $0xf8] sm:$0xff]  }
  0x8b   :  { %840 = vmatprep.subr.bf16.mxu0 %v10840_v57  ;;  %v10903_v57 = vld [vmem:[#allocation4 + $0x130] sm:$0xff]  }
  0x8e   :  { %841 = vmatpush1.bf16.msra.mxu0 %v10838_v58 }
  0x8f   :  { %842 = vmatprep.subr.bf16.mxu0 %v10846_v59  ;;  %v10862_v59 = vld [vmem:[#allocation2 + $0x2c0] ss:$8 sps:$4 sm:$0xff]  }
  0x92   :  { %843 = vmatpush1.bf16.msra.mxu0 %v10844_v60  ;;  %v10867_v60 = vld [vmem:[#allocation2 + $0x2b4] ss:$8 sps:$4 sm:$0xff]  }
  0x93   :  { %10548 = vmatprep.subr.bf16.mxu0 %v10901_v55 }
  0x95   :  { %861 = vmatmul.mubr.bf16.vlgmr.msra.gmra.mxu0 %v12548_v31 }
  0x96   :  { %10549 = vmatpush3.bf16.msra.mxu0 %v10902_v56 }
  0x97   :  { %10550 = vmatprep.subr.bf16.mxu0 %v10903_v57 }
  0x9a   :  { %10551 = vmatpush3.bf16.msra.mxu0 %v10904_v62 }
  0x9b   :  { %10552 = vmatprep.subr.bf16.mxu0 %v10905_v63 }
 0x115   :  { %v232_v5 = vpop.f32.mrf.mxu0 }
 0x116   :  { %v233_v6 = vadd.f32 %v232_v5, %v111_v3  ;;  %v10865_v3 = vld [vmem:[#allocation2 + $0x2b0] ss:$8 sps:$4 sm:$0xff]   ;;  %v10906_v5 = vld [vmem:[#allocation4 + $0xe8] sm:$0xff]  }
 0x117   :  { %v234_v7 = vpop.f32.mrf.mxu0  ;;  %10553 = vmatpush3.bf16.msra.mxu0 %v10906_v5  ;;  %v10917_v5 = vld [vmem:[#allocation2 + $0x270] ss:$8 sps:$4 sm:$0xff]  }
 0x118   :  { %v235_v8 = vadd.f32 %v234_v7, %v115_v4  ;;  %v239_v9 = vmax.f32 %v233_v6, 0.0  ;;  %v10870_v6 = vld [vmem:[#allocation2 + $0x2a4] ss:$8 sps:$4 sm:$0xff]  }
 0x119   :  { %v236_v10 = vpop.f32.mrf.mxu0  ;;  %v10907_v7 = vld [vmem:[#allocation4 + $0x120] sm:$0xff]  }
 0x11a   :  { %v240_v11 = vmax.f32 %v235_v8, 0.0  ;;  %v12562_v16 = vpack.c.bf16 %v239_v9, %v239_v9  ;;  %v10868_v8 = vld [vmem:[#allocation2 + $0x2a0] ss:$8 sps:$4 sm:$0xff]   ;;  %v10873_v10 = vld [vmem:[#allocation2 + $0x294] ss:$8 sps:$4 sm:$0xff]   ;;  %10554 = vmatprep.subr.bf16.mxu0 %v10907_v7 }
 0x11b   :  { %v237_v13 = vpop.f32.mrf.mxu0  ;;  %v10908_v9 = vld [vmem:[#allocation4 + $0xe0] sm:$0xff]  }
 0x11c   :  { %v12560_v15 = vpack.c.bf16 %v240_v11, %v240_v11  ;;  %v10909_v11 = vld [vmem:[#allocation4 + $0x118] sm:$0xff]   ;;  %10555 = vmatpush3.bf16.msra.mxu0 %v10908_v9  ;;  %v10922_v7 = vld [vmem:[#allocation2 + $0x264] ss:$8 sps:$4 sm:$0xff]  }
 0x11d   :  { %v10910_v13 = vld [vmem:[#allocation4 + $0xd8] sm:$0xff]   ;;  %10556 = vmatprep.subr.bf16.mxu0 %v10909_v11  ;;  %v10928_v11 = vld [vmem:[#allocation2 + $0x244] ss:$8 sps:$4 sm:$0xff]  }
 0x11e   :  { %403 = vmatprep.mubr.bf16.mxu1 %v12560_v15  ;;  %v10925_v9 = vld [vmem:[#allocation2 + $0x254] ss:$8 sps:$4 sm:$0xff]  }
 0x11f   :  { %404 = vmatmul.mubr.bf16.vlgmr.msra.gmra.mxu1 %v12562_v16 }
 0x120   :  { %708 = vmatpush1.bf16.msra.mxu1 %v10780_v12  ;;  %739 = vmatprep.mubr.bf16.mxu1 %v12560_v15  ;;  %v10871_v12 = vld [vmem:[#allocation2 + $0x290] ss:$8 sps:$4 sm:$0xff]  }
 0x121   :  { %709 = vmatprep.subr.bf16.mxu1 %v10786_v14  ;;  %v10876_v14 = vld [vmem:[#allocation2 + $0x284] ss:$8 sps:$4 sm:$0xff]   ;;  %10557 = vmatpush3.bf16.msra.mxu0 %v10910_v13  ;;  %v10931_v13 = vld [vmem:[#allocation2 + $0x234] ss:$8 sps:$4 sm:$0xff]  }
 0x124   :  { %710 = vmatpush1.bf16.msra.mxu1 %v10784_v17  ;;  %v10911_v17 = vld [vmem:[#allocation4 + $0x110] sm:$0xff]  }
 0x125   :  { %711 = vmatprep.subr.bf16.mxu1 %v10789_v18  ;;  %v10874_v18 = vld [vmem:[#allocation2 + $0x280] ss:$8 sps:$4 sm:$0xff]   ;;  %10558 = vmatprep.subr.bf16.mxu0 %v10911_v17  ;;  %v10934_v17 = vld [vmem:[#allocation2 + $0x224] ss:$8 sps:$4 sm:$0xff]  }
 0x128   :  { %712 = vmatpush1.bf16.msra.mxu1 %v10787_v19  ;;  %v10879_v19 = vld [vmem:[#allocation2 + $0x374] ss:$8 sps:$4 sm:$0xff]  }
 0x129   :  { %713 = vmatprep.subr.bf16.mxu1 %v10792_v20  ;;  %v10877_v20 = vld [vmem:[#allocation2 + $0x370] ss:$8 sps:$4 sm:$0xff]  }
 0x12c   :  { %714 = vmatpush1.bf16.msra.mxu1 %v10790_v21  ;;  %v10882_v21 = vld [vmem:[#allocation2 + $0x364] ss:$8 sps:$4 sm:$0xff]  }
 0x12d   :  { %715 = vmatprep.subr.bf16.mxu1 %v10795_v22  ;;  %v10880_v22 = vld [vmem:[#allocation2 + $0x360] ss:$8 sps:$4 sm:$0xff]  }
 0x130   :  { %716 = vmatpush1.bf16.msra.mxu1 %v10793_v23  ;;  %v10885_v23 = vld [vmem:[#allocation2 + $0x354] ss:$8 sps:$4 sm:$0xff]  }
 0x131   :  { %717 = vmatprep.subr.bf16.mxu1 %v10798_v24  ;;  %v10883_v24 = vld [vmem:[#allocation2 + $0x350] ss:$8 sps:$4 sm:$0xff]  }
 0x134   :  { %718 = vmatpush1.bf16.msra.mxu1 %v10796_v25  ;;  %v10888_v25 = vld [vmem:[#allocation2 + $0x344] ss:$8 sps:$4 sm:$0xff]  }
 0x135   :  { %719 = vmatprep.subr.bf16.mxu1 %v10801_v26  ;;  %v12569_v54 = vpop.f32.mrf.mxu0  ;;  %v10886_v26 = vld [vmem:[#allocation2 + $0x340] ss:$8 sps:$4 sm:$0xff]  }
 0x137   :  { %v10720_v58 = vpop.f32.mrf.mxu0 }
 0x138   :  { %720 = vmatpush1.bf16.msra.mxu1 %v10799_v27  ;;  %v10891_v27 = vld [vmem:[#allocation2 + $0x334] ss:$8 sps:$4 sm:$0xff]  }
 0x139   :  { %721 = vmatprep.subr.bf16.mxu1 %v10807_v28  ;;  %v496_v61 = vpop.f32.mrf.mxu0  ;;  %v10889_v28 = vld [vmem:[#allocation2 + $0x330] ss:$8 sps:$4 sm:$0xff]  }
 0x13b   :  { %v10721_v4 = vpop.f32.mrf.mxu0 }
 0x13c   :  { %722 = vmatpush1.bf16.msra.mxu1 %v10805_v29  ;;  %v10894_v29 = vld [vmem:[#allocation2 + $0x324] ss:$8 sps:$4 sm:$0xff]  }
 0x13d   :  { %723 = vmatprep.subr.bf16.mxu1 %v10813_v30  ;;  %v10892_v30 = vld [vmem:[#allocation2 + $0x320] ss:$8 sps:$4 sm:$0xff]  }
 0x140   :  { %724 = vmatpush2.bf16.msra.mxu1 %v10811_v32  ;;  %v10897_v32 = vld [vmem:[#allocation2 + $0x314] ss:$8 sps:$4 sm:$0xff]  }
 0x141   :  { %725 = vmatprep.subr.bf16.mxu1 %v10819_v33  ;;  %v10895_v33 = vld [vmem:[#allocation2 + $0x310] ss:$8 sps:$4 sm:$0xff]  }
 0x144   :  { %726 = vmatpush2.bf16.msra.mxu1 %v10817_v34  ;;  %v10900_v34 = vld [vmem:[#allocation2 + $0x304] ss:$8 sps:$4 sm:$0xff]  }
 0x145   :  { %727 = vmatprep.subr.bf16.mxu1 %v10825_v35  ;;  %v10898_v35 = vld [vmem:[#allocation2 + $0x300] ss:$8 sps:$4 sm:$0xff]  }
 0x148   :  { %728 = vmatpush2.bf16.msra.mxu1 %v10823_v36 }
 0x149   :  { %729 = vmatprep.subr.bf16.mxu1 %v10831_v37 }
 0x14c   :  { %730 = vmatpush2.bf16.msra.mxu1 %v10829_v38 }
 0x14d   :  { %731 = vmatprep.subr.bf16.mxu1 %v10837_v39  ;;  %v10912_v39 = vld [vmem:[#allocation4 + $0xd0] sm:$0xff]  }
 0x14e   :  { %10559 = vmatpush3.bf16.msra.mxu0 %v10912_v39 }
 0x150   :  { %732 = vmatpush2.bf16.msra.mxu1 %v10835_v40 }
 0x151   :  { %733 = vmatprep.subr.bf16.mxu1 %v10843_v41  ;;  %v10913_v41 = vld [vmem:[#allocation4 + $0x108] sm:$0xff]  }
 0x152   :  { %10560 = vmatprep.subr.bf16.mxu0 %v10913_v41 }
 0x154   :  { %734 = vmatpush2.bf16.msra.mxu1 %v10841_v42  ;;  %v10914_v42 = vld [vmem:[#allocation4 + $0xc8] sm:$0xff]  }
 0x155   :  { %735 = vmatprep.subr.bf16.mxu1 %v10849_v43  ;;  %v862_v36 = vpop.f32.mrf.mxu0  ;;  %10561 = vmatpush3.bf16.msra.mxu0 %v10914_v42  ;;  %v10915_v43 = vld [vmem:[#allocation4 + $0x100] sm:$0xff]  }
 0x156   :  { %10562 = vmatprep.subr.bf16.mxu0 %v10915_v43  ;;  %v10962_v42 = vld [vmem:[#allocation2 + $0x380] ss:$8 sps:$4 sm:$0xff]  }
 0x157   :  { %v864_v37 = vpop.f32.mrf.mxu0 }
 0x158   :  { %736 = vmatpush2.bf16.msra.mxu1 %v10847_v44  ;;  %v10916_v44 = vld [vmem:[#allocation4 + $0xc0] sm:$0xff]  }
 0x159   :  { %737 = vmatprep.subr.bf16.mxu1 %v10852_v45  ;;  %v866_v38 = vpop.f32.mrf.mxu0  ;;  %10563 = vmatpush3.bf16.msra.mxu0 %v10916_v44  ;;  %v10919_v45 = vld [vmem:[#allocation2 + $0x274] ss:$8 sps:$4 sm:$0xff]  }
 0x15a   :  { %1386 = vmatprep.subr.bf16.mxu0 %v10919_v45  ;;  %v10959_v38 = vld [vmem:[#allocation2 + $0x390] ss:$8 sps:$4 sm:$0xff]   ;;  %v10967_v44 = vld [vmem:[#allocation2 + $0x474] ss:$8 sps:$4 sm:$0xff]  }
 0x15b   :  { %v867_v40 = vpop.f32.mrf.mxu0  ;;  %v10965_v45 = vld [vmem:[#allocation2 + $0x470] ss:$8 sps:$4 sm:$0xff]  }
 0x15c   :  { %738 = vmatpush2.bf16.msra.mxu1 %v10850_v46  ;;  %v10964_v40 = vld [vmem:[#allocation2 + $0x384] ss:$8 sps:$4 sm:$0xff]  }
 0x15d   :  { %1265 = vmatprep.subr.bf16.mxu1 %v10855_v47 }
 0x15f   :  { %740 = vmatmul.mubr.bf16.vlgmr.msra.gmra.mxu1 %v12562_v16 }
 0x160   :  { %1266 = vmatpush1.bf16.msra.mxu1 %v10853_v48  ;;  %1297 = vmatprep.mubr.bf16.mxu1 %v12560_v15 }
 0x161   :  { %1267 = vmatprep.subr.bf16.mxu1 %v10858_v49 }
 0x164   :  { %1268 = vmatpush1.bf16.msra.mxu1 %v10856_v50 }
 0x165   :  { %1269 = vmatprep.subr.bf16.mxu1 %v10861_v51  ;;  %v870_v51 = vld [vmem:[#allocation6 + $0x1] ss:$8 sm:$0x3] }
 0x166   :  { %v879_v56 = vrot.slane %v870_v51, %v12556_v2 }
 0x168   :  { %1270 = vmatpush1.bf16.msra.mxu1 %v10859_v52  ;;  %v875_v52 = vrot.slane %v870_v51, %v12554_v1  ;;  %v10976_v51 = vld [vmem:[#allocation2 + $0x444] ss:$8 sps:$4 sm:$0xff]  }
 0x169   :  { %1271 = vmatprep.subr.bf16.mxu1 %v10864_v53 }
 0x16c   :  { %1272 = vmatpush1.bf16.msra.mxu1 %v10862_v59 }
 0x16d   :  { %1273 = vmatprep.subr.bf16.mxu1 %v10867_v60 }
 0x170   :  { %1274 = vmatpush1.bf16.msra.mxu1 %v10865_v3 }
 0x171   :  { %1275 = vmatprep.subr.bf16.mxu1 %v10870_v6 }
 0x174   :  { %1276 = vmatpush1.bf16.msra.mxu1 %v10868_v8  ;;  %v10920_v8 = vld [vmem:[#allocation2 + $0x260] ss:$8 sps:$4 sm:$0xff]  }
 0x175   :  { %1277 = vmatprep.subr.bf16.mxu1 %v10873_v10  ;;  %v10923_v10 = vld [vmem:[#allocation2 + $0x250] ss:$8 sps:$4 sm:$0xff]  }
 0x178   :  { %1278 = vmatpush1.bf16.msra.mxu1 %v10871_v12  ;;  %v10926_v12 = vld [vmem:[#allocation2 + $0x240] ss:$8 sps:$4 sm:$0xff]  }
 0x179   :  { %1279 = vmatprep.subr.bf16.mxu1 %v10876_v14  ;;  %v10929_v14 = vld [vmem:[#allocation2 + $0x230] ss:$8 sps:$4 sm:$0xff]  }
 0x17c   :  { %1280 = vmatpush1.bf16.msra.mxu1 %v10874_v18  ;;  %v10932_v18 = vld [vmem:[#allocation2 + $0x220] ss:$8 sps:$4 sm:$0xff]  }
 0x17d   :  { %1281 = vmatprep.subr.bf16.mxu1 %v10879_v19  ;;  %v10937_v19 = vld [vmem:[#allocation2 + $0x214] ss:$8 sps:$4 sm:$0xff]  }
 0x180   :  { %1282 = vmatpush2.bf16.msra.mxu1 %v10877_v20  ;;  %v10935_v20 = vld [vmem:[#allocation2 + $0x210] ss:$8 sps:$4 sm:$0xff]  }
 0x181   :  { %1283 = vmatprep.subr.bf16.mxu1 %v10882_v21  ;;  %v10940_v21 = vld [vmem:[#allocation2 + $0x204] ss:$8 sps:$4 sm:$0xff]  }
 0x184   :  { %1284 = vmatpush2.bf16.msra.mxu1 %v10880_v22  ;;  %v10938_v22 = vld [vmem:[#allocation2 + $0x200] ss:$8 sps:$4 sm:$0xff]  }
 0x185   :  { %1285 = vmatprep.subr.bf16.mxu1 %v10885_v23  ;;  %v10943_v23 = vld [vmem:[#allocation2 + $0x3f4] ss:$8 sps:$4 sm:$0xff]  }
 0x188   :  { %1286 = vmatpush2.bf16.msra.mxu1 %v10883_v24  ;;  %v10941_v24 = vld [vmem:[#allocation2 + $0x3f0] ss:$8 sps:$4 sm:$0xff]  }
 0x189   :  { %1287 = vmatprep.subr.bf16.mxu1 %v10888_v25  ;;  %v10946_v25 = vld [vmem:[#allocation2 + $0x3e4] ss:$8 sps:$4 sm:$0xff]  }
 0x18c   :  { %1288 = vmatpush2.bf16.msra.mxu1 %v10886_v26  ;;  %v10944_v26 = vld [vmem:[#allocation2 + $0x3e0] ss:$8 sps:$4 sm:$0xff]  }
 0x18d   :  { %1289 = vmatprep.subr.bf16.mxu1 %v10891_v27  ;;  %v10949_v27 = vld [vmem:[#allocation2 + $0x3d4] ss:$8 sps:$4 sm:$0xff]  }
 0x190   :  { %1290 = vmatpush2.bf16.msra.mxu1 %v10889_v28  ;;  %v10947_v28 = vld [vmem:[#allocation2 + $0x3d0] ss:$8 sps:$4 sm:$0xff]  }
 0x191   :  { %1291 = vmatprep.subr.bf16.mxu1 %v10894_v29  ;;  %v10952_v29 = vld [vmem:[#allocation2 + $0x3c4] ss:$8 sps:$4 sm:$0xff]  }
 0x194   :  { %1292 = vmatpush2.bf16.msra.mxu1 %v10892_v30  ;;  %v10950_v30 = vld [vmem:[#allocation2 + $0x3c0] ss:$8 sps:$4 sm:$0xff]  }
 0x195   :  { %1293 = vmatprep.subr.bf16.mxu1 %v10897_v32  ;;  %v10955_v32 = vld [vmem:[#allocation2 + $0x3b4] ss:$8 sps:$4 sm:$0xff]  }
 0x198   :  { %1294 = vmatpush2.bf16.msra.mxu1 %v10895_v33  ;;  %v10953_v33 = vld [vmem:[#allocation2 + $0x3b0] ss:$8 sps:$4 sm:$0xff]  }
 0x199   :  { %1295 = vmatprep.subr.bf16.mxu1 %v10900_v34  ;;  %v10958_v34 = vld [vmem:[#allocation2 + $0x3a4] ss:$8 sps:$4 sm:$0xff]  }
 0x19c   :  { %1296 = vmatpush2.bf16.msra.mxu1 %v10898_v35  ;;  %v10956_v35 = vld [vmem:[#allocation2 + $0x3a0] ss:$8 sps:$4 sm:$0xff]  }
 0x19f   :  { %1298 = vmatmul.mubr.bf16.vlgmr.msra.gmra.mxu1 %v12562_v16 }
 0x1df   :  { %v10533_v46 = vpop.f32.mrf.mxu1 }
 0x1e1   :  { %v10534_v47 = vpop.f32.mrf.mxu1 }
 0x1e2   :  { %v12572_v48 = vadd.f32 %v10534_v47, %v10533_v46  ;;  %v10970_v46 = vld [vmem:[#allocation2 + $0x464] ss:$8 sps:$4 sm:$0xff]   ;;  %v10968_v47 = vld [vmem:[#allocation2 + $0x460] ss:$8 sps:$4 sm:$0xff]  }
 0x1e3   :  { %v10536_v49 = vpop.f32.mrf.mxu1 }
 0x1e4   :  { %v10973_v49 = vld [vmem:[#allocation2 + $0x454] ss:$8 sps:$4 sm:$0xff]  }
 0x1e5   :  { %v10537_v50 = vpop.f32.mrf.mxu1 }
 0x1e6   :  { %v10971_v50 = vld [vmem:[#allocation2 + $0x450] ss:$8 sps:$4 sm:$0xff]  }
 0x21f   :  { %v741_v53 = vpop.f32.mrf.mxu1 }
 0x220   :  { %v863_v55 = vadd.f32 %v862_v36, %v741_v53  ;;  %v10961_v36 = vld [vmem:[#allocation2 + $0x394] ss:$8 sps:$4 sm:$0xff]  }
 0x221   :  { %v743_v57 = vpop.f32.mrf.mxu1  ;;  %v10979_v53 = vld [vmem:[#allocation2 + $0x434] ss:$8 sps:$4 sm:$0xff]  }
 0x222   :  { %v882_v58 = vadd.f32 %v875_v52, %v863_v55  ;;  %v865_v59 = vadd.f32 %v864_v37, %v743_v57  ;;  %v10974_v52 = vld [vmem:[#allocation2 + $0x440] ss:$8 sps:$4 sm:$0xff]   ;;  %v10977_v55 = vld [vmem:[#allocation2 + $0x430] ss:$8 sps:$4 sm:$0xff]  }
 0x223   :  { %v745_v60 = vpop.f32.mrf.mxu1  ;;  %v10980_v57 = vld [vmem:[#allocation2 + $0x420] ss:$8 sps:$4 sm:$0xff]  }
 0x224   :  { %v884_v61 = vmax.f32 %v882_v58, 0.0  ;;  %v883_v62 = vadd.f32 %v879_v56, %v865_v59  ;;  %v10982_v56 = vld [vmem:[#allocation2 + $0x424] ss:$8 sps:$4 sm:$0xff]   ;;  %v10985_v58 = vld [vmem:[#allocation2 + $0x414] ss:$8 sps:$4 sm:$0xff]  }
 0x225   :  { %v746_v63 = vpop.f32.mrf.mxu1  ;;  %v10983_v59 = vld [vmem:[#allocation2 + $0x410] ss:$8 sps:$4 sm:$0xff]   ;;  %v10988_v60 = vld [vmem:[#allocation2 + $0x404] ss:$8 sps:$4 sm:$0xff]  }
 0x226   :  { %v885_v3 = vmax.f32 %v883_v62, 0.0  ;;  %v12578_v6 = vpack.c.bf16 %v884_v61, %v884_v61  ;;  %v10986_v61 = vld [vmem:[#allocation2 + $0x400] ss:$8 sps:$4 sm:$0xff]   ;;  %v10991_v62 = vld [vmem:[#allocation2 + $0x4f4] ss:$8 sps:$4 sm:$0xff]  }
 0x227   :  { %v10989_v63 = vld [vmem:[#allocation2 + $0x4f0] ss:$8 sps:$4 sm:$0xff]  }
 0x228   :  { %v12576_v4 = vpack.c.bf16 %v885_v3, %v885_v3  ;;  %v10994_v3 = vld [vmem:[#allocation2 + $0x4e4] ss:$8 sps:$4 sm:$0xff]  }
 0x22a   :  { %1048 = vmatprep.mubr.bf16.mxu0 %v12576_v4 }
 0x22b   :  { %1049 = vmatmul.mubr.bf16.vlgmr.msra.gmra.mxu0 %v12578_v6 }
 0x22c   :  { %1387 = vmatpush1.bf16.msra.mxu0 %v10917_v5  ;;  %1418 = vmatprep.mubr.bf16.mxu0 %v12499_v0  ;;  %v10992_v5 = vld [vmem:[#allocation2 + $0x4e0] ss:$8 sps:$4 sm:$0xff]  }
 0x22d   :  { %1388 = vmatprep.subr.bf16.mxu0 %v10922_v7  ;;  %v10997_v7 = vld [vmem:[#allocation2 + $0x4d4] ss:$8 sps:$4 sm:$0xff]  }
 0x230   :  { %1389 = vmatpush1.bf16.msra.mxu0 %v10920_v8  ;;  %v10995_v8 = vld [vmem:[#allocation2 + $0x4d0] ss:$8 sps:$4 sm:$0xff]  }
 0x231   :  { %1390 = vmatprep.subr.bf16.mxu0 %v10925_v9  ;;  %v11000_v9 = vld [vmem:[#allocation2 + $0x4c4] ss:$8 sps:$4 sm:$0xff]  }
 0x234   :  { %1391 = vmatpush1.bf16.msra.mxu0 %v10923_v10  ;;  %v11061_v10 = vld [vmem:[#allocation4 + $0x1b8] sm:$0xff]  }
 0x235   :  { %1392 = vmatprep.subr.bf16.mxu0 %v10928_v11  ;;  %v11062_v11 = vld [vmem:[#allocation4 + $0x178] sm:$0xff]   ;;  %10570 = vmatprep.subr.bf16.mxu1 %v11061_v10  ;;  %v11054_v10 = vld [vmem:[#allocation2 + $0x6a4] ss:$8 sps:$4 sm:$0xff]  }
 0x236   :  { %10571 = vmatpush3.bf16.msra.mxu1 %v11062_v11  ;;  %v11052_v11 = vld [vmem:[#allocation2 + $0x6a0] ss:$8 sps:$4 sm:$0xff]  }
 0x238   :  { %1393 = vmatpush1.bf16.msra.mxu0 %v10926_v12  ;;  %v11063_v12 = vld [vmem:[#allocation4 + $0x1b0] sm:$0xff]  }
 0x239   :  { %1394 = vmatprep.subr.bf16.mxu0 %v10931_v13  ;;  %v10998_v13 = vld [vmem:[#allocation2 + $0x4c0] ss:$8 sps:$4 sm:$0xff]   ;;  %10572 = vmatprep.subr.bf16.mxu1 %v11063_v12  ;;  %v11057_v12 = vld [vmem:[#allocation2 + $0x694] ss:$8 sps:$4 sm:$0xff]  }
 0x23c   :  { %1395 = vmatpush1.bf16.msra.mxu0 %v10929_v14  ;;  %v11064_v14 = vld [vmem:[#allocation4 + $0x170] sm:$0xff]  }
 0x23d   :  { %1396 = vmatprep.subr.bf16.mxu0 %v10934_v17  ;;  %v11003_v17 = vld [vmem:[#allocation2 + $0x4b4] ss:$8 sps:$4 sm:$0xff]   ;;  %10573 = vmatpush3.bf16.msra.mxu1 %v11064_v14  ;;  %v11060_v14 = vld [vmem:[#allocation2 + $0x684] ss:$8 sps:$4 sm:$0xff]  }
 0x240   :  { %1397 = vmatpush1.bf16.msra.mxu0 %v10932_v18  ;;  %v11065_v18 = vld [vmem:[#allocation4 + $0x1a8] sm:$0xff]  }
 0x241   :  { %1398 = vmatprep.subr.bf16.mxu0 %v10937_v19  ;;  %v11001_v19 = vld [vmem:[#allocation2 + $0x4b0] ss:$8 sps:$4 sm:$0xff]   ;;  %10574 = vmatprep.subr.bf16.mxu1 %v11065_v18 }
 0x244   :  { %1399 = vmatpush1.bf16.msra.mxu0 %v10935_v20  ;;  %v11066_v20 = vld [vmem:[#allocation4 + $0x168] sm:$0xff]  }
 0x245   :  { %1400 = vmatprep.subr.bf16.mxu0 %v10940_v21  ;;  %v11006_v21 = vld [vmem:[#allocation2 + $0x4a4] ss:$8 sps:$4 sm:$0xff]   ;;  %10575 = vmatpush3.bf16.msra.mxu1 %v11066_v20  ;;  %v494_v20 = vadd.f32 %v12572_v48, %v12569_v54 }
 0x248   :  { %1401 = vmatpush1.bf16.msra.mxu0 %v10938_v22  ;;  %v11067_v22 = vld [vmem:[#allocation4 + $0x1a0] sm:$0xff]  }
 0x249   :  { %1619 = vmatprep.subr.bf16.mxu0 %v10943_v23  ;;  %v11004_v23 = vld [vmem:[#allocation2 + $0x4a0] ss:$8 sps:$4 sm:$0xff]   ;;  %10576 = vmatprep.subr.bf16.mxu1 %v11067_v22 }
 0x24b   :  { %1419 = vmatmul.mubr.bf16.vlgmr.msra.gmra.mxu0 %v12548_v31 }
 0x24c   :  { %1620 = vmatpush1.bf16.msra.mxu0 %v10941_v24  ;;  %1651 = vmatprep.mubr.bf16.mxu0 %v12576_v4  ;;  %v11068_v24 = vld [vmem:[#allocation4 + $0x160] sm:$0xff]  }
 0x24d   :  { %1621 = vmatprep.subr.bf16.mxu0 %v10946_v25  ;;  %v11009_v25 = vld [vmem:[#allocation2 + $0x494] ss:$8 sps:$4 sm:$0xff]   ;;  %10577 = vmatpush3.bf16.msra.mxu1 %v11068_v24 }
 0x250   :  { %1622 = vmatpush1.bf16.msra.mxu0 %v10944_v26  ;;  %v11069_v26 = vld [vmem:[#allocation4 + $0x198] sm:$0xff]  }
 0x251   :  { %1623 = vmatprep.subr.bf16.mxu0 %v10949_v27  ;;  %v11007_v27 = vld [vmem:[#allocation2 + $0x490] ss:$8 sps:$4 sm:$0xff]   ;;  %10578 = vmatprep.subr.bf16.mxu1 %v11069_v26 }
 0x254   :  { %1624 = vmatpush1.bf16.msra.mxu0 %v10947_v28  ;;  %v11070_v28 = vld [vmem:[#allocation4 + $0x158] sm:$0xff]  }
 0x255   :  { %1625 = vmatprep.subr.bf16.mxu0 %v10952_v29  ;;  %v11012_v29 = vld [vmem:[#allocation2 + $0x484] ss:$8 sps:$4 sm:$0xff]   ;;  %10579 = vmatpush3.bf16.msra.mxu1 %v11070_v28 }
 0x258   :  { %1626 = vmatpush1.bf16.msra.mxu0 %v10950_v30  ;;  %v11071_v30 = vld [vmem:[#allocation4 + $0x190] sm:$0xff]  }
 0x259   :  { %1627 = vmatprep.subr.bf16.mxu0 %v10955_v32  ;;  %v11010_v32 = vld [vmem:[#allocation2 + $0x480] ss:$8 sps:$4 sm:$0xff]   ;;  %10580 = vmatprep.subr.bf16.mxu1 %v11071_v30 }
 0x25c   :  { %1628 = vmatpush1.bf16.msra.mxu0 %v10953_v33  ;;  %v11015_v33 = vld [vmem:[#allocation2 + $0x674] ss:$8 sps:$4 sm:$0xff]  }
 0x25d   :  { %1629 = vmatprep.subr.bf16.mxu0 %v10958_v34  ;;  %v11013_v34 = vld [vmem:[#allocation2 + $0x670] ss:$8 sps:$4 sm:$0xff]  }
 0x25f   :  { %v12585_v37 = vpop.f32.mrf.mxu1 }
 0x260   :  { %1630 = vmatpush1.bf16.msra.mxu0 %v10956_v35  ;;  %v11018_v35 = vld [vmem:[#allocation2 + $0x664] ss:$8 sps:$4 sm:$0xff]  }
 0x261   :  { %v12587_v39 = vpop.f32.mrf.mxu1  ;;  %1631 = vmatprep.subr.bf16.mxu0 %v10961_v36  ;;  %v11016_v36 = vld [vmem:[#allocation2 + $0x660] ss:$8 sps:$4 sm:$0xff]  }
 0x263   :  { %v1303_v41 = vpop.f32.mrf.mxu1 }
 0x264   :  { %1632 = vmatpush1.bf16.msra.mxu0 %v10959_v38  ;;  %v11021_v38 = vld [vmem:[#allocation2 + $0x654] ss:$8 sps:$4 sm:$0xff]   ;;  %v11024_v41 = vld [vmem:[#allocation2 + $0x644] ss:$8 sps:$4 sm:$0xff]  }
 0x265   :  { %v1304_v43 = vpop.f32.mrf.mxu1  ;;  %1633 = vmatprep.subr.bf16.mxu0 %v10964_v40  ;;  %v11019_v40 = vld [vmem:[#allocation2 + $0x650] ss:$8 sps:$4 sm:$0xff]  }
 0x266   :  { %v11027_v43 = vld [vmem:[#allocation2 + $0x634] ss:$8 sps:$4 sm:$0xff]  }
 0x268   :  { %1634 = vmatpush1.bf16.msra.mxu0 %v10962_v42  ;;  %v11022_v42 = vld [vmem:[#allocation2 + $0x640] ss:$8 sps:$4 sm:$0xff]  }
 0x269   :  { %1635 = vmatprep.subr.bf16.mxu0 %v10967_v44  ;;  %v11025_v44 = vld [vmem:[#allocation2 + $0x630] ss:$8 sps:$4 sm:$0xff]  }
 0x26c   :  { %1636 = vmatpush2.bf16.msra.mxu0 %v10965_v45  ;;  %v11030_v45 = vld [vmem:[#allocation2 + $0x624] ss:$8 sps:$4 sm:$0xff]  }
 0x26d   :  { %1637 = vmatprep.subr.bf16.mxu0 %v10970_v46  ;;  %v11028_v46 = vld [vmem:[#allocation2 + $0x620] ss:$8 sps:$4 sm:$0xff]  }
 0x270   :  { %1638 = vmatpush2.bf16.msra.mxu0 %v10968_v47  ;;  %v11033_v47 = vld [vmem:[#allocation2 + $0x614] ss:$8 sps:$4 sm:$0xff]  }
 0x271   :  { %1639 = vmatprep.subr.bf16.mxu0 %v10973_v49  ;;  %v11031_v49 = vld [vmem:[#allocation2 + $0x610] ss:$8 sps:$4 sm:$0xff]  }
 0x274   :  { %1640 = vmatpush2.bf16.msra.mxu0 %v10971_v50  ;;  %v11036_v50 = vld [vmem:[#allocation2 + $0x604] ss:$8 sps:$4 sm:$0xff]  }
 0x275   :  { %1641 = vmatprep.subr.bf16.mxu0 %v10976_v51  ;;  %v11034_v51 = vld [vmem:[#allocation2 + $0x600] ss:$8 sps:$4 sm:$0xff]  }
 0x278   :  { %1642 = vmatpush2.bf16.msra.mxu0 %v10974_v52  ;;  %v11039_v52 = vld [vmem:[#allocation2 + $0x6f4] ss:$8 sps:$4 sm:$0xff]  }
 0x279   :  { %1643 = vmatprep.subr.bf16.mxu0 %v10979_v53  ;;  %v11037_v53 = vld [vmem:[#allocation2 + $0x6f0] ss:$8 sps:$4 sm:$0xff]  }
 0x27c   :  { %1644 = vmatpush2.bf16.msra.mxu0 %v10977_v55  ;;  %v11042_v55 = vld [vmem:[#allocation2 + $0x6e4] ss:$8 sps:$4 sm:$0xff]  }
 0x27d   :  { %1645 = vmatprep.subr.bf16.mxu0 %v10982_v56  ;;  %v11072_v56 = vld [vmem:[#allocation4 + $0x150] sm:$0xff]  }
 0x27e   :  { %10581 = vmatpush3.bf16.msra.mxu1 %v11072_v56  ;;  %v11094_v56 = vld [vmem:[#allocation2 + $0x524] ss:$8 sps:$4 sm:$0xff]  }
 0x280   :  { %1646 = vmatpush2.bf16.msra.mxu0 %v10980_v57  ;;  %v11040_v57 = vld [vmem:[#allocation2 + $0x6e0] ss:$8 sps:$4 sm:$0xff]  }
 0x281   :  { %1647 = vmatprep.subr.bf16.mxu0 %v10985_v58  ;;  %v11073_v58 = vld [vmem:[#allocation4 + $0x188] sm:$0xff]  }
 0x282   :  { %10582 = vmatprep.subr.bf16.mxu1 %v11073_v58  ;;  %v11097_v58 = vld [vmem:[#allocation2 + $0x514] ss:$8 sps:$4 sm:$0xff]  }
 0x284   :  { %1648 = vmatpush2.bf16.msra.mxu0 %v10983_v59  ;;  %v11045_v59 = vld [vmem:[#allocation2 + $0x6d4] ss:$8 sps:$4 sm:$0xff]  }
 0x285   :  { %1649 = vmatprep.subr.bf16.mxu0 %v10988_v60  ;;  %v11074_v60 = vld [vmem:[#allocation4 + $0x148] sm:$0xff]  }
 0x286   :  { %10583 = vmatpush3.bf16.msra.mxu1 %v11074_v60  ;;  %v11095_v60 = vld [vmem:[#allocation2 + $0x510] ss:$8 sps:$4 sm:$0xff]  }
 0x288   :  { %1650 = vmatpush2.bf16.msra.mxu0 %v10986_v61  ;;  %v11043_v61 = vld [vmem:[#allocation2 + $0x6d0] ss:$8 sps:$4 sm:$0xff]  }
 0x289   :  { %2179 = vmatprep.subr.bf16.mxu0 %v10991_v62  ;;  %v11075_v62 = vld [vmem:[#allocation4 + $0x180] sm:$0xff]  }
 0x28a   :  { %10584 = vmatprep.subr.bf16.mxu1 %v11075_v62 }
 0x28b   :  { %1652 = vmatmul.mubr.bf16.vlgmr.msra.gmra.mxu0 %v12578_v6 }
 0x28c   :  { %2180 = vmatpush1.bf16.msra.mxu0 %v10989_v63  ;;  %2211 = vmatprep.mubr.bf16.mxu0 %v12499_v0  ;;  %v11048_v63 = vld [vmem:[#allocation2 + $0x6c4] ss:$8 sps:$4 sm:$0xff]  }
 0x28d   :  { %2181 = vmatprep.subr.bf16.mxu0 %v10994_v3  ;;  %v11076_v3 = vld [vmem:[#allocation4 + $0x140] sm:$0xff]  }
 0x28e   :  { %10585 = vmatpush3.bf16.msra.mxu1 %v11076_v3  ;;  %v11098_v3 = vld [vmem:[#allocation2 + $0x500] ss:$8 sps:$4 sm:$0xff]  }
 0x290   :  { %2182 = vmatpush1.bf16.msra.mxu0 %v10992_v5  ;;  %v11046_v5 = vld [vmem:[#allocation2 + $0x6c0] ss:$8 sps:$4 sm:$0xff]  }
 0x291   :  { %2183 = vmatprep.subr.bf16.mxu0 %v10997_v7  ;;  %v11079_v7 = vld [vmem:[#allocation2 + $0x574] ss:$8 sps:$4 sm:$0xff]  }
 0x292   :  { %2058 = vmatprep.subr.bf16.mxu1 %v11079_v7 }
 0x294   :  { %2184 = vmatpush1.bf16.msra.mxu0 %v10995_v8  ;;  %v11051_v8 = vld [vmem:[#allocation2 + $0x6b4] ss:$8 sps:$4 sm:$0xff]  }
 0x295   :  { %2185 = vmatprep.subr.bf16.mxu0 %v11000_v9  ;;  %v11049_v9 = vld [vmem:[#allocation2 + $0x6b0] ss:$8 sps:$4 sm:$0xff]  }
 0x298   :  { %2186 = vmatpush1.bf16.msra.mxu0 %v10998_v13  ;;  %v11055_v13 = vld [vmem:[#allocation2 + $0x690] ss:$8 sps:$4 sm:$0xff]  }
 0x299   :  { %2187 = vmatprep.subr.bf16.mxu0 %v11003_v17  ;;  %v11058_v17 = vld [vmem:[#allocation2 + $0x680] ss:$8 sps:$4 sm:$0xff]  }
 0x29c   :  { %2188 = vmatpush1.bf16.msra.mxu0 %v11001_v19 }
 0x29d   :  { %2189 = vmatprep.subr.bf16.mxu0 %v11006_v21 }
 0x2a0   :  { %2190 = vmatpush1.bf16.msra.mxu0 %v11004_v23 }
 0x2a1   :  { %2191 = vmatprep.subr.bf16.mxu0 %v11009_v25 }
 0x2a4   :  { %2192 = vmatpush1.bf16.msra.mxu0 %v11007_v27 }
 0x2a5   :  { %2193 = vmatprep.subr.bf16.mxu0 %v11012_v29  ;;  %v1663_v29 = vld [vmem:[#allocation6 + $0x2] ss:$8 sm:$0x3] }
 0x2a6   :  { %v1672_v54 = vrot.slane %v1663_v29, %v12556_v2 }
 0x2a8   :  { %2194 = vmatpush1.bf16.msra.mxu0 %v11010_v32  ;;  %v1668_v32 = vrot.slane %v1663_v29, %v12554_v1  ;;  %v11128_v29 = vld [vmem:[#allocation2 + $0x760] ss:$8 sps:$4 sm:$0xff]  }
 0x2a9   :  { %2412 = vmatprep.subr.bf16.mxu0 %v11015_v33 }
 0x2ab   :  { %2212 = vmatmul.mubr.bf16.vlgmr.msra.gmra.mxu0 %v12548_v31 }
 0x2ac   :  { %2413 = vmatpush1.bf16.msra.mxu0 %v11013_v34  ;;  %2444 = vmatprep.mubr.bf16.mxu0 %v12576_v4 }
 0x2ad   :  { %2414 = vmatprep.subr.bf16.mxu0 %v11018_v35 }
 0x2b0   :  { %2415 = vmatpush1.bf16.msra.mxu0 %v11016_v36 }
 0x2b1   :  { %2416 = vmatprep.subr.bf16.mxu0 %v11021_v38 }
 0x2b4   :  { %2417 = vmatpush1.bf16.msra.mxu0 %v11019_v40 }
 0x2b5   :  { %2418 = vmatprep.subr.bf16.mxu0 %v11024_v41 }
 0x2b8   :  { %2419 = vmatpush1.bf16.msra.mxu0 %v11022_v42 }
 0x2b9   :  { %2420 = vmatprep.subr.bf16.mxu0 %v11027_v43 }
 0x2bc   :  { %2421 = vmatpush1.bf16.msra.mxu0 %v11025_v44 }
 0x2bd   :  { %2422 = vmatprep.subr.bf16.mxu0 %v11030_v45 }
 0x2c0   :  { %2423 = vmatpush1.bf16.msra.mxu0 %v11028_v46  ;;  %v11077_v46 = vld [vmem:[#allocation2 + $0x570] ss:$8 sps:$4 sm:$0xff]  }
 0x2c1   :  { %2424 = vmatprep.subr.bf16.mxu0 %v11033_v47  ;;  %v11082_v47 = vld [vmem:[#allocation2 + $0x564] ss:$8 sps:$4 sm:$0xff]  }
 0x2c4   :  { %2425 = vmatpush1.bf16.msra.mxu0 %v11031_v49  ;;  %v11085_v49 = vld [vmem:[#allocation2 + $0x554] ss:$8 sps:$4 sm:$0xff]  }
 0x2c5   :  { %2426 = vmatprep.subr.bf16.mxu0 %v11036_v50  ;;  %v11083_v50 = vld [vmem:[#allocation2 + $0x550] ss:$8 sps:$4 sm:$0xff]  }
 0x2c8   :  { %2427 = vmatpush1.bf16.msra.mxu0 %v11034_v51  ;;  %v11088_v51 = vld [vmem:[#allocation2 + $0x544] ss:$8 sps:$4 sm:$0xff]  }
 0x2c9   :  { %2428 = vmatprep.subr.bf16.mxu0 %v11039_v52  ;;  %v11086_v52 = vld [vmem:[#allocation2 + $0x540] ss:$8 sps:$4 sm:$0xff]  }
 0x2cc   :  { %2429 = vmatpush2.bf16.msra.mxu0 %v11037_v53  ;;  %v11091_v53 = vld [vmem:[#allocation2 + $0x534] ss:$8 sps:$4 sm:$0xff]  }
 0x2cd   :  { %2430 = vmatprep.subr.bf16.mxu0 %v11042_v55  ;;  %v11089_v55 = vld [vmem:[#allocation2 + $0x530] ss:$8 sps:$4 sm:$0xff]  }
 0x2d0   :  { %2431 = vmatpush2.bf16.msra.mxu0 %v11040_v57  ;;  %v11092_v57 = vld [vmem:[#allocation2 + $0x520] ss:$8 sps:$4 sm:$0xff]  }
 0x2d1   :  { %2432 = vmatprep.subr.bf16.mxu0 %v11045_v59 }
 0x2d4   :  { %2433 = vmatpush2.bf16.msra.mxu0 %v11043_v61  ;;  %v11100_v61 = vld [vmem:[#allocation2 + $0x504] ss:$8 sps:$4 sm:$0xff]  }
 0x2d5   :  { %2434 = vmatprep.subr.bf16.mxu0 %v11048_v63 }
 0x2d8   :  { %2435 = vmatpush2.bf16.msra.mxu0 %v11046_v5  ;;  %v11103_v5 = vld [vmem:[#allocation2 + $0x5f4] ss:$8 sps:$4 sm:$0xff]  }
 0x2d9   :  { %2436 = vmatprep.subr.bf16.mxu0 %v11051_v8  ;;  %v11101_v8 = vld [vmem:[#allocation2 + $0x5f0] ss:$8 sps:$4 sm:$0xff]  }
 0x2dc   :  { %2437 = vmatpush2.bf16.msra.mxu0 %v11049_v9  ;;  %v11106_v9 = vld [vmem:[#allocation2 + $0x5e4] ss:$8 sps:$4 sm:$0xff]  }
 0x2dd   :  { %2438 = vmatprep.subr.bf16.mxu0 %v11054_v10  ;;  %v11104_v10 = vld [vmem:[#allocation2 + $0x5e0] ss:$8 sps:$4 sm:$0xff]  }
 0x2e0   :  { %2439 = vmatpush2.bf16.msra.mxu0 %v11052_v11  ;;  %v11109_v11 = vld [vmem:[#allocation2 + $0x5d4] ss:$8 sps:$4 sm:$0xff]  }
 0x2e1   :  { %2440 = vmatprep.subr.bf16.mxu0 %v11057_v12  ;;  %v11107_v12 = vld [vmem:[#allocation2 + $0x5d0] ss:$8 sps:$4 sm:$0xff]  }
 0x2e4   :  { %2441 = vmatpush2.bf16.msra.mxu0 %v11055_v13  ;;  %v11112_v13 = vld [vmem:[#allocation2 + $0x5c4] ss:$8 sps:$4 sm:$0xff]  }
 0x2e5   :  { %2442 = vmatprep.subr.bf16.mxu0 %v11060_v14  ;;  %v11110_v14 = vld [vmem:[#allocation2 + $0x5c0] ss:$8 sps:$4 sm:$0xff]  }
 0x2e8   :  { %2443 = vmatpush2.bf16.msra.mxu0 %v11058_v17  ;;  %v11115_v17 = vld [vmem:[#allocation2 + $0x5b4] ss:$8 sps:$4 sm:$0xff]  }
 0x2eb   :  { %2445 = vmatmul.mubr.bf16.vlgmr.msra.gmra.mxu0 %v12578_v6  ;;  %v10564_v18 = vpop.f32.mrf.mxu0 }
 0x2ed   :  { %v10565_v19 = vpop.f32.mrf.mxu0 }
 0x2ee   :  { %v10566_v21 = vadd.f32 %v10565_v19, %v10564_v18  ;;  %v11113_v18 = vld [vmem:[#allocation2 + $0x5b0] ss:$8 sps:$4 sm:$0xff]   ;;  %v11118_v19 = vld [vmem:[#allocation2 + $0x5a4] ss:$8 sps:$4 sm:$0xff]  }
 0x2ef   :  { %v10567_v22 = vpop.f32.mrf.mxu0 }
 0x2f0   :  { %v12596_v23 = vadd.f32 %v10566_v21, %v494_v20  ;;  %v11116_v20 = vld [vmem:[#allocation2 + $0x5a0] ss:$8 sps:$4 sm:$0xff]   ;;  %v11121_v21 = vld [vmem:[#allocation2 + $0x594] ss:$8 sps:$4 sm:$0xff]   ;;  %v11119_v22 = vld [vmem:[#allocation2 + $0x590] ss:$8 sps:$4 sm:$0xff]  }
 0x2f1   :  { %v10568_v24 = vpop.f32.mrf.mxu0 }
 0x2f2   :  { %v11124_v24 = vld [vmem:[#allocation2 + $0x584] ss:$8 sps:$4 sm:$0xff]  }
 0x30b   :  { %v1420_v25 = vpop.f32.mrf.mxu0 }
 0x30c   :  { %v1421_v30 = vadd.f32 %v1420_v25, %v12585_v37  ;;  %v11122_v25 = vld [vmem:[#allocation2 + $0x580] ss:$8 sps:$4 sm:$0xff]  }
 0x30d   :  { %v1422_v26 = vpop.f32.mrf.mxu0 }
 0x30e   :  { %v1423_v34 = vadd.f32 %v1422_v26, %v12587_v39  ;;  %v11080_v39 = vld [vmem:[#allocation2 + $0x560] ss:$8 sps:$4 sm:$0xff]   ;;  %v11127_v26 = vld [vmem:[#allocation2 + $0x774] ss:$8 sps:$4 sm:$0xff]  }
 0x30f   :  { %v1424_v27 = vpop.f32.mrf.mxu0 }
 0x310   :  { %v11125_v27 = vld [vmem:[#allocation2 + $0x770] ss:$8 sps:$4 sm:$0xff]  }
 0x311   :  { %v1425_v28 = vpop.f32.mrf.mxu0 }
 0x312   :  { %v11130_v28 = vld [vmem:[#allocation2 + $0x764] ss:$8 sps:$4 sm:$0xff]  }
 0x34b   :  { %v1653_v33 = vpop.f32.mrf.mxu0 }
 0x34c   :  { %v1660_v35 = vadd.f32 %v1653_v33, %v1421_v30  ;;  %v11133_v30 = vld [vmem:[#allocation2 + $0x754] ss:$8 sps:$4 sm:$0xff]   ;;  %v11136_v33 = vld [vmem:[#allocation2 + $0x744] ss:$8 sps:$4 sm:$0xff]  }
 0x34d   :  { %v1655_v48 = vpop.f32.mrf.mxu0 }
 0x34e   :  { %v1675_v36 = vadd.f32 %v1668_v32, %v1660_v35  ;;  %v1661_v38 = vadd.f32 %v1655_v48, %v1423_v34  ;;  %v11131_v32 = vld [vmem:[#allocation2 + $0x750] ss:$8 sps:$4 sm:$0xff]   ;;  %v11134_v34 = vld [vmem:[#allocation2 + $0x740] ss:$8 sps:$4 sm:$0xff]   ;;  %v11139_v35 = vld [vmem:[#allocation2 + $0x734] ss:$8 sps:$4 sm:$0xff]  }
 0x34f   :  { %v1657_v40 = vpop.f32.mrf.mxu0  ;;  %v11142_v48 = vld [vmem:[#allocation2 + $0x724] ss:$8 sps:$4 sm:$0xff]  }
 0x350   :  { %v1676_v41 = vadd.f32 %v1672_v54, %v1661_v38  ;;  %v1677_v42 = vmax.f32 %v1675_v36, 0.0  ;;  %v11137_v54 = vld [vmem:[#allocation2 + $0x730] ss:$8 sps:$4 sm:$0xff]   ;;  %v11140_v36 = vld [vmem:[#allocation2 + $0x720] ss:$8 sps:$4 sm:$0xff]  }
 0x351   :  { %v1658_v43 = vpop.f32.mrf.mxu0  ;;  %v11145_v38 = vld [vmem:[#allocation2 + $0x714] ss:$8 sps:$4 sm:$0xff]  }
 0x352   :  { %v1678_v44 = vmax.f32 %v1676_v41, 0.0  ;;  %v12604_v37 = vpack.c.bf16 %v1677_v42, %v1677_v42  ;;  %v11143_v41 = vld [vmem:[#allocation2 + $0x710] ss:$8 sps:$4 sm:$0xff]   ;;  %v11148_v43 = vld [vmem:[#allocation2 + $0x704] ss:$8 sps:$4 sm:$0xff]  }
 0x354   :  { %v12602_v45 = vpack.c.bf16 %v1678_v44, %v1678_v44 }
 0x356   :  { %1841 = vmatprep.mubr.bf16.mxu1 %v12602_v45 }
 0x357   :  { %1842 = vmatmul.mubr.bf16.vlgmr.msra.gmra.mxu1 %v12604_v37 }
 0x358   :  { %2059 = vmatpush1.bf16.msra.mxu1 %v11077_v46  ;;  %2090 = vmatprep.mubr.bf16.mxu1 %v12560_v15  ;;  %v11146_v46 = vld [vmem:[#allocation2 + $0x700] ss:$8 sps:$4 sm:$0xff]  }
 0x359   :  { %2060 = vmatprep.subr.bf16.mxu1 %v11082_v47 }
 0x35c   :  { %2061 = vmatpush1.bf16.msra.mxu1 %v11080_v39  ;;  %v11151_v39 = vld [vmem:[#allocation2 + $0x7f4] ss:$8 sps:$4 sm:$0xff]  }
 0x35d   :  { %2062 = vmatprep.subr.bf16.mxu1 %v11085_v49  ;;  %v11149_v49 = vld [vmem:[#allocation2 + $0x7f0] ss:$8 sps:$4 sm:$0xff]  }
 0x360   :  { %2063 = vmatpush1.bf16.msra.mxu1 %v11083_v50  ;;  %v11154_v50 = vld [vmem:[#allocation2 + $0x7e4] ss:$8 sps:$4 sm:$0xff]  }
 0x361   :  { %2064 = vmatprep.subr.bf16.mxu1 %v11088_v51  ;;  %v11152_v51 = vld [vmem:[#allocation2 + $0x7e0] ss:$8 sps:$4 sm:$0xff]  }
 0x364   :  { %2065 = vmatpush1.bf16.msra.mxu1 %v11086_v52  ;;  %v11157_v52 = vld [vmem:[#allocation2 + $0x7d4] ss:$8 sps:$4 sm:$0xff]  }
 0x365   :  { %2066 = vmatprep.subr.bf16.mxu1 %v11091_v53  ;;  %v11155_v53 = vld [vmem:[#allocation2 + $0x7d0] ss:$8 sps:$4 sm:$0xff]  }
 0x368   :  { %2067 = vmatpush1.bf16.msra.mxu1 %v11089_v55  ;;  %v11160_v55 = vld [vmem:[#allocation2 + $0x7c4] ss:$8 sps:$4 sm:$0xff]  }
 0x369   :  { %2068 = vmatprep.subr.bf16.mxu1 %v11094_v56  ;;  %v11158_v56 = vld [vmem:[#allocation2 + $0x7c0] ss:$8 sps:$4 sm:$0xff]  }
 0x36b   :  { %v12609_v59 = vpop.f32.mrf.mxu0 }
 0x36c   :  { %2069 = vmatpush1.bf16.msra.mxu1 %v11092_v57  ;;  %v11163_v57 = vld [vmem:[#allocation2 + $0x7b4] ss:$8 sps:$4 sm:$0xff]  }
 0x36d   :  { %2070 = vmatprep.subr.bf16.mxu1 %v11097_v58  ;;  %v12611_v62 = vpop.f32.mrf.mxu0  ;;  %v11161_v58 = vld [vmem:[#allocation2 + $0x7b0] ss:$8 sps:$4 sm:$0xff]  }
 0x36f   :  { %v2217_v63 = vpop.f32.mrf.mxu0 }
 0x370   :  { %2071 = vmatpush1.bf16.msra.mxu1 %v11095_v60  ;;  %v11166_v60 = vld [vmem:[#allocation2 + $0x7a4] ss:$8 sps:$4 sm:$0xff]   ;;  %v11169_v63 = vld [vmem:[#allocation2 + $0x794] ss:$8 sps:$4 sm:$0xff]  }
 0x371   :  { %2072 = vmatprep.subr.bf16.mxu1 %v11100_v61  ;;  %v2218_v7 = vpop.f32.mrf.mxu0  ;;  %v11164_v61 = vld [vmem:[#allocation2 + $0x7a0] ss:$8 sps:$4 sm:$0xff]  }
 0x372   :  { %v11170_v7 = vld [vmem:[#allocation2 + $0x780] ss:$8 sps:$4 sm:$0xff]  }
 0x374   :  { %2073 = vmatpush1.bf16.msra.mxu1 %v11098_v3  ;;  %v11167_v3 = vld [vmem:[#allocation2 + $0x790] ss:$8 sps:$4 sm:$0xff]  }
 0x375   :  { %2074 = vmatprep.subr.bf16.mxu1 %v11103_v5  ;;  %v11172_v5 = vld [vmem:[#allocation2 + $0x784] ss:$8 sps:$4 sm:$0xff]  }
 0x378   :  { %2075 = vmatpush2.bf16.msra.mxu1 %v11101_v8  ;;  %v11175_v8 = vld [vmem:[#allocation2 + $0x8f4] ss:$8 sps:$4 sm:$0xff]  }
 0x379   :  { %2076 = vmatprep.subr.bf16.mxu1 %v11106_v9  ;;  %v11173_v9 = vld [vmem:[#allocation2 + $0x8f0] ss:$8 sps:$4 sm:$0xff]  }
 0x37c   :  { %2077 = vmatpush2.bf16.msra.mxu1 %v11104_v10  ;;  %v11178_v10 = vld [vmem:[#allocation2 + $0x8e4] ss:$8 sps:$4 sm:$0xff]  }
 0x37d   :  { %2078 = vmatprep.subr.bf16.mxu1 %v11109_v11  ;;  %v11176_v11 = vld [vmem:[#allocation2 + $0x8e0] ss:$8 sps:$4 sm:$0xff]  }
 0x380   :  { %2079 = vmatpush2.bf16.msra.mxu1 %v11107_v12  ;;  %v11181_v12 = vld [vmem:[#allocation2 + $0x8d4] ss:$8 sps:$4 sm:$0xff]  }
 0x381   :  { %2080 = vmatprep.subr.bf16.mxu1 %v11112_v13  ;;  %v11179_v13 = vld [vmem:[#allocation2 + $0x8d0] ss:$8 sps:$4 sm:$0xff]  }
 0x384   :  { %2081 = vmatpush2.bf16.msra.mxu1 %v11110_v14  ;;  %v11184_v14 = vld [vmem:[#allocation2 + $0x8c4] ss:$8 sps:$4 sm:$0xff]  }
 0x385   :  { %2082 = vmatprep.subr.bf16.mxu1 %v11115_v17  ;;  %v11269_v17 = vld [vmem:[#allocation4 + $0x238] sm:$0xff]  }
 0x386   :  { %10592 = vmatprep.subr.bf16.mxu0 %v11269_v17  ;;  %v11227_v17 = vld [vmem:[#allocation2 + $0xad0] ss:$8 sps:$4 sm:$0xff]  }
 0x388   :  { %2083 = vmatpush2.bf16.msra.mxu1 %v11113_v18  ;;  %v11270_v18 = vld [vmem:[#allocation4 + $0x1f8] sm:$0xff]  }
 0x389   :  { %2084 = vmatprep.subr.bf16.mxu1 %v11118_v19  ;;  %v11271_v19 = vld [vmem:[#allocation4 + $0x230] sm:$0xff]   ;;  %10593 = vmatpush3.bf16.msra.mxu0 %v11270_v18  ;;  %v11283_v18 = vld [vmem:[#allocation4 + $0x200] sm:$0xff]  }
 0x38a   :  { %10594 = vmatprep.subr.bf16.mxu0 %v11271_v19 }
 0x38c   :  { %2085 = vmatpush2.bf16.msra.mxu1 %v11116_v20  ;;  %v11182_v20 = vld [vmem:[#allocation2 + $0x8c0] ss:$8 sps:$4 sm:$0xff]  }
 0x38d   :  { %2086 = vmatprep.subr.bf16.mxu1 %v11121_v21  ;;  %v11272_v21 = vld [vmem:[#allocation4 + $0x1f0] sm:$0xff]  }
 0x38e   :  { %10595 = vmatpush3.bf16.msra.mxu0 %v11272_v21  ;;  %v11284_v21 = vld [vmem:[#allocation4 + $0x1c0] sm:$0xff]  }
 0x390   :  { %2087 = vmatpush2.bf16.msra.mxu1 %v11119_v22  ;;  %v11187_v22 = vld [vmem:[#allocation2 + $0x8b4] ss:$8 sps:$4 sm:$0xff]  }
 0x391   :  { %2088 = vmatprep.subr.bf16.mxu1 %v11124_v24  ;;  %v11273_v24 = vld [vmem:[#allocation4 + $0x228] sm:$0xff]  }
 0x392   :  { %10596 = vmatprep.subr.bf16.mxu0 %v11273_v24  ;;  %v11287_v24 = vld [vmem:[#allocation2 + $0x874] ss:$8 sps:$4 sm:$0xff]  }
 0x394   :  { %2089 = vmatpush2.bf16.msra.mxu1 %v11122_v25  ;;  %v11185_v25 = vld [vmem:[#allocation2 + $0x8b0] ss:$8 sps:$4 sm:$0xff]  }
 0x395   :  { %2647 = vmatprep.subr.bf16.mxu1 %v11127_v26  ;;  %v11274_v26 = vld [vmem:[#allocation4 + $0x1e8] sm:$0xff]  }
 0x396   :  { %10597 = vmatpush3.bf16.msra.mxu0 %v11274_v26  ;;  %v11233_v26 = vld [vmem:[#allocation2 + $0xab0] ss:$8 sps:$4 sm:$0xff]  }
 0x397   :  { %2091 = vmatmul.mubr.bf16.vlgmr.msra.gmra.mxu1 %v12562_v16 }
 0x398   :  { %2648 = vmatpush1.bf16.msra.mxu1 %v11125_v27  ;;  %2679 = vmatprep.mubr.bf16.mxu1 %v12602_v45  ;;  %v11190_v27 = vld [vmem:[#allocation2 + $0x8a4] ss:$8 sps:$4 sm:$0xff]  }
 0x399   :  { %2649 = vmatprep.subr.bf16.mxu1 %v11130_v28  ;;  %v11275_v28 = vld [vmem:[#allocation4 + $0x220] sm:$0xff]  }
 0x39a   :  { %10598 = vmatprep.subr.bf16.mxu0 %v11275_v28  ;;  %v11241_v28 = vld [vmem:[#allocation2 + $0xa94] ss:$8 sps:$4 sm:$0xff]  }
 0x39c   :  { %2650 = vmatpush1.bf16.msra.mxu1 %v11128_v29  ;;  %v11188_v29 = vld [vmem:[#allocation2 + $0x8a0] ss:$8 sps:$4 sm:$0xff]  }
 0x39d   :  { %2651 = vmatprep.subr.bf16.mxu1 %v11133_v30  ;;  %v11276_v30 = vld [vmem:[#allocation4 + $0x1e0] sm:$0xff]  }
 0x39e   :  { %10599 = vmatpush3.bf16.msra.mxu0 %v11276_v30  ;;  %v11244_v30 = vld [vmem:[#allocation2 + $0xa84] ss:$8 sps:$4 sm:$0xff]  }
 0x3a0   :  { %2652 = vmatpush1.bf16.msra.mxu1 %v11131_v32  ;;  %v11193_v32 = vld [vmem:[#allocation2 + $0x894] ss:$8 sps:$4 sm:$0xff]  }
 0x3a1   :  { %2653 = vmatprep.subr.bf16.mxu1 %v11136_v33  ;;  %v11277_v33 = vld [vmem:[#allocation4 + $0x218] sm:$0xff]  }
 0x3a2   :  { %10600 = vmatprep.subr.bf16.mxu0 %v11277_v33  ;;  %v11247_v33 = vld [vmem:[#allocation2 + $0xb74] ss:$8 sps:$4 sm:$0xff]  }
 0x3a4   :  { %2654 = vmatpush1.bf16.msra.mxu1 %v11134_v34  ;;  %v11191_v34 = vld [vmem:[#allocation2 + $0x890] ss:$8 sps:$4 sm:$0xff]  }
 0x3a5   :  { %2655 = vmatprep.subr.bf16.mxu1 %v11139_v35  ;;  %v11278_v35 = vld [vmem:[#allocation4 + $0x1d8] sm:$0xff]  }
 0x3a6   :  { %10601 = vmatpush3.bf16.msra.mxu0 %v11278_v35  ;;  %v11250_v35 = vld [vmem:[#allocation2 + $0xb64] ss:$8 sps:$4 sm:$0xff]  }
 0x3a8   :  { %2656 = vmatpush1.bf16.msra.mxu1 %v11137_v54  ;;  %v11196_v54 = vld [vmem:[#allocation2 + $0x884] ss:$8 sps:$4 sm:$0xff]  }
 0x3a9   :  { %2657 = vmatprep.subr.bf16.mxu1 %v11142_v48  ;;  %v11279_v48 = vld [vmem:[#allocation4 + $0x210] sm:$0xff]  }
 0x3aa   :  { %10602 = vmatprep.subr.bf16.mxu0 %v11279_v48  ;;  %v11253_v48 = vld [vmem:[#allocation2 + $0xb54] ss:$8 sps:$4 sm:$0xff]  }
 0x3ab   :  { %v12615_v40 = vpop.f32.mrf.mxu0 }
 0x3ac   :  { %2658 = vmatpush1.bf16.msra.mxu1 %v11140_v36  ;;  %v11194_v36 = vld [vmem:[#allocation2 + $0x880] ss:$8 sps:$4 sm:$0xff]  }
 0x3ad   :  { %v12617_v42 = vpop.f32.mrf.mxu0  ;;  %2659 = vmatprep.subr.bf16.mxu1 %v11145_v38  ;;  %v11199_v38 = vld [vmem:[#allocation2 + $0x974] ss:$8 sps:$4 sm:$0xff]  }
 0x3af   :  { %v2450_v44 = vpop.f32.mrf.mxu0 }
 0x3b0   :  { %2660 = vmatpush1.bf16.msra.mxu1 %v11143_v41  ;;  %v11197_v41 = vld [vmem:[#allocation2 + $0x970] ss:$8 sps:$4 sm:$0xff]   ;;  %v11200_v44 = vld [vmem:[#allocation2 + $0x960] ss:$8 sps:$4 sm:$0xff]  }
 0x3b1   :  { %v2451_v47 = vpop.f32.mrf.mxu0  ;;  %2661 = vmatprep.subr.bf16.mxu1 %v11148_v43  ;;  %v11202_v43 = vld [vmem:[#allocation2 + $0x964] ss:$8 sps:$4 sm:$0xff]  }
 0x3b2   :  { %v11203_v47 = vld [vmem:[#allocation2 + $0x950] ss:$8 sps:$4 sm:$0xff]  }
 0x3b4   :  { %2662 = vmatpush1.bf16.msra.mxu1 %v11146_v46  ;;  %v11205_v46 = vld [vmem:[#allocation2 + $0x954] ss:$8 sps:$4 sm:$0xff]  }
 0x3b5   :  { %2663 = vmatprep.subr.bf16.mxu1 %v11151_v39  ;;  %v11208_v39 = vld [vmem:[#allocation2 + $0x944] ss:$8 sps:$4 sm:$0xff]  }
 0x3b8   :  { %2664 = vmatpush2.bf16.msra.mxu1 %v11149_v49  ;;  %v11206_v49 = vld [vmem:[#allocation2 + $0x940] ss:$8 sps:$4 sm:$0xff]  }
 0x3b9   :  { %2665 = vmatprep.subr.bf16.mxu1 %v11154_v50  ;;  %v11211_v50 = vld [vmem:[#allocation2 + $0x934] ss:$8 sps:$4 sm:$0xff]  }
 0x3bc   :  { %2666 = vmatpush2.bf16.msra.mxu1 %v11152_v51  ;;  %v11209_v51 = vld [vmem:[#allocation2 + $0x930] ss:$8 sps:$4 sm:$0xff]  }
 0x3bd   :  { %2667 = vmatprep.subr.bf16.mxu1 %v11157_v52  ;;  %v11214_v52 = vld [vmem:[#allocation2 + $0x924] ss:$8 sps:$4 sm:$0xff]  }
 0x3c0   :  { %2668 = vmatpush2.bf16.msra.mxu1 %v11155_v53  ;;  %v11212_v53 = vld [vmem:[#allocation2 + $0x920] ss:$8 sps:$4 sm:$0xff]  }
 0x3c1   :  { %2669 = vmatprep.subr.bf16.mxu1 %v11160_v55  ;;  %v11217_v55 = vld [vmem:[#allocation2 + $0x914] ss:$8 sps:$4 sm:$0xff]  }
 0x3c4   :  { %2670 = vmatpush2.bf16.msra.mxu1 %v11158_v56  ;;  %v11215_v56 = vld [vmem:[#allocation2 + $0x910] ss:$8 sps:$4 sm:$0xff]  }
 0x3c5   :  { %2671 = vmatprep.subr.bf16.mxu1 %v11163_v57  ;;  %v11220_v57 = vld [vmem:[#allocation2 + $0x904] ss:$8 sps:$4 sm:$0xff]  }
 0x3c8   :  { %2672 = vmatpush2.bf16.msra.mxu1 %v11161_v58  ;;  %v11218_v58 = vld [vmem:[#allocation2 + $0x900] ss:$8 sps:$4 sm:$0xff]  }
 0x3c9   :  { %2673 = vmatprep.subr.bf16.mxu1 %v11166_v60  ;;  %v11223_v60 = vld [vmem:[#allocation2 + $0xaf4] ss:$8 sps:$4 sm:$0xff]  }
 0x3cc   :  { %2674 = vmatpush2.bf16.msra.mxu1 %v11164_v61  ;;  %v11221_v61 = vld [vmem:[#allocation2 + $0xaf0] ss:$8 sps:$4 sm:$0xff]  }
 0x3cd   :  { %2675 = vmatprep.subr.bf16.mxu1 %v11169_v63  ;;  %v11226_v63 = vld [vmem:[#allocation2 + $0xae4] ss:$8 sps:$4 sm:$0xff]  }
 0x3d0   :  { %2676 = vmatpush2.bf16.msra.mxu1 %v11167_v3  ;;  %v11280_v3 = vld [vmem:[#allocation4 + $0x1d0] sm:$0xff]  }
 0x3d1   :  { %2677 = vmatprep.subr.bf16.mxu1 %v11172_v5  ;;  %10603 = vmatpush3.bf16.msra.mxu0 %v11280_v3 }
 0x3d4   :  { %2678 = vmatpush2.bf16.msra.mxu1 %v11170_v7  ;;  %v11224_v7 = vld [vmem:[#allocation2 + $0xae0] ss:$8 sps:$4 sm:$0xff]  }
 0x3d5   :  { %3086 = vmatprep.subr.bf16.mxu1 %v11175_v8  ;;  %v11281_v8 = vld [vmem:[#allocation4 + $0x208] sm:$0xff]  }
 0x3d6   :  { %10604 = vmatprep.subr.bf16.mxu0 %v11281_v8 }
 0x3d7   :  { %2680 = vmatmul.mubr.bf16.vlgmr.msra.gmra.mxu1 %v12604_v37 }
 0x3d8   :  { %3087 = vmatpush1.bf16.msra.mxu1 %v11173_v9  ;;  %3118 = vmatprep.mubr.bf16.mxu1 %v12560_v15 }
 0x3d9   :  { %3088 = vmatprep.subr.bf16.mxu1 %v11178_v10  ;;  %v11229_v10 = vld [vmem:[#allocation2 + $0xad4] ss:$8 sps:$4 sm:$0xff]  }
 0x3dc   :  { %3089 = vmatpush1.bf16.msra.mxu1 %v11176_v11  ;;  %v11282_v11 = vld [vmem:[#allocation4 + $0x1c8] sm:$0xff]  }
 0x3dd   :  { %3090 = vmatprep.subr.bf16.mxu1 %v11181_v12  ;;  %10605 = vmatpush3.bf16.msra.mxu0 %v11282_v11 }
 0x3de   :  { %10606 = vmatprep.subr.bf16.mxu0 %v11283_v18 }
 0x3e0   :  { %3091 = vmatpush1.bf16.msra.mxu1 %v11179_v13 }
 0x3e1   :  { %3092 = vmatprep.subr.bf16.mxu1 %v11184_v14  ;;  %10607 = vmatpush3.bf16.msra.mxu0 %v11284_v21  ;;  %v11293_v21 = vld [vmem:[#allocation2 + $0x854] ss:$8 sps:$4 sm:$0xff]  }
 0x3e2   :  { %3207 = vmatprep.subr.bf16.mxu0 %v11287_v24  ;;  %v11296_v24 = vld [vmem:[#allocation2 + $0x844] ss:$8 sps:$4 sm:$0xff]  }
 0x3e4   :  { %3093 = vmatpush1.bf16.msra.mxu1 %v11182_v20  ;;  %v11232_v20 = vld [vmem:[#allocation2 + $0xac4] ss:$8 sps:$4 sm:$0xff]  }
 0x3e5   :  { %3094 = vmatprep.subr.bf16.mxu1 %v11187_v22  ;;  %v11230_v22 = vld [vmem:[#allocation2 + $0xac0] ss:$8 sps:$4 sm:$0xff]  }
 0x3e8   :  { %3095 = vmatpush1.bf16.msra.mxu1 %v11185_v25  ;;  %v11235_v25 = vld [vmem:[#allocation2 + $0xab4] ss:$8 sps:$4 sm:$0xff]  }
 0x3e9   :  { %3096 = vmatprep.subr.bf16.mxu1 %v11190_v27  ;;  %v11236_v27 = vld [vmem:[#allocation2 + $0xaa0] ss:$8 sps:$4 sm:$0xff]  }
 0x3ec   :  { %3097 = vmatpush1.bf16.msra.mxu1 %v11188_v29  ;;  %v11239_v29 = vld [vmem:[#allocation2 + $0xa90] ss:$8 sps:$4 sm:$0xff]  }
 0x3ed   :  { %3098 = vmatprep.subr.bf16.mxu1 %v11193_v32  ;;  %v11242_v32 = vld [vmem:[#allocation2 + $0xa80] ss:$8 sps:$4 sm:$0xff]  }
 0x3f0   :  { %3099 = vmatpush1.bf16.msra.mxu1 %v11191_v34  ;;  %v11245_v34 = vld [vmem:[#allocation2 + $0xb70] ss:$8 sps:$4 sm:$0xff]  }
 0x3f1   :  { %3100 = vmatprep.subr.bf16.mxu1 %v11196_v54  ;;  %v11248_v54 = vld [vmem:[#allocation2 + $0xb60] ss:$8 sps:$4 sm:$0xff]  }
 0x3f4   :  { %3101 = vmatpush1.bf16.msra.mxu1 %v11194_v36  ;;  %v11251_v36 = vld [vmem:[#allocation2 + $0xb50] ss:$8 sps:$4 sm:$0xff]  }
 0x3f5   :  { %3102 = vmatprep.subr.bf16.mxu1 %v11199_v38  ;;  %v11256_v38 = vld [vmem:[#allocation2 + $0xb44] ss:$8 sps:$4 sm:$0xff]  }
 0x3f8   :  { %3103 = vmatpush2.bf16.msra.mxu1 %v11197_v41  ;;  %v11254_v41 = vld [vmem:[#allocation2 + $0xb40] ss:$8 sps:$4 sm:$0xff]  }
 0x3f9   :  { %3104 = vmatprep.subr.bf16.mxu1 %v11202_v43  ;;  %v11259_v43 = vld [vmem:[#allocation2 + $0xb34] ss:$8 sps:$4 sm:$0xff]  }
 0x3fc   :  { %3105 = vmatpush2.bf16.msra.mxu1 %v11200_v44  ;;  %v11257_v44 = vld [vmem:[#allocation2 + $0xb30] ss:$8 sps:$4 sm:$0xff]  }
 0x3fd   :  { %3106 = vmatprep.subr.bf16.mxu1 %v11205_v46  ;;  %v11262_v46 = vld [vmem:[#allocation2 + $0xb24] ss:$8 sps:$4 sm:$0xff]  }
 0x400   :  { %3107 = vmatpush2.bf16.msra.mxu1 %v11203_v47  ;;  %v11260_v47 = vld [vmem:[#allocation2 + $0xb20] ss:$8 sps:$4 sm:$0xff]  }
 0x401   :  { %3108 = vmatprep.subr.bf16.mxu1 %v11208_v39  ;;  %v11265_v39 = vld [vmem:[#allocation2 + $0xb14] ss:$8 sps:$4 sm:$0xff]  }
 0x404   :  { %3109 = vmatpush2.bf16.msra.mxu1 %v11206_v49  ;;  %v11263_v49 = vld [vmem:[#allocation2 + $0xb10] ss:$8 sps:$4 sm:$0xff]  }
 0x405   :  { %3110 = vmatprep.subr.bf16.mxu1 %v11211_v50  ;;  %v11268_v50 = vld [vmem:[#allocation2 + $0xb04] ss:$8 sps:$4 sm:$0xff]  }
 0x408   :  { %3111 = vmatpush2.bf16.msra.mxu1 %v11209_v51  ;;  %v11266_v51 = vld [vmem:[#allocation2 + $0xb00] ss:$8 sps:$4 sm:$0xff]  }
 0x409   :  { %3112 = vmatprep.subr.bf16.mxu1 %v11214_v52 }
 0x40c   :  { %3113 = vmatpush2.bf16.msra.mxu1 %v11212_v53 }
 0x40d   :  { %3114 = vmatprep.subr.bf16.mxu1 %v11217_v55 }
 0x410   :  { %3115 = vmatpush2.bf16.msra.mxu1 %v11215_v56 }
 0x411   :  { %3116 = vmatprep.subr.bf16.mxu1 %v11220_v57 }
 0x414   :  { %3117 = vmatpush2.bf16.msra.mxu1 %v11218_v58  ;;  %v2691_v58 = vld [vmem:[#allocation6 + $0x3] ss:$8 sm:$0x3] }
 0x415   :  { %3675 = vmatprep.subr.bf16.mxu1 %v11223_v60  ;;  %v2700_v8 = vrot.slane %v2691_v58, %v12556_v2 }
 0x417   :  { %3119 = vmatmul.mubr.bf16.vlgmr.msra.gmra.mxu1 %v12562_v16  ;;  %v10586_v5 = vpop.f32.mrf.mxu1 }
 0x418   :  { %3676 = vmatpush1.bf16.msra.mxu1 %v11221_v61  ;;  %3707 = vmatprep.mubr.bf16.mxu1 %v12602_v45 }
 0x419   :  { %v10587_v9 = vpop.f32.mrf.mxu1  ;;  %3677 = vmatprep.subr.bf16.mxu1 %v11226_v63  ;;  %v2696_v63 = vrot.slane %v2691_v58, %v12554_v1  ;;  %v11335_v58 = vld [vmem:[#allocation2 + $0xa74] ss:$8 sps:$4 sm:$0xff]  }
 0x41a   :  { %v10588_v12 = vadd.f32 %v10587_v9, %v10586_v5 }
 0x41b   :  { %v10589_v13 = vpop.f32.mrf.mxu1 }
 0x41c   :  { %v12624_v14 = vadd.f32 %v10588_v12, %v12596_v23  ;;  %3678 = vmatpush1.bf16.msra.mxu1 %v11224_v7  ;;  %v11238_v23 = vld [vmem:[#allocation2 + $0xaa4] ss:$8 sps:$4 sm:$0xff]  }
 0x41d   :  { %v10590_v19 = vpop.f32.mrf.mxu1  ;;  %3679 = vmatprep.subr.bf16.mxu1 %v11229_v10 }
 0x420   :  { %3680 = vmatpush1.bf16.msra.mxu1 %v11227_v17 }
 0x421   :  { %3681 = vmatprep.subr.bf16.mxu1 %v11232_v20  ;;  %v11290_v20 = vld [vmem:[#allocation2 + $0x864] ss:$8 sps:$4 sm:$0xff]  }
 0x424   :  { %3682 = vmatpush1.bf16.msra.mxu1 %v11230_v22  ;;  %v11291_v22 = vld [vmem:[#allocation2 + $0x850] ss:$8 sps:$4 sm:$0xff]  }
 0x425   :  { %3683 = vmatprep.subr.bf16.mxu1 %v11235_v25  ;;  %v11294_v25 = vld [vmem:[#allocation2 + $0x840] ss:$8 sps:$4 sm:$0xff]  }
 0x428   :  { %3684 = vmatpush1.bf16.msra.mxu1 %v11233_v26  ;;  %v11299_v26 = vld [vmem:[#allocation2 + $0x834] ss:$8 sps:$4 sm:$0xff]  }
 0x429   :  { %3685 = vmatprep.subr.bf16.mxu1 %v11238_v23  ;;  %v11297_v23 = vld [vmem:[#allocation2 + $0x830] ss:$8 sps:$4 sm:$0xff]  }
 0x42c   :  { %3686 = vmatpush1.bf16.msra.mxu1 %v11236_v27  ;;  %v11302_v27 = vld [vmem:[#allocation2 + $0x824] ss:$8 sps:$4 sm:$0xff]  }
 0x42d   :  { %3687 = vmatprep.subr.bf16.mxu1 %v11241_v28  ;;  %v11300_v28 = vld [vmem:[#allocation2 + $0x820] ss:$8 sps:$4 sm:$0xff]  }
 0x430   :  { %3688 = vmatpush1.bf16.msra.mxu1 %v11239_v29  ;;  %v11305_v29 = vld [vmem:[#allocation2 + $0x814] ss:$8 sps:$4 sm:$0xff]  }
 0x431   :  { %3689 = vmatprep.subr.bf16.mxu1 %v11244_v30  ;;  %v11303_v30 = vld [vmem:[#allocation2 + $0x810] ss:$8 sps:$4 sm:$0xff]  }
 0x434   :  { %3690 = vmatpush1.bf16.msra.mxu1 %v11242_v32  ;;  %v11308_v32 = vld [vmem:[#allocation2 + $0x804] ss:$8 sps:$4 sm:$0xff]  }
 0x435   :  { %3691 = vmatprep.subr.bf16.mxu1 %v11247_v33  ;;  %v11306_v33 = vld [vmem:[#allocation2 + $0x800] ss:$8 sps:$4 sm:$0xff]  }
 0x438   :  { %3692 = vmatpush2.bf16.msra.mxu1 %v11245_v34  ;;  %v11311_v34 = vld [vmem:[#allocation2 + $0x9f4] ss:$8 sps:$4 sm:$0xff]  }
 0x439   :  { %3693 = vmatprep.subr.bf16.mxu1 %v11250_v35  ;;  %v11309_v35 = vld [vmem:[#allocation2 + $0x9f0] ss:$8 sps:$4 sm:$0xff]  }
 0x43c   :  { %3694 = vmatpush2.bf16.msra.mxu1 %v11248_v54  ;;  %v11314_v54 = vld [vmem:[#allocation2 + $0x9e4] ss:$8 sps:$4 sm:$0xff]  }
 0x43d   :  { %3695 = vmatprep.subr.bf16.mxu1 %v11253_v48  ;;  %v11312_v48 = vld [vmem:[#allocation2 + $0x9e0] ss:$8 sps:$4 sm:$0xff]  }
 0x440   :  { %3696 = vmatpush2.bf16.msra.mxu1 %v11251_v36  ;;  %v11317_v36 = vld [vmem:[#allocation2 + $0x9d4] ss:$8 sps:$4 sm:$0xff]  }
 0x441   :  { %3697 = vmatprep.subr.bf16.mxu1 %v11256_v38  ;;  %v11315_v38 = vld [vmem:[#allocation2 + $0x9d0] ss:$8 sps:$4 sm:$0xff]  }
 0x444   :  { %3698 = vmatpush2.bf16.msra.mxu1 %v11254_v41  ;;  %v11320_v41 = vld [vmem:[#allocation2 + $0x9c4] ss:$8 sps:$4 sm:$0xff]  }
 0x445   :  { %3699 = vmatprep.subr.bf16.mxu1 %v11259_v43  ;;  %v11318_v43 = vld [vmem:[#allocation2 + $0x9c0] ss:$8 sps:$4 sm:$0xff]  }
 0x448   :  { %3700 = vmatpush2.bf16.msra.mxu1 %v11257_v44  ;;  %v11323_v44 = vld [vmem:[#allocation2 + $0x9b4] ss:$8 sps:$4 sm:$0xff]  }
 0x449   :  { %3701 = vmatprep.subr.bf16.mxu1 %v11262_v46  ;;  %v11321_v46 = vld [vmem:[#allocation2 + $0x9b0] ss:$8 sps:$4 sm:$0xff]  }
 0x44c   :  { %3702 = vmatpush2.bf16.msra.mxu1 %v11260_v47  ;;  %v11326_v47 = vld [vmem:[#allocation2 + $0x9a4] ss:$8 sps:$4 sm:$0xff]  }
 0x44d   :  { %3703 = vmatprep.subr.bf16.mxu1 %v11265_v39  ;;  %v11324_v39 = vld [vmem:[#allocation2 + $0x9a0] ss:$8 sps:$4 sm:$0xff]  }
 0x450   :  { %3704 = vmatpush2.bf16.msra.mxu1 %v11263_v49  ;;  %v11329_v49 = vld [vmem:[#allocation2 + $0x994] ss:$8 sps:$4 sm:$0xff]  }
 0x451   :  { %3705 = vmatprep.subr.bf16.mxu1 %v11268_v50 }
 0x454   :  { %3706 = vmatpush2.bf16.msra.mxu1 %v11266_v51  ;;  %v11327_v51 = vld [vmem:[#allocation2 + $0x990] ss:$8 sps:$4 sm:$0xff]  }
 0x457   :  { %v2092_v52 = vpop.f32.mrf.mxu1  ;;  %3708 = vmatmul.mubr.bf16.vlgmr.msra.gmra.mxu1 %v12604_v37 }
 0x458   :  { %v2214_v57 = vadd.f32 %v12609_v59, %v2092_v52 }
 0x459   :  { %v2094_v53 = vpop.f32.mrf.mxu1 }
 0x45a   :  { %v2216_v60 = vadd.f32 %v12611_v62, %v2094_v53  ;;  %v2453_v61 = vadd.f32 %v12615_v40, %v2214_v57  ;;  %v11285_v62 = vld [vmem:[#allocation2 + $0x870] ss:$8 sps:$4 sm:$0xff]   ;;  %v11332_v53 = vld [vmem:[#allocation2 + $0x984] ss:$8 sps:$4 sm:$0xff]  }
 0x45b   :  { %v2096_v55 = vpop.f32.mrf.mxu1 }
 0x45c   :  { %v2454_v7 = vadd.f32 %v12617_v42, %v2216_v60  ;;  %v11288_v42 = vld [vmem:[#allocation2 + $0x860] ss:$8 sps:$4 sm:$0xff]   ;;  %v11333_v60 = vld [vmem:[#allocation2 + $0xa70] ss:$8 sps:$4 sm:$0xff]  }
 0x45d   :  { %v2097_v56 = vpop.f32.mrf.mxu1 }
 0x45e   :  { %v11330_v56 = vld [vmem:[#allocation2 + $0x980] ss:$8 sps:$4 sm:$0xff]  }
 0x497   :  { %v2681_v3 = vpop.f32.mrf.mxu1 }
 0x498   :  { %v2688_v5 = vadd.f32 %v2681_v3, %v2453_v61  ;;  %v11338_v61 = vld [vmem:[#allocation2 + $0xa64] ss:$8 sps:$4 sm:$0xff]   ;;  %v11341_v3 = vld [vmem:[#allocation2 + $0xa54] ss:$8 sps:$4 sm:$0xff]  }
 0x499   :  { %v2683_v9 = vpop.f32.mrf.mxu1 }
 0x49a   :  { %v2703_v10 = vadd.f32 %v2696_v63, %v2688_v5  ;;  %v2689_v11 = vadd.f32 %v2683_v9, %v2454_v7  ;;  %v11336_v63 = vld [vmem:[#allocation2 + $0xa60] ss:$8 sps:$4 sm:$0xff]   ;;  %v11339_v5 = vld [vmem:[#allocation2 + $0xa50] ss:$8 sps:$4 sm:$0xff]   ;;  %v11344_v7 = vld [vmem:[#allocation2 + $0xa44] ss:$8 sps:$4 sm:$0xff]  }
 0x49b   :  { %v2685_v12 = vpop.f32.mrf.mxu1  ;;  %v11347_v9 = vld [vmem:[#allocation2 + $0xa34] ss:$8 sps:$4 sm:$0xff]  }
 0x49c   :  { %v2704_v13 = vadd.f32 %v2700_v8, %v2689_v11  ;;  %v2705_v17 = vmax.f32 %v2703_v10, 0.0  ;;  %v11342_v8 = vld [vmem:[#allocation2 + $0xa40] ss:$8 sps:$4 sm:$0xff]   ;;  %v11345_v10 = vld [vmem:[#allocation2 + $0xa30] ss:$8 sps:$4 sm:$0xff]  }
 0x49d   :  { %v2686_v59 = vpop.f32.mrf.mxu1  ;;  %v11350_v11 = vld [vmem:[#allocation2 + $0xa24] ss:$8 sps:$4 sm:$0xff]   ;;  %v11348_v12 = vld [vmem:[#allocation2 + $0xa20] ss:$8 sps:$4 sm:$0xff]  }
 0x49e   :  { %v2706_v18 = vmax.f32 %v2704_v13, 0.0  ;;  %v12635_v40 = vpack.c.bf16 %v2705_v17, %v2705_v17  ;;  %v11353_v13 = vld [vmem:[#allocation2 + $0xa14] ss:$8 sps:$4 sm:$0xff]   ;;  %v11351_v17 = vld [vmem:[#allocation2 + $0xa10] ss:$8 sps:$4 sm:$0xff]  }
 0x49f   :  { %v11356_v59 = vld [vmem:[#allocation2 + $0xa04] ss:$8 sps:$4 sm:$0xff]  }
 0x4a0   :  { %v12633_v19 = vpack.c.bf16 %v2706_v18, %v2706_v18  ;;  %v11354_v18 = vld [vmem:[#allocation2 + $0xa00] ss:$8 sps:$4 sm:$0xff]  }
 0x4a2   :  { %2869 = vmatprep.mubr.bf16.mxu0 %v12633_v19 }
 0x4a3   :  { %2870 = vmatmul.mubr.bf16.vlgmr.msra.gmra.mxu0 %v12635_v40 }
 0x4a4   :  { %3208 = vmatpush1.bf16.msra.mxu0 %v11285_v62  ;;  %3239 = vmatprep.mubr.bf16.mxu0 %v12499_v0  ;;  %v11359_v62 = vld [vmem:[#allocation2 + $0xbf4] ss:$8 sps:$4 sm:$0xff]  }
 0x4a5   :  { %3209 = vmatprep.subr.bf16.mxu0 %v11290_v20  ;;  %v11357_v20 = vld [vmem:[#allocation2 + $0xbf0] ss:$8 sps:$4 sm:$0xff]  }
 0x4a8   :  { %3210 = vmatpush1.bf16.msra.mxu0 %v11288_v42  ;;  %v11362_v42 = vld [vmem:[#allocation2 + $0xbe4] ss:$8 sps:$4 sm:$0xff]  }
 0x4a9   :  { %3211 = vmatprep.subr.bf16.mxu0 %v11293_v21  ;;  %v11360_v21 = vld [vmem:[#allocation2 + $0xbe0] ss:$8 sps:$4 sm:$0xff]  }
 0x4ac   :  { %3212 = vmatpush1.bf16.msra.mxu0 %v11291_v22  ;;  %v11365_v22 = vld [vmem:[#allocation2 + $0xbd4] ss:$8 sps:$4 sm:$0xff]  }
 0x4ad   :  { %3213 = vmatprep.subr.bf16.mxu0 %v11296_v24  ;;  %v11363_v24 = vld [vmem:[#allocation2 + $0xbd0] ss:$8 sps:$4 sm:$0xff]  }
 0x4b0   :  { %3214 = vmatpush1.bf16.msra.mxu0 %v11294_v25  ;;  %v11368_v25 = vld [vmem:[#allocation2 + $0xbc4] ss:$8 sps:$4 sm:$0xff]  }
 0x4b1   :  { %3215 = vmatprep.subr.bf16.mxu0 %v11299_v26  ;;  %v11366_v26 = vld [vmem:[#allocation2 + $0xbc0] ss:$8 sps:$4 sm:$0xff]  }
 0x4b4   :  { %3216 = vmatpush1.bf16.msra.mxu0 %v11297_v23  ;;  %v11371_v23 = vld [vmem:[#allocation2 + $0xbb4] ss:$8 sps:$4 sm:$0xff]  }
 0x4b5   :  { %3217 = vmatprep.subr.bf16.mxu0 %v11302_v27  ;;  %v11369_v27 = vld [vmem:[#allocation2 + $0xbb0] ss:$8 sps:$4 sm:$0xff]  }
 0x4b8   :  { %3218 = vmatpush1.bf16.msra.mxu0 %v11300_v28  ;;  %v11374_v28 = vld [vmem:[#allocation2 + $0xba4] ss:$8 sps:$4 sm:$0xff]  }
 0x4b9   :  { %3219 = vmatprep.subr.bf16.mxu0 %v11305_v29  ;;  %v11372_v29 = vld [vmem:[#allocation2 + $0xba0] ss:$8 sps:$4 sm:$0xff]  }
 0x4bc   :  { %3220 = vmatpush1.bf16.msra.mxu0 %v11303_v30  ;;  %v11377_v30 = vld [vmem:[#allocation2 + $0xb94] ss:$8 sps:$4 sm:$0xff]  }
 0x4bd   :  { %3221 = vmatprep.subr.bf16.mxu0 %v11308_v32 }
 0x4c0   :  { %3222 = vmatpush1.bf16.msra.mxu0 %v11306_v33  ;;  %v11375_v33 = vld [vmem:[#allocation2 + $0xb90] ss:$8 sps:$4 sm:$0xff]  }
 0x4c1   :  { %3440 = vmatprep.subr.bf16.mxu0 %v11311_v34 }
 0x4c3   :  { %3240 = vmatmul.mubr.bf16.vlgmr.msra.gmra.mxu0 %v12548_v31 }
 0x4c4   :  { %3441 = vmatpush1.bf16.msra.mxu0 %v11309_v35  ;;  %3472 = vmatprep.mubr.bf16.mxu0 %v12576_v4  ;;  %v11380_v35 = vld [vmem:[#allocation2 + $0xb84] ss:$8 sps:$4 sm:$0xff]  }
 0x4c5   :  { %3442 = vmatprep.subr.bf16.mxu0 %v11314_v54 }
 0x4c8   :  { %3443 = vmatpush1.bf16.msra.mxu0 %v11312_v48  ;;  %v11378_v48 = vld [vmem:[#allocation2 + $0xb80] ss:$8 sps:$4 sm:$0xff]  }
 0x4c9   :  { %3444 = vmatprep.subr.bf16.mxu0 %v11317_v36 }
 0x4cc   :  { %3445 = vmatpush1.bf16.msra.mxu0 %v11315_v38  ;;  %v11383_v38 = vld [vmem:[#allocation2 + $0xc74] ss:$8 sps:$4 sm:$0xff]  }
 0x4cd   :  { %3446 = vmatprep.subr.bf16.mxu0 %v11320_v41  ;;  %v11381_v41 = vld [vmem:[#allocation2 + $0xc70] ss:$8 sps:$4 sm:$0xff]  }
 0x4d0   :  { %3447 = vmatpush1.bf16.msra.mxu0 %v11318_v43  ;;  %v11386_v43 = vld [vmem:[#allocation2 + $0xc64] ss:$8 sps:$4 sm:$0xff]  }
 0x4d1   :  { %3448 = vmatprep.subr.bf16.mxu0 %v11323_v44  ;;  %v11384_v44 = vld [vmem:[#allocation2 + $0xc60] ss:$8 sps:$4 sm:$0xff]  }
 0x4d4   :  { %3449 = vmatpush1.bf16.msra.mxu0 %v11321_v46  ;;  %v11389_v46 = vld [vmem:[#allocation2 + $0xc54] ss:$8 sps:$4 sm:$0xff]  }
 0x4d5   :  { %3450 = vmatprep.subr.bf16.mxu0 %v11326_v47  ;;  %v11387_v47 = vld [vmem:[#allocation2 + $0xc50] ss:$8 sps:$4 sm:$0xff]  }
 0x4d7   :  { %v12642_v50 = vpop.f32.mrf.mxu1 }
 0x4d8   :  { %3451 = vmatpush1.bf16.msra.mxu0 %v11324_v39  ;;  %v11392_v39 = vld [vmem:[#allocation2 + $0xc44] ss:$8 sps:$4 sm:$0xff]  }
 0x4d9   :  { %v12644_v52 = vpop.f32.mrf.mxu1  ;;  %3452 = vmatprep.subr.bf16.mxu0 %v11329_v49  ;;  %v11390_v49 = vld [vmem:[#allocation2 + $0xc40] ss:$8 sps:$4 sm:$0xff]  }
 0x4db   :  { %v3124_v55 = vpop.f32.mrf.mxu1 }
 0x4dc   :  { %3453 = vmatpush1.bf16.msra.mxu0 %v11327_v51  ;;  %v11395_v51 = vld [vmem:[#allocation2 + $0xc34] ss:$8 sps:$4 sm:$0xff]   ;;  %v11398_v55 = vld [vmem:[#allocation2 + $0xc24] ss:$8 sps:$4 sm:$0xff]  }
 0x4dd   :  { %v3125_v57 = vpop.f32.mrf.mxu1  ;;  %3454 = vmatprep.subr.bf16.mxu0 %v11332_v53  ;;  %v11393_v53 = vld [vmem:[#allocation2 + $0xc30] ss:$8 sps:$4 sm:$0xff]  }
 0x4de   :  { %v11401_v57 = vld [vmem:[#allocation2 + $0xc14] ss:$8 sps:$4 sm:$0xff]  }
 0x4e0   :  { %3455 = vmatpush1.bf16.msra.mxu0 %v11330_v56  ;;  %v11396_v56 = vld [vmem:[#allocation2 + $0xc20] ss:$8 sps:$4 sm:$0xff]  }
 0x4e1   :  { %3456 = vmatprep.subr.bf16.mxu0 %v11335_v58  ;;  %v11399_v58 = vld [vmem:[#allocation2 + $0xc10] ss:$8 sps:$4 sm:$0xff]  }
 0x4e4   :  { %3457 = vmatpush2.bf16.msra.mxu0 %v11333_v60  ;;  %v11404_v60 = vld [vmem:[#allocation2 + $0xc04] ss:$8 sps:$4 sm:$0xff]  }
 0x4e5   :  { %3458 = vmatprep.subr.bf16.mxu0 %v11338_v61  ;;  %v11402_v61 = vld [vmem:[#allocation2 + $0xc00] ss:$8 sps:$4 sm:$0xff]  }
 0x4e8   :  { %3459 = vmatpush2.bf16.msra.mxu0 %v11336_v63  ;;  %v11407_v63 = vld [vmem:[#allocation2 + $0xcf4] ss:$8 sps:$4 sm:$0xff]  }
 0x4e9   :  { %3460 = vmatprep.subr.bf16.mxu0 %v11341_v3  ;;  %v11405_v3 = vld [vmem:[#allocation2 + $0xcf0] ss:$8 sps:$4 sm:$0xff]  }
 0x4ec   :  { %3461 = vmatpush2.bf16.msra.mxu0 %v11339_v5  ;;  %v11410_v5 = vld [vmem:[#allocation2 + $0xce4] ss:$8 sps:$4 sm:$0xff]  }
 0x4ed   :  { %3462 = vmatprep.subr.bf16.mxu0 %v11344_v7  ;;  %v11408_v7 = vld [vmem:[#allocation2 + $0xce0] ss:$8 sps:$4 sm:$0xff]  }
 0x4f0   :  { %3463 = vmatpush2.bf16.msra.mxu0 %v11342_v8  ;;  %v11413_v8 = vld [vmem:[#allocation2 + $0xcd4] ss:$8 sps:$4 sm:$0xff]  }
 0x4f1   :  { %3464 = vmatprep.subr.bf16.mxu0 %v11347_v9  ;;  %v11411_v9 = vld [vmem:[#allocation2 + $0xcd0] ss:$8 sps:$4 sm:$0xff]  }
 0x4f4   :  { %3465 = vmatpush2.bf16.msra.mxu0 %v11345_v10  ;;  %v11416_v10 = vld [vmem:[#allocation2 + $0xcc4] ss:$8 sps:$4 sm:$0xff]  }
 0x4f5   :  { %3466 = vmatprep.subr.bf16.mxu0 %v11350_v11  ;;  %v11414_v11 = vld [vmem:[#allocation2 + $0xcc0] ss:$8 sps:$4 sm:$0xff]  }
 0x4f8   :  { %3467 = vmatpush2.bf16.msra.mxu0 %v11348_v12  ;;  %v11419_v12 = vld [vmem:[#allocation2 + $0xcb4] ss:$8 sps:$4 sm:$0xff]  }
 0x4f9   :  { %3468 = vmatprep.subr.bf16.mxu0 %v11353_v13  ;;  %v11417_v13 = vld [vmem:[#allocation2 + $0xcb0] ss:$8 sps:$4 sm:$0xff]  }
 0x4fc   :  { %3469 = vmatpush2.bf16.msra.mxu0 %v11351_v17  ;;  %v11422_v17 = vld [vmem:[#allocation2 + $0xca4] ss:$8 sps:$4 sm:$0xff]  }
 0x4fd   :  { %3470 = vmatprep.subr.bf16.mxu0 %v11356_v59  ;;  %v11420_v59 = vld [vmem:[#allocation2 + $0xca0] ss:$8 sps:$4 sm:$0xff]  }
 0x500   :  { %3471 = vmatpush2.bf16.msra.mxu0 %v11354_v18  ;;  %v11425_v18 = vld [vmem:[#allocation2 + $0xc94] ss:$8 sps:$4 sm:$0xff]  }
 0x501   :  { %3910 = vmatprep.subr.bf16.mxu0 %v11359_v62  ;;  %v11423_v62 = vld [vmem:[#allocation2 + $0xc90] ss:$8 sps:$4 sm:$0xff]  }
 0x503   :  { %3473 = vmatmul.mubr.bf16.vlgmr.msra.gmra.mxu0 %v12578_v6 }
 0x504   :  { %3911 = vmatpush1.bf16.msra.mxu0 %v11357_v20  ;;  %3942 = vmatprep.mubr.bf16.mxu0 %v12633_v19  ;;  %v11428_v20 = vld [vmem:[#allocation2 + $0xc84] ss:$8 sps:$4 sm:$0xff]  }
 0x505   :  { %3912 = vmatprep.subr.bf16.mxu0 %v11362_v42  ;;  %v11426_v42 = vld [vmem:[#allocation2 + $0xc80] ss:$8 sps:$4 sm:$0xff]  }
 0x508   :  { %3913 = vmatpush1.bf16.msra.mxu0 %v11360_v21  ;;  %v11431_v21 = vld [vmem:[#allocation2 + $0xe74] ss:$8 sps:$4 sm:$0xff]  }
 0x509   :  { %3914 = vmatprep.subr.bf16.mxu0 %v11365_v22  ;;  %v11429_v22 = vld [vmem:[#allocation2 + $0xe70] ss:$8 sps:$4 sm:$0xff]  }
 0x50c   :  { %3915 = vmatpush1.bf16.msra.mxu0 %v11363_v24  ;;  %v11434_v24 = vld [vmem:[#allocation2 + $0xe64] ss:$8 sps:$4 sm:$0xff]  }
 0x50d   :  { %3916 = vmatprep.subr.bf16.mxu0 %v11368_v25 }
 0x510   :  { %3917 = vmatpush1.bf16.msra.mxu0 %v11366_v26  ;;  %v11525_v26 = vld [vmem:[#allocation4 + $0x2b8] sm:$0xff]  }
 0x511   :  { %3918 = vmatprep.subr.bf16.mxu0 %v11371_v23  ;;  %v11526_v23 = vld [vmem:[#allocation4 + $0x278] sm:$0xff]   ;;  %10614 = vmatprep.subr.bf16.mxu1 %v11525_v26 }
 0x512   :  { %10615 = vmatpush3.bf16.msra.mxu1 %v11526_v23  ;;  %v11465_v26 = vld [vmem:[#allocation2 + $0xeb0] ss:$8 sps:$4 sm:$0xff]   ;;  %v11470_v23 = vld [vmem:[#allocation2 + $0xea4] ss:$8 sps:$4 sm:$0xff]  }
 0x514   :  { %3919 = vmatpush1.bf16.msra.mxu0 %v11369_v27  ;;  %v11527_v27 = vld [vmem:[#allocation4 + $0x2b0] sm:$0xff]  }
 0x515   :  { %3920 = vmatprep.subr.bf16.mxu0 %v11374_v28  ;;  %v11432_v28 = vld [vmem:[#allocation2 + $0xe60] ss:$8 sps:$4 sm:$0xff]   ;;  %10616 = vmatprep.subr.bf16.mxu1 %v11527_v27 }
 0x516   :  { %v11468_v27 = vld [vmem:[#allocation2 + $0xea0] ss:$8 sps:$4 sm:$0xff]  }
 0x517   :  { %v12648_v32 = vpop.f32.mrf.mxu1 }
 0x518   :  { %3921 = vmatpush1.bf16.msra.mxu0 %v11372_v29 }
 0x519   :  { %v12650_v34 = vpop.f32.mrf.mxu1  ;;  %3922 = vmatprep.subr.bf16.mxu0 %v11377_v30  ;;  %v11437_v30 = vld [vmem:[#allocation2 + $0xe54] ss:$8 sps:$4 sm:$0xff]  }
 0x51b   :  { %v3713_v54 = vpop.f32.mrf.mxu1 }
 0x51c   :  { %3923 = vmatpush1.bf16.msra.mxu0 %v11375_v33 }
 0x51d   :  { %v3714_v36 = vpop.f32.mrf.mxu1  ;;  %3924 = vmatprep.subr.bf16.mxu0 %v11380_v35  ;;  %v11528_v35 = vld [vmem:[#allocation4 + $0x270] sm:$0xff]  }
 0x51e   :  { %10617 = vmatpush3.bf16.msra.mxu1 %v11528_v35  ;;  %v11479_v35 = vld [vmem:[#allocation2 + $0x1074] ss:$8 sps:$4 sm:$0xff]  }
 0x520   :  { %3925 = vmatpush1.bf16.msra.mxu0 %v11378_v48  ;;  %v11529_v48 = vld [vmem:[#allocation4 + $0x2a8] sm:$0xff]  }
 0x521   :  { %3926 = vmatprep.subr.bf16.mxu0 %v11383_v38  ;;  %v11435_v38 = vld [vmem:[#allocation2 + $0xe50] ss:$8 sps:$4 sm:$0xff]   ;;  %10618 = vmatprep.subr.bf16.mxu1 %v11529_v48  ;;  %v11482_v48 = vld [vmem:[#allocation2 + $0x1064] ss:$8 sps:$4 sm:$0xff]  }
 0x524   :  { %3927 = vmatpush2.bf16.msra.mxu0 %v11381_v41 }
 0x525   :  { %3928 = vmatprep.subr.bf16.mxu0 %v11386_v43  ;;  %v11440_v43 = vld [vmem:[#allocation2 + $0xe44] ss:$8 sps:$4 sm:$0xff]  }
 0x528   :  { %3929 = vmatpush2.bf16.msra.mxu0 %v11384_v44  ;;  %v11530_v44 = vld [vmem:[#allocation4 + $0x268] sm:$0xff]  }
 0x529   :  { %3930 = vmatprep.subr.bf16.mxu0 %v11389_v46  ;;  %v11531_v46 = vld [vmem:[#allocation4 + $0x2a0] sm:$0xff]   ;;  %10619 = vmatpush3.bf16.msra.mxu1 %v11530_v44 }
 0x52a   :  { %10620 = vmatprep.subr.bf16.mxu1 %v11531_v46  ;;  %v11488_v44 = vld [vmem:[#allocation2 + $0x1044] ss:$8 sps:$4 sm:$0xff]   ;;  %v11486_v46 = vld [vmem:[#allocation2 + $0x1040] ss:$8 sps:$4 sm:$0xff]  }
 0x52c   :  { %3931 = vmatpush2.bf16.msra.mxu0 %v11387_v47  ;;  %v11438_v47 = vld [vmem:[#allocation2 + $0xe40] ss:$8 sps:$4 sm:$0xff]  }
 0x52d   :  { %3932 = vmatprep.subr.bf16.mxu0 %v11392_v39  ;;  %v11443_v39 = vld [vmem:[#allocation2 + $0xe34] ss:$8 sps:$4 sm:$0xff]  }
 0x530   :  { %3933 = vmatpush2.bf16.msra.mxu0 %v11390_v49  ;;  %v11532_v49 = vld [vmem:[#allocation4 + $0x260] sm:$0xff]  }
 0x531   :  { %3934 = vmatprep.subr.bf16.mxu0 %v11395_v51  ;;  %v11533_v51 = vld [vmem:[#allocation4 + $0x298] sm:$0xff]   ;;  %10621 = vmatpush3.bf16.msra.mxu1 %v11532_v49  ;;  %v11494_v49 = vld [vmem:[#allocation2 + $0x1024] ss:$8 sps:$4 sm:$0xff]  }
 0x532   :  { %10622 = vmatprep.subr.bf16.mxu1 %v11533_v51  ;;  %v11492_v51 = vld [vmem:[#allocation2 + $0x1020] ss:$8 sps:$4 sm:$0xff]  }
 0x534   :  { %3935 = vmatpush2.bf16.msra.mxu0 %v11393_v53  ;;  %v11446_v53 = vld [vmem:[#allocation2 + $0xe24] ss:$8 sps:$4 sm:$0xff]  }
 0x535   :  { %3936 = vmatprep.subr.bf16.mxu0 %v11398_v55  ;;  %v11534_v55 = vld [vmem:[#allocation4 + $0x258] sm:$0xff]  }
 0x536   :  { %10623 = vmatpush3.bf16.msra.mxu1 %v11534_v55  ;;  %v11500_v55 = vld [vmem:[#allocation2 + $0x1004] ss:$8 sps:$4 sm:$0xff]  }
 0x538   :  { %3937 = vmatpush2.bf16.msra.mxu0 %v11396_v56  ;;  %v11535_v56 = vld [vmem:[#allocation4 + $0x290] sm:$0xff]  }
 0x539   :  { %3938 = vmatprep.subr.bf16.mxu0 %v11401_v57  ;;  %v11444_v57 = vld [vmem:[#allocation2 + $0xe20] ss:$8 sps:$4 sm:$0xff]   ;;  %10624 = vmatprep.subr.bf16.mxu1 %v11535_v56 }
 0x53a   :  { %v11498_v56 = vld [vmem:[#allocation2 + $0x1000] ss:$8 sps:$4 sm:$0xff]  }
 0x53c   :  { %3939 = vmatpush2.bf16.msra.mxu0 %v11399_v58  ;;  %v11449_v58 = vld [vmem:[#allocation2 + $0xe14] ss:$8 sps:$4 sm:$0xff]  }
 0x53d   :  { %3940 = vmatprep.subr.bf16.mxu0 %v11404_v60  ;;  %v11447_v60 = vld [vmem:[#allocation2 + $0xe10] ss:$8 sps:$4 sm:$0xff]  }
 0x540   :  { %3941 = vmatpush2.bf16.msra.mxu0 %v11402_v61  ;;  %v11452_v61 = vld [vmem:[#allocation2 + $0xe04] ss:$8 sps:$4 sm:$0xff]  }
 0x541   :  { %4470 = vmatprep.subr.bf16.mxu0 %v11407_v63  ;;  %v11450_v63 = vld [vmem:[#allocation2 + $0xe00] ss:$8 sps:$4 sm:$0xff]  }
 0x543   :  { %3943 = vmatmul.mubr.bf16.vlgmr.msra.gmra.mxu0 %v12635_v40 }
 0x544   :  { %4471 = vmatpush1.bf16.msra.mxu0 %v11405_v3  ;;  %4502 = vmatprep.mubr.bf16.mxu0 %v12499_v0  ;;  %v11455_v3 = vld [vmem:[#allocation2 + $0xef4] ss:$8 sps:$4 sm:$0xff]  }
 0x545   :  { %4472 = vmatprep.subr.bf16.mxu0 %v11410_v5  ;;  %v11453_v5 = vld [vmem:[#allocation2 + $0xef0] ss:$8 sps:$4 sm:$0xff]  }
 0x548   :  { %4473 = vmatpush1.bf16.msra.mxu0 %v11408_v7  ;;  %v11458_v7 = vld [vmem:[#allocation2 + $0xee4] ss:$8 sps:$4 sm:$0xff]  }
 0x549   :  { %4474 = vmatprep.subr.bf16.mxu0 %v11413_v8  ;;  %v11536_v8 = vld [vmem:[#allocation4 + $0x250] sm:$0xff]  }
 0x54a   :  { %10625 = vmatpush3.bf16.msra.mxu1 %v11536_v8  ;;  %v11507_v8 = vld [vmem:[#allocation2 + $0x10d0] ss:$8 sps:$4 sm:$0xff]  }
 0x54c   :  { %4475 = vmatpush1.bf16.msra.mxu0 %v11411_v9 }
 0x54d   :  { %4476 = vmatprep.subr.bf16.mxu0 %v11416_v10  ;;  %v11456_v10 = vld [vmem:[#allocation2 + $0xee0] ss:$8 sps:$4 sm:$0xff]  }
 0x550   :  { %4477 = vmatpush1.bf16.msra.mxu0 %v11414_v11  ;;  %v11537_v11 = vld [vmem:[#allocation4 + $0x288] sm:$0xff]  }
 0x551   :  { %4478 = vmatprep.subr.bf16.mxu0 %v11419_v12  ;;  %10626 = vmatprep.subr.bf16.mxu1 %v11537_v11  ;;  %v11512_v11 = vld [vmem:[#allocation2 + $0x10c4] ss:$8 sps:$4 sm:$0xff]  }
 0x554   :  { %4479 = vmatpush1.bf16.msra.mxu0 %v11417_v13  ;;  %v11461_v13 = vld [vmem:[#allocation2 + $0xed4] ss:$8 sps:$4 sm:$0xff]  }
 0x555   :  { %4480 = vmatprep.subr.bf16.mxu0 %v11422_v17  ;;  %v11538_v17 = vld [vmem:[#allocation4 + $0x248] sm:$0xff]  }
 0x556   :  { %10627 = vmatpush3.bf16.msra.mxu1 %v11538_v17  ;;  %v11515_v17 = vld [vmem:[#allocation2 + $0x10b4] ss:$8 sps:$4 sm:$0xff]  }
 0x558   :  { %4481 = vmatpush1.bf16.msra.mxu0 %v11420_v59 }
 0x559   :  { %4482 = vmatprep.subr.bf16.mxu0 %v11425_v18  ;;  %v11459_v18 = vld [vmem:[#allocation2 + $0xed0] ss:$8 sps:$4 sm:$0xff]  }
 0x55c   :  { %4483 = vmatpush1.bf16.msra.mxu0 %v11423_v62  ;;  %v11539_v62 = vld [vmem:[#allocation4 + $0x280] sm:$0xff]  }
 0x55d   :  { %4484 = vmatprep.subr.bf16.mxu0 %v11428_v20  ;;  %10628 = vmatprep.subr.bf16.mxu1 %v11539_v62  ;;  %v11516_v62 = vld [vmem:[#allocation2 + $0x10a0] ss:$8 sps:$4 sm:$0xff]  }
 0x560   :  { %4485 = vmatpush1.bf16.msra.mxu0 %v11426_v42  ;;  %v11464_v42 = vld [vmem:[#allocation2 + $0xec4] ss:$8 sps:$4 sm:$0xff]  }
 0x561   :  { %4703 = vmatprep.subr.bf16.mxu0 %v11431_v21  ;;  %v11540_v21 = vld [vmem:[#allocation4 + $0x240] sm:$0xff]  }
 0x562   :  { %10629 = vmatpush3.bf16.msra.mxu1 %v11540_v21  ;;  %v11524_v21 = vld [vmem:[#allocation2 + $0x1084] ss:$8 sps:$4 sm:$0xff]  }
 0x563   :  { %4503 = vmatmul.mubr.bf16.vlgmr.msra.gmra.mxu0 %v12548_v31  ;;  %v10608_v25 = vpop.f32.mrf.mxu0 }
 0x564   :  { %4704 = vmatpush1.bf16.msra.mxu0 %v11429_v22  ;;  %4735 = vmatprep.mubr.bf16.mxu0 %v12576_v4  ;;  %v11462_v22 = vld [vmem:[#allocation2 + $0xec0] ss:$8 sps:$4 sm:$0xff]  }
 0x565   :  { %v10609_v29 = vpop.f32.mrf.mxu0  ;;  %4705 = vmatprep.subr.bf16.mxu0 %v11434_v24  ;;  %v11543_v24 = vld [vmem:[#allocation2 + $0xd74] ss:$8 sps:$4 sm:$0xff]  }
 0x566   :  { %v10610_v33 = vadd.f32 %v10609_v29, %v10608_v25  ;;  %v11467_v25 = vld [vmem:[#allocation2 + $0xeb4] ss:$8 sps:$4 sm:$0xff]   ;;  %4349 = vmatprep.subr.bf16.mxu1 %v11543_v24  ;;  %v11471_v29 = vld [vmem:[#allocation2 + $0xe90] ss:$8 sps:$4 sm:$0xff]  }
 0x567   :  { %v10611_v54 = vpop.f32.mrf.mxu0 }
 0x568   :  { %v12657_v36 = vadd.f32 %v10610_v33, %v12624_v14  ;;  %4706 = vmatpush1.bf16.msra.mxu0 %v11432_v28  ;;  %v11441_v14 = vld [vmem:[#allocation2 + $0xe30] ss:$8 sps:$4 sm:$0xff]   ;;  %v11473_v28 = vld [vmem:[#allocation2 + $0xe94] ss:$8 sps:$4 sm:$0xff]   ;;  %v11474_v33 = vld [vmem:[#allocation2 + $0xe80] ss:$8 sps:$4 sm:$0xff]  }
 0x569   :  { %v10612_v41 = vpop.f32.mrf.mxu0  ;;  %4707 = vmatprep.subr.bf16.mxu0 %v11437_v30  ;;  %v11476_v30 = vld [vmem:[#allocation2 + $0xe84] ss:$8 sps:$4 sm:$0xff]   ;;  %v11477_v54 = vld [vmem:[#allocation2 + $0x1070] ss:$8 sps:$4 sm:$0xff]  }
 0x56a   :  { %v11485_v41 = vld [vmem:[#allocation2 + $0x1054] ss:$8 sps:$4 sm:$0xff]  }
 0x56c   :  { %4708 = vmatpush1.bf16.msra.mxu0 %v11435_v38  ;;  %v11480_v38 = vld [vmem:[#allocation2 + $0x1060] ss:$8 sps:$4 sm:$0xff]  }
 0x56d   :  { %4709 = vmatprep.subr.bf16.mxu0 %v11440_v43  ;;  %v11483_v43 = vld [vmem:[#allocation2 + $0x1050] ss:$8 sps:$4 sm:$0xff]  }
 0x570   :  { %4710 = vmatpush1.bf16.msra.mxu0 %v11438_v47  ;;  %v11491_v47 = vld [vmem:[#allocation2 + $0x1034] ss:$8 sps:$4 sm:$0xff]  }
 0x571   :  { %4711 = vmatprep.subr.bf16.mxu0 %v11443_v39  ;;  %v11489_v39 = vld [vmem:[#allocation2 + $0x1030] ss:$8 sps:$4 sm:$0xff]  }
 0x574   :  { %4712 = vmatpush1.bf16.msra.mxu0 %v11441_v14  ;;  %v11497_v14 = vld [vmem:[#allocation2 + $0x1014] ss:$8 sps:$4 sm:$0xff]  }
 0x575   :  { %4713 = vmatprep.subr.bf16.mxu0 %v11446_v53  ;;  %v11495_v53 = vld [vmem:[#allocation2 + $0x1010] ss:$8 sps:$4 sm:$0xff]  }
 0x578   :  { %4714 = vmatpush1.bf16.msra.mxu0 %v11444_v57  ;;  %v11503_v57 = vld [vmem:[#allocation2 + $0x10f4] ss:$8 sps:$4 sm:$0xff]  }
 0x579   :  { %4715 = vmatprep.subr.bf16.mxu0 %v11449_v58  ;;  %v11501_v58 = vld [vmem:[#allocation2 + $0x10f0] ss:$8 sps:$4 sm:$0xff]  }
 0x57c   :  { %4716 = vmatpush1.bf16.msra.mxu0 %v11447_v60  ;;  %v11506_v60 = vld [vmem:[#allocation2 + $0x10e4] ss:$8 sps:$4 sm:$0xff]  }
 0x57d   :  { %4717 = vmatprep.subr.bf16.mxu0 %v11452_v61 }
 0x580   :  { %4718 = vmatpush1.bf16.msra.mxu0 %v11450_v63  ;;  %v11504_v63 = vld [vmem:[#allocation2 + $0x10e0] ss:$8 sps:$4 sm:$0xff]  }
 0x581   :  { %4719 = vmatprep.subr.bf16.mxu0 %v11455_v3 }
 0x583   :  { %v12659_v9 = vpop.f32.mrf.mxu0 }
 0x584   :  { %4720 = vmatpush2.bf16.msra.mxu0 %v11453_v5  ;;  %v11509_v5 = vld [vmem:[#allocation2 + $0x10d4] ss:$8 sps:$4 sm:$0xff]   ;;  %v3242_v24 = vadd.f32 %v12659_v9, %v12642_v50 }
 0x585   :  { %v12661_v12 = vpop.f32.mrf.mxu0  ;;  %4721 = vmatprep.subr.bf16.mxu0 %v11458_v7 }
 0x587   :  { %v3245_v59 = vpop.f32.mrf.mxu0 }
 0x588   :  { %4722 = vmatpush2.bf16.msra.mxu0 %v11456_v10  ;;  %v11513_v59 = vld [vmem:[#allocation2 + $0x10b0] ss:$8 sps:$4 sm:$0xff]  }
 0x589   :  { %v3246_v20 = vpop.f32.mrf.mxu0  ;;  %4723 = vmatprep.subr.bf16.mxu0 %v11461_v13  ;;  %v11510_v13 = vld [vmem:[#allocation2 + $0x10c0] ss:$8 sps:$4 sm:$0xff]  }
 0x58a   :  { %v11521_v20 = vld [vmem:[#allocation2 + $0x1094] ss:$8 sps:$4 sm:$0xff]  }
 0x58c   :  { %4724 = vmatpush2.bf16.msra.mxu0 %v11459_v18  ;;  %v11518_v18 = vld [vmem:[#allocation2 + $0x10a4] ss:$8 sps:$4 sm:$0xff]  }
 0x58d   :  { %4725 = vmatprep.subr.bf16.mxu0 %v11464_v42  ;;  %v11519_v42 = vld [vmem:[#allocation2 + $0x1090] ss:$8 sps:$4 sm:$0xff]  }
 0x590   :  { %4726 = vmatpush2.bf16.msra.mxu0 %v11462_v22  ;;  %v11522_v22 = vld [vmem:[#allocation2 + $0x1080] ss:$8 sps:$4 sm:$0xff]  }
 0x591   :  { %4727 = vmatprep.subr.bf16.mxu0 %v11467_v25  ;;  %v3244_v25 = vadd.f32 %v12661_v12, %v12644_v52 }
 0x594   :  { %4728 = vmatpush2.bf16.msra.mxu0 %v11465_v26 }
 0x595   :  { %4729 = vmatprep.subr.bf16.mxu0 %v11470_v23  ;;  %v3954_v23 = vld [vmem:[#allocation6 + $0x4] ss:$8 sm:$0x3] }
 0x598   :  { %4730 = vmatpush2.bf16.msra.mxu0 %v11468_v27 }
 0x599   :  { %4731 = vmatprep.subr.bf16.mxu0 %v11473_v28 }
 0x59c   :  { %4732 = vmatpush2.bf16.msra.mxu0 %v11471_v29  ;;  %v3959_v29 = vrot.slane %v3954_v23, %v12554_v1 }
 0x59d   :  { %4733 = vmatprep.subr.bf16.mxu0 %v11476_v30 }
 0x5a0   :  { %4734 = vmatpush2.bf16.msra.mxu0 %v11474_v33 }
 0x5a1   :  { %5173 = vmatprep.subr.bf16.mxu0 %v11479_v35 }
 0x5a3   :  { %4736 = vmatmul.mubr.bf16.vlgmr.msra.gmra.mxu0 %v12578_v6 }
 0x5a4   :  { %5174 = vmatpush1.bf16.msra.mxu0 %v11477_v54  ;;  %5205 = vmatprep.mubr.bf16.mxu0 %v12633_v19  ;;  %v3963_v54 = vrot.slane %v3954_v23, %v12556_v2  ;;  %v11588_v23 = vld [vmem:[#allocation2 + $0xd84] ss:$8 sps:$4 sm:$0xff]  }
 0x5a5   :  { %5175 = vmatprep.subr.bf16.mxu0 %v11482_v48 }
 0x5a8   :  { %5176 = vmatpush1.bf16.msra.mxu0 %v11480_v38 }
 0x5a9   :  { %5177 = vmatprep.subr.bf16.mxu0 %v11485_v41 }
 0x5ac   :  { %5178 = vmatpush1.bf16.msra.mxu0 %v11483_v43 }
 0x5ad   :  { %5179 = vmatprep.subr.bf16.mxu0 %v11488_v44 }
 0x5b0   :  { %5180 = vmatpush1.bf16.msra.mxu0 %v11486_v46  ;;  %v11541_v46 = vld [vmem:[#allocation2 + $0xd70] ss:$8 sps:$4 sm:$0xff]  }
 0x5b1   :  { %5181 = vmatprep.subr.bf16.mxu0 %v11491_v47  ;;  %v11546_v47 = vld [vmem:[#allocation2 + $0xd64] ss:$8 sps:$4 sm:$0xff]  }
 0x5b4   :  { %5182 = vmatpush1.bf16.msra.mxu0 %v11489_v39  ;;  %v11549_v39 = vld [vmem:[#allocation2 + $0xd54] ss:$8 sps:$4 sm:$0xff]  }
 0x5b5   :  { %5183 = vmatprep.subr.bf16.mxu0 %v11494_v49  ;;  %v11547_v49 = vld [vmem:[#allocation2 + $0xd50] ss:$8 sps:$4 sm:$0xff]  }
 0x5b8   :  { %5184 = vmatpush1.bf16.msra.mxu0 %v11492_v51  ;;  %v11552_v51 = vld [vmem:[#allocation2 + $0xd44] ss:$8 sps:$4 sm:$0xff]  }
 0x5b9   :  { %5185 = vmatprep.subr.bf16.mxu0 %v11497_v14  ;;  %v11550_v14 = vld [vmem:[#allocation2 + $0xd40] ss:$8 sps:$4 sm:$0xff]  }
 0x5bc   :  { %5186 = vmatpush1.bf16.msra.mxu0 %v11495_v53  ;;  %v11555_v53 = vld [vmem:[#allocation2 + $0xd34] ss:$8 sps:$4 sm:$0xff]  }
 0x5bd   :  { %5187 = vmatprep.subr.bf16.mxu0 %v11500_v55  ;;  %v11553_v55 = vld [vmem:[#allocation2 + $0xd30] ss:$8 sps:$4 sm:$0xff]  }
 0x5c0   :  { %5188 = vmatpush1.bf16.msra.mxu0 %v11498_v56  ;;  %v11558_v56 = vld [vmem:[#allocation2 + $0xd24] ss:$8 sps:$4 sm:$0xff]  }
 0x5c1   :  { %5189 = vmatprep.subr.bf16.mxu0 %v11503_v57  ;;  %v11556_v57 = vld [vmem:[#allocation2 + $0xd20] ss:$8 sps:$4 sm:$0xff]  }
 0x5c3   :  { %v3474_v61 = vpop.f32.mrf.mxu0 }
 0x5c4   :  { %5190 = vmatpush2.bf16.msra.mxu0 %v11501_v58  ;;  %v3481_v26 = vadd.f32 %v3474_v61, %v3242_v24  ;;  %v11561_v58 = vld [vmem:[#allocation2 + $0xd14] ss:$8 sps:$4 sm:$0xff]   ;;  %v11559_v61 = vld [vmem:[#allocation2 + $0xd10] ss:$8 sps:$4 sm:$0xff]   ;;  %v11580_v24 = vld [vmem:[#allocation2 + $0xda0] ss:$8 sps:$4 sm:$0xff]  }
 0x5c5   :  { %v3476_v3 = vpop.f32.mrf.mxu0  ;;  %5191 = vmatprep.subr.bf16.mxu0 %v11506_v60 }
 0x5c6   :  { %v3482_v27 = vadd.f32 %v3476_v3, %v3244_v25  ;;  %v3716_v28 = vadd.f32 %v12648_v32, %v3481_v26  ;;  %v11585_v25 = vld [vmem:[#allocation2 + $0xd94] ss:$8 sps:$4 sm:$0xff]   ;;  %v11583_v26 = vld [vmem:[#allocation2 + $0xd90] ss:$8 sps:$4 sm:$0xff]  }
 0x5c7   :  { %v3478_v7 = vpop.f32.mrf.mxu0 }
 0x5c8   :  { %5192 = vmatpush2.bf16.msra.mxu0 %v11504_v63  ;;  %v3717_v35 = vadd.f32 %v12650_v34, %v3482_v27  ;;  %v11544_v34 = vld [vmem:[#allocation2 + $0xd60] ss:$8 sps:$4 sm:$0xff]   ;;  %v11564_v63 = vld [vmem:[#allocation2 + $0xd04] ss:$8 sps:$4 sm:$0xff]  }
 0x5c9   :  { %v3479_v10 = vpop.f32.mrf.mxu0  ;;  %5193 = vmatprep.subr.bf16.mxu0 %v11509_v5  ;;  %v11562_v7 = vld [vmem:[#allocation2 + $0xd00] ss:$8 sps:$4 sm:$0xff]  }
 0x5ca   :  { %v11586_v27 = vld [vmem:[#allocation2 + $0xd80] ss:$8 sps:$4 sm:$0xff]  }
 0x5cc   :  { %5194 = vmatpush2.bf16.msra.mxu0 %v11507_v8  ;;  %v11567_v8 = vld [vmem:[#allocation2 + $0xdf4] ss:$8 sps:$4 sm:$0xff]  }
 0x5cd   :  { %5195 = vmatprep.subr.bf16.mxu0 %v11512_v11  ;;  %v11565_v11 = vld [vmem:[#allocation2 + $0xdf0] ss:$8 sps:$4 sm:$0xff]  }
 0x5d0   :  { %5196 = vmatpush2.bf16.msra.mxu0 %v11510_v13  ;;  %v11570_v13 = vld [vmem:[#allocation2 + $0xde4] ss:$8 sps:$4 sm:$0xff]  }
 0x5d1   :  { %5197 = vmatprep.subr.bf16.mxu0 %v11515_v17  ;;  %v11568_v17 = vld [vmem:[#allocation2 + $0xde0] ss:$8 sps:$4 sm:$0xff]  }
 0x5d4   :  { %5198 = vmatpush2.bf16.msra.mxu0 %v11513_v59  ;;  %v11573_v59 = vld [vmem:[#allocation2 + $0xdd4] ss:$8 sps:$4 sm:$0xff]  }
 0x5d5   :  { %5199 = vmatprep.subr.bf16.mxu0 %v11518_v18  ;;  %v11571_v18 = vld [vmem:[#allocation2 + $0xdd0] ss:$8 sps:$4 sm:$0xff]  }
 0x5d8   :  { %5200 = vmatpush2.bf16.msra.mxu0 %v11516_v62  ;;  %v11576_v62 = vld [vmem:[#allocation2 + $0xdc4] ss:$8 sps:$4 sm:$0xff]  }
 0x5d9   :  { %5201 = vmatprep.subr.bf16.mxu0 %v11521_v20  ;;  %v11574_v20 = vld [vmem:[#allocation2 + $0xdc0] ss:$8 sps:$4 sm:$0xff]  }
 0x5dc   :  { %5202 = vmatpush2.bf16.msra.mxu0 %v11519_v42  ;;  %v11579_v42 = vld [vmem:[#allocation2 + $0xdb4] ss:$8 sps:$4 sm:$0xff]  }
 0x5dd   :  { %5203 = vmatprep.subr.bf16.mxu0 %v11524_v21  ;;  %v11577_v21 = vld [vmem:[#allocation2 + $0xdb0] ss:$8 sps:$4 sm:$0xff]  }
 0x5e0   :  { %5204 = vmatpush2.bf16.msra.mxu0 %v11522_v22  ;;  %v11582_v22 = vld [vmem:[#allocation2 + $0xda4] ss:$8 sps:$4 sm:$0xff]  }
 0x5e3   :  { %5206 = vmatmul.mubr.bf16.vlgmr.msra.gmra.mxu0 %v12635_v40 }
 0x603   :  { %v3944_v30 = vpop.f32.mrf.mxu0 }
 0x604   :  { %v3951_v33 = vadd.f32 %v3944_v30, %v3716_v28  ;;  %v11591_v28 = vld [vmem:[#allocation2 + $0xf74] ss:$8 sps:$4 sm:$0xff]   ;;  %v11594_v30 = vld [vmem:[#allocation2 + $0xf64] ss:$8 sps:$4 sm:$0xff]  }
 0x605   :  { %v3946_v48 = vpop.f32.mrf.mxu0 }
 0x606   :  { %v3966_v38 = vadd.f32 %v3959_v29, %v3951_v33  ;;  %v3952_v41 = vadd.f32 %v3946_v48, %v3717_v35  ;;  %v11589_v29 = vld [vmem:[#allocation2 + $0xf70] ss:$8 sps:$4 sm:$0xff]   ;;  %v11592_v33 = vld [vmem:[#allocation2 + $0xf60] ss:$8 sps:$4 sm:$0xff]   ;;  %v11597_v35 = vld [vmem:[#allocation2 + $0xf54] ss:$8 sps:$4 sm:$0xff]  }
 0x607   :  { %v3948_v50 = vpop.f32.mrf.mxu0  ;;  %v11600_v48 = vld [vmem:[#allocation2 + $0xf44] ss:$8 sps:$4 sm:$0xff]  }
 0x608   :  { %v3967_v9 = vadd.f32 %v3963_v54, %v3952_v41  ;;  %v3968_v43 = vmax.f32 %v3966_v38, 0.0  ;;  %v11595_v54 = vld [vmem:[#allocation2 + $0xf50] ss:$8 sps:$4 sm:$0xff]   ;;  %v11598_v38 = vld [vmem:[#allocation2 + $0xf40] ss:$8 sps:$4 sm:$0xff]  }
 0x609   :  { %v3949_v52 = vpop.f32.mrf.mxu0  ;;  %v11603_v41 = vld [vmem:[#allocation2 + $0xf34] ss:$8 sps:$4 sm:$0xff]   ;;  %v11601_v50 = vld [vmem:[#allocation2 + $0xf30] ss:$8 sps:$4 sm:$0xff]  }
 0x60a   :  { %v3969_v12 = vmax.f32 %v3967_v9, 0.0  ;;  %v12676_v32 = vpack.c.bf16 %v3968_v43, %v3968_v43  ;;  %v11606_v9 = vld [vmem:[#allocation2 + $0xf24] ss:$8 sps:$4 sm:$0xff]   ;;  %v11604_v43 = vld [vmem:[#allocation2 + $0xf20] ss:$8 sps:$4 sm:$0xff]  }
 0x60b   :  { %v11609_v52 = vld [vmem:[#allocation2 + $0xf14] ss:$8 sps:$4 sm:$0xff]  }
 0x60c   :  { %v12674_v44 = vpack.c.bf16 %v3969_v12, %v3969_v12 }
 0x60e   :  { %4132 = vmatprep.mubr.bf16.mxu1 %v12674_v44 }
 0x60f   :  { %4133 = vmatmul.mubr.bf16.vlgmr.msra.gmra.mxu1 %v12676_v32 }
 0x610   :  { %4350 = vmatpush1.bf16.msra.mxu1 %v11541_v46  ;;  %4381 = vmatprep.mubr.bf16.mxu1 %v12560_v15  ;;  %v11607_v46 = vld [vmem:[#allocation2 + $0xf10] ss:$8 sps:$4 sm:$0xff]  }
 0x611   :  { %4351 = vmatprep.subr.bf16.mxu1 %v11546_v47 }
 0x614   :  { %4352 = vmatpush1.bf16.msra.mxu1 %v11544_v34  ;;  %v11612_v34 = vld [vmem:[#allocation2 + $0xf04] ss:$8 sps:$4 sm:$0xff]  }
 0x615   :  { %4353 = vmatprep.subr.bf16.mxu1 %v11549_v39 }
 0x618   :  { %4354 = vmatpush1.bf16.msra.mxu1 %v11547_v49  ;;  %v11610_v49 = vld [vmem:[#allocation2 + $0xf00] ss:$8 sps:$4 sm:$0xff]  }
 0x619   :  { %4355 = vmatprep.subr.bf16.mxu1 %v11552_v51 }
 0x61c   :  { %4356 = vmatpush1.bf16.msra.mxu1 %v11550_v14  ;;  %v11615_v14 = vld [vmem:[#allocation2 + $0xff4] ss:$8 sps:$4 sm:$0xff]  }
 0x61d   :  { %4357 = vmatprep.subr.bf16.mxu1 %v11555_v53  ;;  %v11613_v53 = vld [vmem:[#allocation2 + $0xff0] ss:$8 sps:$4 sm:$0xff]  }
 0x620   :  { %4358 = vmatpush1.bf16.msra.mxu1 %v11553_v55  ;;  %v11618_v55 = vld [vmem:[#allocation2 + $0xfe4] ss:$8 sps:$4 sm:$0xff]  }
 0x621   :  { %4359 = vmatprep.subr.bf16.mxu1 %v11558_v56  ;;  %v11616_v56 = vld [vmem:[#allocation2 + $0xfe0] ss:$8 sps:$4 sm:$0xff]  }
 0x623   :  { %v12681_v60 = vpop.f32.mrf.mxu0 }
 0x624   :  { %4360 = vmatpush1.bf16.msra.mxu1 %v11556_v57  ;;  %v11621_v57 = vld [vmem:[#allocation2 + $0xfd4] ss:$8 sps:$4 sm:$0xff]  }
 0x625   :  { %4361 = vmatprep.subr.bf16.mxu1 %v11561_v58  ;;  %v12683_v3 = vpop.f32.mrf.mxu0  ;;  %v11619_v58 = vld [vmem:[#allocation2 + $0xfd0] ss:$8 sps:$4 sm:$0xff]  }
 0x627   :  { %v4508_v5 = vpop.f32.mrf.mxu0 }
 0x628   :  { %4362 = vmatpush1.bf16.msra.mxu1 %v11559_v61  ;;  %v11624_v61 = vld [vmem:[#allocation2 + $0xfc4] ss:$8 sps:$4 sm:$0xff]   ;;  %v11627_v5 = vld [vmem:[#allocation2 + $0xfb4] ss:$8 sps:$4 sm:$0xff]  }
 0x629   :  { %4363 = vmatprep.subr.bf16.mxu1 %v11564_v63  ;;  %v4509_v10 = vpop.f32.mrf.mxu0  ;;  %v11622_v63 = vld [vmem:[#allocation2 + $0xfc0] ss:$8 sps:$4 sm:$0xff]  }
 0x62a   :  { %v11628_v10 = vld [vmem:[#allocation2 + $0xfa0] ss:$8 sps:$4 sm:$0xff]  }
 0x62c   :  { %4364 = vmatpush1.bf16.msra.mxu1 %v11562_v7  ;;  %v11625_v7 = vld [vmem:[#allocation2 + $0xfb0] ss:$8 sps:$4 sm:$0xff]  }
 0x62d   :  { %4365 = vmatprep.subr.bf16.mxu1 %v11567_v8  ;;  %v11630_v8 = vld [vmem:[#allocation2 + $0xfa4] ss:$8 sps:$4 sm:$0xff]  }
 0x630   :  { %4366 = vmatpush2.bf16.msra.mxu1 %v11565_v11  ;;  %v11633_v11 = vld [vmem:[#allocation2 + $0xf94] ss:$8 sps:$4 sm:$0xff]  }
 0x631   :  { %4367 = vmatprep.subr.bf16.mxu1 %v11570_v13  ;;  %v11631_v13 = vld [vmem:[#allocation2 + $0xf90] ss:$8 sps:$4 sm:$0xff]  }
 0x634   :  { %4368 = vmatpush2.bf16.msra.mxu1 %v11568_v17  ;;  %v11636_v17 = vld [vmem:[#allocation2 + $0xf84] ss:$8 sps:$4 sm:$0xff]  }
 0x635   :  { %4369 = vmatprep.subr.bf16.mxu1 %v11573_v59  ;;  %v11634_v59 = vld [vmem:[#allocation2 + $0xf80] ss:$8 sps:$4 sm:$0xff]  }
 0x638   :  { %4370 = vmatpush2.bf16.msra.mxu1 %v11571_v18  ;;  %v11639_v18 = vld [vmem:[#allocation2 + $0x1174] ss:$8 sps:$4 sm:$0xff]  }
 0x639   :  { %4371 = vmatprep.subr.bf16.mxu1 %v11576_v62  ;;  %v11637_v62 = vld [vmem:[#allocation2 + $0x1170] ss:$8 sps:$4 sm:$0xff]  }
 0x63c   :  { %4372 = vmatpush2.bf16.msra.mxu1 %v11574_v20  ;;  %v11642_v20 = vld [vmem:[#allocation2 + $0x1164] ss:$8 sps:$4 sm:$0xff]  }
 0x63d   :  { %4373 = vmatprep.subr.bf16.mxu1 %v11579_v42  ;;  %v11640_v42 = vld [vmem:[#allocation2 + $0x1160] ss:$8 sps:$4 sm:$0xff]  }
 0x640   :  { %4374 = vmatpush2.bf16.msra.mxu1 %v11577_v21  ;;  %v11645_v21 = vld [vmem:[#allocation2 + $0x1154] ss:$8 sps:$4 sm:$0xff]  }
 0x641   :  { %4375 = vmatprep.subr.bf16.mxu1 %v11582_v22  ;;  %v11643_v22 = vld [vmem:[#allocation2 + $0x1150] ss:$8 sps:$4 sm:$0xff]  }
 0x644   :  { %4376 = vmatpush2.bf16.msra.mxu1 %v11580_v24  ;;  %v11648_v24 = vld [vmem:[#allocation2 + $0x1144] ss:$8 sps:$4 sm:$0xff]  }
 0x645   :  { %4377 = vmatprep.subr.bf16.mxu1 %v11585_v25  ;;  %v11646_v25 = vld [vmem:[#allocation2 + $0x1140] ss:$8 sps:$4 sm:$0xff]  }
 0x648   :  { %4378 = vmatpush2.bf16.msra.mxu1 %v11583_v26  ;;  %v11651_v26 = vld [vmem:[#allocation2 + $0x1134] ss:$8 sps:$4 sm:$0xff]  }
 0x649   :  { %4379 = vmatprep.subr.bf16.mxu1 %v11588_v23  ;;  %v11649_v23 = vld [vmem:[#allocation2 + $0x1130] ss:$8 sps:$4 sm:$0xff]  }
 0x64c   :  { %4380 = vmatpush2.bf16.msra.mxu1 %v11586_v27  ;;  %v11654_v27 = vld [vmem:[#allocation2 + $0x1124] ss:$8 sps:$4 sm:$0xff]  }
 0x64d   :  { %4938 = vmatprep.subr.bf16.mxu1 %v11591_v28  ;;  %v11652_v28 = vld [vmem:[#allocation2 + $0x1120] ss:$8 sps:$4 sm:$0xff]  }
 0x64f   :  { %4382 = vmatmul.mubr.bf16.vlgmr.msra.gmra.mxu1 %v12562_v16 }
 0x650   :  { %4939 = vmatpush1.bf16.msra.mxu1 %v11589_v29  ;;  %4970 = vmatprep.mubr.bf16.mxu1 %v12602_v45  ;;  %v11657_v29 = vld [vmem:[#allocation2 + $0x1114] ss:$8 sps:$4 sm:$0xff]  }
 0x651   :  { %4940 = vmatprep.subr.bf16.mxu1 %v11594_v30 }
 0x654   :  { %4941 = vmatpush1.bf16.msra.mxu1 %v11592_v33  ;;  %v11655_v33 = vld [vmem:[#allocation2 + $0x1110] ss:$8 sps:$4 sm:$0xff]  }
 0x655   :  { %4942 = vmatprep.subr.bf16.mxu1 %v11597_v35 }
 0x658   :  { %4943 = vmatpush1.bf16.msra.mxu1 %v11595_v54  ;;  %v11660_v54 = vld [vmem:[#allocation2 + $0x1104] ss:$8 sps:$4 sm:$0xff]  }
 0x659   :  { %4944 = vmatprep.subr.bf16.mxu1 %v11600_v48 }
 0x65c   :  { %4945 = vmatpush1.bf16.msra.mxu1 %v11598_v38  ;;  %v11658_v38 = vld [vmem:[#allocation2 + $0x1100] ss:$8 sps:$4 sm:$0xff]  }
 0x65d   :  { %4946 = vmatprep.subr.bf16.mxu1 %v11603_v41 }
 0x660   :  { %4947 = vmatpush1.bf16.msra.mxu1 %v11601_v50  ;;  %v11663_v50 = vld [vmem:[#allocation2 + $0x11f4] ss:$8 sps:$4 sm:$0xff]  }
 0x661   :  { %4948 = vmatprep.subr.bf16.mxu1 %v11606_v9  ;;  %v11661_v9 = vld [vmem:[#allocation2 + $0x11f0] ss:$8 sps:$4 sm:$0xff]  }
 0x663   :  { %v12687_v12 = vpop.f32.mrf.mxu0 }
 0x664   :  { %4949 = vmatpush1.bf16.msra.mxu1 %v11604_v43  ;;  %v11666_v43 = vld [vmem:[#allocation2 + $0x11e4] ss:$8 sps:$4 sm:$0xff]  }
 0x665   :  { %v12689_v47 = vpop.f32.mrf.mxu0  ;;  %4950 = vmatprep.subr.bf16.mxu1 %v11609_v52  ;;  %v11664_v52 = vld [vmem:[#allocation2 + $0x11e0] ss:$8 sps:$4 sm:$0xff]  }
 0x667   :  { %v4741_v39 = vpop.f32.mrf.mxu0 }
 0x668   :  { %4951 = vmatpush1.bf16.msra.mxu1 %v11607_v46  ;;  %v11669_v46 = vld [vmem:[#allocation2 + $0x11d4] ss:$8 sps:$4 sm:$0xff]   ;;  %v11672_v39 = vld [vmem:[#allocation2 + $0x11c4] ss:$8 sps:$4 sm:$0xff]  }
 0x669   :  { %v4742_v51 = vpop.f32.mrf.mxu0  ;;  %4952 = vmatprep.subr.bf16.mxu1 %v11612_v34  ;;  %v11667_v34 = vld [vmem:[#allocation2 + $0x11d0] ss:$8 sps:$4 sm:$0xff]  }
 0x66a   :  { %v11675_v51 = vld [vmem:[#allocation2 + $0x11b4] ss:$8 sps:$4 sm:$0xff]  }
 0x66c   :  { %4953 = vmatpush1.bf16.msra.mxu1 %v11610_v49  ;;  %v11670_v49 = vld [vmem:[#allocation2 + $0x11c0] ss:$8 sps:$4 sm:$0xff]  }
 0x66d   :  { %4954 = vmatprep.subr.bf16.mxu1 %v11615_v14  ;;  %v11673_v14 = vld [vmem:[#allocation2 + $0x11b0] ss:$8 sps:$4 sm:$0xff]  }
 0x670   :  { %4955 = vmatpush2.bf16.msra.mxu1 %v11613_v53  ;;  %v11678_v53 = vld [vmem:[#allocation2 + $0x11a4] ss:$8 sps:$4 sm:$0xff]  }
 0x671   :  { %4956 = vmatprep.subr.bf16.mxu1 %v11618_v55  ;;  %v11676_v55 = vld [vmem:[#allocation2 + $0x11a0] ss:$8 sps:$4 sm:$0xff]  }
 0x674   :  { %4957 = vmatpush2.bf16.msra.mxu1 %v11616_v56  ;;  %v11681_v56 = vld [vmem:[#allocation2 + $0x1194] ss:$8 sps:$4 sm:$0xff]  }
 0x675   :  { %4958 = vmatprep.subr.bf16.mxu1 %v11621_v57  ;;  %v11679_v57 = vld [vmem:[#allocation2 + $0x1190] ss:$8 sps:$4 sm:$0xff]  }
 0x678   :  { %4959 = vmatpush2.bf16.msra.mxu1 %v11619_v58  ;;  %v11684_v58 = vld [vmem:[#allocation2 + $0x1184] ss:$8 sps:$4 sm:$0xff]  }
 0x679   :  { %4960 = vmatprep.subr.bf16.mxu1 %v11624_v61  ;;  %v11682_v61 = vld [vmem:[#allocation2 + $0x1180] ss:$8 sps:$4 sm:$0xff]  }
 0x67c   :  { %4961 = vmatpush2.bf16.msra.mxu1 %v11622_v63  ;;  %v11687_v63 = vld [vmem:[#allocation2 + $0x12f4] ss:$8 sps:$4 sm:$0xff]  }
 0x67d   :  { %4962 = vmatprep.subr.bf16.mxu1 %v11627_v5  ;;  %v11685_v5 = vld [vmem:[#allocation2 + $0x12f0] ss:$8 sps:$4 sm:$0xff]  }
 0x680   :  { %4963 = vmatpush2.bf16.msra.mxu1 %v11625_v7  ;;  %v11690_v7 = vld [vmem:[#allocation2 + $0x12e4] ss:$8 sps:$4 sm:$0xff]  }
 0x681   :  { %4964 = vmatprep.subr.bf16.mxu1 %v11630_v8 }
 0x684   :  { %4965 = vmatpush2.bf16.msra.mxu1 %v11628_v10  ;;  %v11688_v10 = vld [vmem:[#allocation2 + $0x12e0] ss:$8 sps:$4 sm:$0xff]  }
 0x685   :  { %4966 = vmatprep.subr.bf16.mxu1 %v11633_v11 }
 0x688   :  { %4967 = vmatpush2.bf16.msra.mxu1 %v11631_v13  ;;  %v11693_v13 = vld [vmem:[#allocation2 + $0x12d4] ss:$8 sps:$4 sm:$0xff]  }
 0x689   :  { %4968 = vmatprep.subr.bf16.mxu1 %v11636_v17 }
 0x68c   :  { %4969 = vmatpush2.bf16.msra.mxu1 %v11634_v59 }
 0x68d   :  { %5408 = vmatprep.subr.bf16.mxu1 %v11639_v18 }
 0x68f   :  { %4971 = vmatmul.mubr.bf16.vlgmr.msra.gmra.mxu1 %v12604_v37 }
 0x690   :  { %5409 = vmatpush1.bf16.msra.mxu1 %v11637_v62  ;;  %5440 = vmatprep.mubr.bf16.mxu1 %v12674_v44  ;;  %v11691_v62 = vld [vmem:[#allocation2 + $0x12d0] ss:$8 sps:$4 sm:$0xff]  }
 0x691   :  { %5410 = vmatprep.subr.bf16.mxu1 %v11642_v20 }
 0x694   :  { %5411 = vmatpush1.bf16.msra.mxu1 %v11640_v42  ;;  %v11696_v42 = vld [vmem:[#allocation2 + $0x12c4] ss:$8 sps:$4 sm:$0xff]  }
 0x695   :  { %5412 = vmatprep.subr.bf16.mxu1 %v11645_v21  ;;  %v11694_v21 = vld [vmem:[#allocation2 + $0x12c0] ss:$8 sps:$4 sm:$0xff]  }
 0x698   :  { %5413 = vmatpush1.bf16.msra.mxu1 %v11643_v22  ;;  %v11699_v22 = vld [vmem:[#allocation2 + $0x12b4] ss:$8 sps:$4 sm:$0xff]  }
 0x699   :  { %5414 = vmatprep.subr.bf16.mxu1 %v11648_v24  ;;  %v11697_v24 = vld [vmem:[#allocation2 + $0x12b0] ss:$8 sps:$4 sm:$0xff]  }
 0x69c   :  { %5415 = vmatpush1.bf16.msra.mxu1 %v11646_v25  ;;  %v11702_v25 = vld [vmem:[#allocation2 + $0x12a4] ss:$8 sps:$4 sm:$0xff]  }
 0x69d   :  { %5416 = vmatprep.subr.bf16.mxu1 %v11651_v26  ;;  %v11700_v26 = vld [vmem:[#allocation2 + $0x12a0] ss:$8 sps:$4 sm:$0xff]  }
 0x6a0   :  { %5417 = vmatpush1.bf16.msra.mxu1 %v11649_v23  ;;  %v11705_v23 = vld [vmem:[#allocation2 + $0x1294] ss:$8 sps:$4 sm:$0xff]  }
 0x6a1   :  { %5418 = vmatprep.subr.bf16.mxu1 %v11654_v27  ;;  %v11708_v27 = vld [vmem:[#allocation2 + $0x1284] ss:$8 sps:$4 sm:$0xff]  }
 0x6a3   :  { %v12693_v30 = vpop.f32.mrf.mxu0 }
 0x6a4   :  { %5419 = vmatpush1.bf16.msra.mxu1 %v11652_v28  ;;  %v11706_v28 = vld [vmem:[#allocation2 + $0x1280] ss:$8 sps:$4 sm:$0xff]  }
 0x6a5   :  { %v12695_v35 = vpop.f32.mrf.mxu0  ;;  %5420 = vmatprep.subr.bf16.mxu1 %v11657_v29  ;;  %v11711_v29 = vld [vmem:[#allocation2 + $0x1374] ss:$8 sps:$4 sm:$0xff]  }
 0x6a7   :  { %v5211_v48 = vpop.f32.mrf.mxu0 }
 0x6a8   :  { %5421 = vmatpush1.bf16.msra.mxu1 %v11655_v33  ;;  %v11709_v33 = vld [vmem:[#allocation2 + $0x1370] ss:$8 sps:$4 sm:$0xff]   ;;  %v11712_v48 = vld [vmem:[#allocation2 + $0x1360] ss:$8 sps:$4 sm:$0xff]  }
 0x6a9   :  { %v5212_v41 = vpop.f32.mrf.mxu0  ;;  %5422 = vmatprep.subr.bf16.mxu1 %v11660_v54  ;;  %v11714_v54 = vld [vmem:[#allocation2 + $0x1364] ss:$8 sps:$4 sm:$0xff]  }
 0x6aa   :  { %v11715_v41 = vld [vmem:[#allocation2 + $0x1350] ss:$8 sps:$4 sm:$0xff]  }
 0x6ac   :  { %5423 = vmatpush1.bf16.msra.mxu1 %v11658_v38  ;;  %v11717_v38 = vld [vmem:[#allocation2 + $0x1354] ss:$8 sps:$4 sm:$0xff]  }
 0x6ad   :  { %5424 = vmatprep.subr.bf16.mxu1 %v11663_v50  ;;  %v11720_v50 = vld [vmem:[#allocation2 + $0x1344] ss:$8 sps:$4 sm:$0xff]  }
 0x6b0   :  { %5425 = vmatpush2.bf16.msra.mxu1 %v11661_v9  ;;  %v11718_v9 = vld [vmem:[#allocation2 + $0x1340] ss:$8 sps:$4 sm:$0xff]  }
 0x6b1   :  { %5426 = vmatprep.subr.bf16.mxu1 %v11666_v43  ;;  %v11814_v43 = vld [vmem:[#allocation4 + $0x338] sm:$0xff]  }
 0x6b2   :  { %10636 = vmatprep.subr.bf16.mxu0 %v11814_v43  ;;  %v11756_v43 = vld [vmem:[#allocation2 + $0x1484] ss:$8 sps:$4 sm:$0xff]  }
 0x6b4   :  { %5427 = vmatpush2.bf16.msra.mxu1 %v11664_v52  ;;  %v11815_v52 = vld [vmem:[#allocation4 + $0x2f8] sm:$0xff]  }
 0x6b5   :  { %5428 = vmatprep.subr.bf16.mxu1 %v11669_v46  ;;  %v11723_v46 = vld [vmem:[#allocation2 + $0x1334] ss:$8 sps:$4 sm:$0xff]   ;;  %10637 = vmatpush3.bf16.msra.mxu0 %v11815_v52  ;;  %v11754_v52 = vld [vmem:[#allocation2 + $0x1480] ss:$8 sps:$4 sm:$0xff]  }
 0x6b8   :  { %5429 = vmatpush2.bf16.msra.mxu1 %v11667_v34  ;;  %v11721_v34 = vld [vmem:[#allocation2 + $0x1330] ss:$8 sps:$4 sm:$0xff]  }
 0x6b9   :  { %5430 = vmatprep.subr.bf16.mxu1 %v11672_v39  ;;  %v11819_v39 = vld [vmem:[#allocation4 + $0x330] sm:$0xff]  }
 0x6ba   :  { %10638 = vmatprep.subr.bf16.mxu0 %v11819_v39  ;;  %v11762_v39 = vld [vmem:[#allocation2 + $0x1564] ss:$8 sps:$4 sm:$0xff]  }
 0x6bc   :  { %5431 = vmatpush2.bf16.msra.mxu1 %v11670_v49  ;;  %v11820_v49 = vld [vmem:[#allocation4 + $0x2f0] sm:$0xff]  }
 0x6bd   :  { %5432 = vmatprep.subr.bf16.mxu1 %v11675_v51  ;;  %v11726_v51 = vld [vmem:[#allocation2 + $0x1324] ss:$8 sps:$4 sm:$0xff]   ;;  %10639 = vmatpush3.bf16.msra.mxu0 %v11820_v49  ;;  %v11760_v49 = vld [vmem:[#allocation2 + $0x1560] ss:$8 sps:$4 sm:$0xff]  }
 0x6c0   :  { %5433 = vmatpush2.bf16.msra.mxu1 %v11673_v14  ;;  %v11724_v14 = vld [vmem:[#allocation2 + $0x1320] ss:$8 sps:$4 sm:$0xff]  }
 0x6c1   :  { %5434 = vmatprep.subr.bf16.mxu1 %v11678_v53  ;;  %v11824_v53 = vld [vmem:[#allocation4 + $0x328] sm:$0xff]  }
 0x6c2   :  { %10640 = vmatprep.subr.bf16.mxu0 %v11824_v53  ;;  %v11768_v53 = vld [vmem:[#allocation2 + $0x1544] ss:$8 sps:$4 sm:$0xff]  }
 0x6c4   :  { %5435 = vmatpush2.bf16.msra.mxu1 %v11676_v55  ;;  %v11825_v55 = vld [vmem:[#allocation4 + $0x2e8] sm:$0xff]  }
 0x6c5   :  { %5436 = vmatprep.subr.bf16.mxu1 %v11681_v56  ;;  %v11729_v56 = vld [vmem:[#allocation2 + $0x1314] ss:$8 sps:$4 sm:$0xff]   ;;  %10641 = vmatpush3.bf16.msra.mxu0 %v11825_v55  ;;  %v11766_v55 = vld [vmem:[#allocation2 + $0x1540] ss:$8 sps:$4 sm:$0xff]  }
 0x6c8   :  { %5437 = vmatpush2.bf16.msra.mxu1 %v11679_v57  ;;  %v11727_v57 = vld [vmem:[#allocation2 + $0x1310] ss:$8 sps:$4 sm:$0xff]  }
 0x6c9   :  { %5438 = vmatprep.subr.bf16.mxu1 %v11684_v58  ;;  %v11829_v58 = vld [vmem:[#allocation4 + $0x320] sm:$0xff]  }
 0x6ca   :  { %10642 = vmatprep.subr.bf16.mxu0 %v11829_v58  ;;  %v11774_v58 = vld [vmem:[#allocation2 + $0x1524] ss:$8 sps:$4 sm:$0xff]  }
 0x6cc   :  { %5439 = vmatpush2.bf16.msra.mxu1 %v11682_v61  ;;  %v11830_v61 = vld [vmem:[#allocation4 + $0x2e0] sm:$0xff]  }
 0x6cd   :  { %5847 = vmatprep.subr.bf16.mxu1 %v11687_v63  ;;  %v11732_v63 = vld [vmem:[#allocation2 + $0x1304] ss:$8 sps:$4 sm:$0xff]   ;;  %10643 = vmatpush3.bf16.msra.mxu0 %v11830_v61  ;;  %v11772_v61 = vld [vmem:[#allocation2 + $0x1520] ss:$8 sps:$4 sm:$0xff]  }
 0x6cf   :  { %5441 = vmatmul.mubr.bf16.vlgmr.msra.gmra.mxu1 %v12676_v32  ;;  %v10630_v8 = vpop.f32.mrf.mxu1 }
 0x6d0   :  { %5848 = vmatpush1.bf16.msra.mxu1 %v11685_v5  ;;  %5879 = vmatprep.mubr.bf16.mxu1 %v12560_v15  ;;  %v11730_v5 = vld [vmem:[#allocation2 + $0x1300] ss:$8 sps:$4 sm:$0xff]  }
 0x6d1   :  { %v10631_v11 = vpop.f32.mrf.mxu1  ;;  %5849 = vmatprep.subr.bf16.mxu1 %v11690_v7  ;;  %v11834_v7 = vld [vmem:[#allocation4 + $0x318] sm:$0xff]  }
 0x6d2   :  { %v10632_v17 = vadd.f32 %v10631_v11, %v10630_v8  ;;  %v11835_v8 = vld [vmem:[#allocation4 + $0x2d8] sm:$0xff]   ;;  %10644 = vmatprep.subr.bf16.mxu0 %v11834_v7  ;;  %v11780_v7 = vld [vmem:[#allocation2 + $0x1504] ss:$8 sps:$4 sm:$0xff]  }
 0x6d3   :  { %v10633_v59 = vpop.f32.mrf.mxu1  ;;  %10645 = vmatpush3.bf16.msra.mxu0 %v11835_v8  ;;  %v11733_v11 = vld [vmem:[#allocation2 + $0x14f0] ss:$8 sps:$4 sm:$0xff]   ;;  %v11778_v8 = vld [vmem:[#allocation2 + $0x1500] ss:$8 sps:$4 sm:$0xff]  }
 0x6d4   :  { %v12700_v18 = vadd.f32 %v10632_v17, %v12657_v36  ;;  %5850 = vmatpush1.bf16.msra.mxu1 %v11688_v10  ;;  %v11703_v36 = vld [vmem:[#allocation2 + $0x1290] ss:$8 sps:$4 sm:$0xff]   ;;  %v11735_v10 = vld [vmem:[#allocation2 + $0x14f4] ss:$8 sps:$4 sm:$0xff]   ;;  %v11738_v17 = vld [vmem:[#allocation2 + $0x14e4] ss:$8 sps:$4 sm:$0xff]  }
 0x6d5   :  { %v10634_v20 = vpop.f32.mrf.mxu1  ;;  %5851 = vmatprep.subr.bf16.mxu1 %v11693_v13  ;;  %v11839_v13 = vld [vmem:[#allocation4 + $0x310] sm:$0xff]  }
 0x6d6   :  { %v11840_v59 = vld [vmem:[#allocation4 + $0x2d0] sm:$0xff]   ;;  %10646 = vmatprep.subr.bf16.mxu0 %v11839_v13  ;;  %v11736_v20 = vld [vmem:[#allocation2 + $0x14e0] ss:$8 sps:$4 sm:$0xff]   ;;  %v11786_v13 = vld [vmem:[#allocation2 + $0x16e4] ss:$8 sps:$4 sm:$0xff]  }
 0x6d7   :  { %10647 = vmatpush3.bf16.msra.mxu0 %v11840_v59  ;;  %v11784_v59 = vld [vmem:[#allocation2 + $0x16e0] ss:$8 sps:$4 sm:$0xff]  }
 0x6d8   :  { %5852 = vmatpush1.bf16.msra.mxu1 %v11691_v62 }
 0x6d9   :  { %5853 = vmatprep.subr.bf16.mxu1 %v11696_v42  ;;  %v11841_v42 = vld [vmem:[#allocation4 + $0x308] sm:$0xff]  }
 0x6da   :  { %10648 = vmatprep.subr.bf16.mxu0 %v11841_v42  ;;  %v11789_v42 = vld [vmem:[#allocation2 + $0x16d4] ss:$8 sps:$4 sm:$0xff]  }
 0x6dc   :  { %5854 = vmatpush1.bf16.msra.mxu1 %v11694_v21 }
 0x6dd   :  { %5855 = vmatprep.subr.bf16.mxu1 %v11699_v22  ;;  %v11741_v22 = vld [vmem:[#allocation2 + $0x14d4] ss:$8 sps:$4 sm:$0xff]  }
 0x6e0   :  { %5856 = vmatpush1.bf16.msra.mxu1 %v11697_v24  ;;  %v11842_v24 = vld [vmem:[#allocation4 + $0x2c8] sm:$0xff]  }
 0x6e1   :  { %5857 = vmatprep.subr.bf16.mxu1 %v11702_v25  ;;  %10649 = vmatpush3.bf16.msra.mxu0 %v11842_v24  ;;  %v11787_v24 = vld [vmem:[#allocation2 + $0x16d0] ss:$8 sps:$4 sm:$0xff]  }
 0x6e4   :  { %5858 = vmatpush1.bf16.msra.mxu1 %v11700_v26  ;;  %v11739_v26 = vld [vmem:[#allocation2 + $0x14d0] ss:$8 sps:$4 sm:$0xff]  }
 0x6e5   :  { %5859 = vmatprep.subr.bf16.mxu1 %v11705_v23  ;;  %v11843_v23 = vld [vmem:[#allocation4 + $0x300] sm:$0xff]  }
 0x6e6   :  { %10650 = vmatprep.subr.bf16.mxu0 %v11843_v23  ;;  %v11790_v23 = vld [vmem:[#allocation2 + $0x16c0] ss:$8 sps:$4 sm:$0xff]  }
 0x6e8   :  { %5860 = vmatpush1.bf16.msra.mxu1 %v11703_v36 }
 0x6e9   :  { %5861 = vmatprep.subr.bf16.mxu1 %v11708_v27  ;;  %v11744_v27 = vld [vmem:[#allocation2 + $0x14c4] ss:$8 sps:$4 sm:$0xff]  }
 0x6ec   :  { %5862 = vmatpush1.bf16.msra.mxu1 %v11706_v28  ;;  %v11844_v28 = vld [vmem:[#allocation4 + $0x2c0] sm:$0xff]  }
 0x6ed   :  { %5863 = vmatprep.subr.bf16.mxu1 %v11711_v29  ;;  %10651 = vmatpush3.bf16.msra.mxu0 %v11844_v28  ;;  %v11742_v29 = vld [vmem:[#allocation2 + $0x14c0] ss:$8 sps:$4 sm:$0xff]   ;;  %v11798_v28 = vld [vmem:[#allocation2 + $0x16a4] ss:$8 sps:$4 sm:$0xff]  }
 0x6f0   :  { %5864 = vmatpush2.bf16.msra.mxu1 %v11709_v33  ;;  %v11847_v33 = vld [vmem:[#allocation2 + $0x1274] ss:$8 sps:$4 sm:$0xff]  }
 0x6f1   :  { %5865 = vmatprep.subr.bf16.mxu1 %v11714_v54  ;;  %v11747_v54 = vld [vmem:[#allocation2 + $0x14b4] ss:$8 sps:$4 sm:$0xff]   ;;  %5968 = vmatprep.subr.bf16.mxu0 %v11847_v33 }
 0x6f2   :  { %v11801_v33 = vld [vmem:[#allocation2 + $0x1694] ss:$8 sps:$4 sm:$0xff]  }
 0x6f4   :  { %5866 = vmatpush2.bf16.msra.mxu1 %v11712_v48  ;;  %v11745_v48 = vld [vmem:[#allocation2 + $0x14b0] ss:$8 sps:$4 sm:$0xff]  }
 0x6f5   :  { %5867 = vmatprep.subr.bf16.mxu1 %v11717_v38  ;;  %v11750_v38 = vld [vmem:[#allocation2 + $0x14a4] ss:$8 sps:$4 sm:$0xff]  }
 0x6f8   :  { %5868 = vmatpush2.bf16.msra.mxu1 %v11715_v41  ;;  %v11748_v41 = vld [vmem:[#allocation2 + $0x14a0] ss:$8 sps:$4 sm:$0xff]  }
 0x6f9   :  { %5869 = vmatprep.subr.bf16.mxu1 %v11720_v50  ;;  %v11753_v50 = vld [vmem:[#allocation2 + $0x1494] ss:$8 sps:$4 sm:$0xff]  }
 0x6fc   :  { %5870 = vmatpush2.bf16.msra.mxu1 %v11718_v9  ;;  %v11751_v9 = vld [vmem:[#allocation2 + $0x1490] ss:$8 sps:$4 sm:$0xff]  }
 0x6fd   :  { %5871 = vmatprep.subr.bf16.mxu1 %v11723_v46  ;;  %v11759_v46 = vld [vmem:[#allocation2 + $0x1574] ss:$8 sps:$4 sm:$0xff]  }
 0x700   :  { %5872 = vmatpush2.bf16.msra.mxu1 %v11721_v34  ;;  %v11757_v34 = vld [vmem:[#allocation2 + $0x1570] ss:$8 sps:$4 sm:$0xff]  }
 0x701   :  { %5873 = vmatprep.subr.bf16.mxu1 %v11726_v51  ;;  %v11765_v51 = vld [vmem:[#allocation2 + $0x1554] ss:$8 sps:$4 sm:$0xff]  }
 0x704   :  { %5874 = vmatpush2.bf16.msra.mxu1 %v11724_v14  ;;  %v11763_v14 = vld [vmem:[#allocation2 + $0x1550] ss:$8 sps:$4 sm:$0xff]  }
 0x705   :  { %5875 = vmatprep.subr.bf16.mxu1 %v11729_v56  ;;  %v11771_v56 = vld [vmem:[#allocation2 + $0x1534] ss:$8 sps:$4 sm:$0xff]  }
 0x708   :  { %5876 = vmatpush2.bf16.msra.mxu1 %v11727_v57  ;;  %v11769_v57 = vld [vmem:[#allocation2 + $0x1530] ss:$8 sps:$4 sm:$0xff]  }
 0x709   :  { %5877 = vmatprep.subr.bf16.mxu1 %v11732_v63  ;;  %v11777_v63 = vld [vmem:[#allocation2 + $0x1514] ss:$8 sps:$4 sm:$0xff]  }
 0x70c   :  { %5878 = vmatpush2.bf16.msra.mxu1 %v11730_v5  ;;  %v11775_v5 = vld [vmem:[#allocation2 + $0x1510] ss:$8 sps:$4 sm:$0xff]  }
 0x70d   :  { %6436 = vmatprep.subr.bf16.mxu1 %v11735_v10  ;;  %v11783_v10 = vld [vmem:[#allocation2 + $0x16f4] ss:$8 sps:$4 sm:$0xff]  }
 0x70f   :  { %v12702_v62 = vpop.f32.mrf.mxu1  ;;  %5880 = vmatmul.mubr.bf16.vlgmr.msra.gmra.mxu1 %v12562_v16 }
 0x710   :  { %6437 = vmatpush1.bf16.msra.mxu1 %v11733_v11  ;;  %6468 = vmatprep.mubr.bf16.mxu1 %v12602_v45  ;;  %v11781_v11 = vld [vmem:[#allocation2 + $0x16f0] ss:$8 sps:$4 sm:$0xff]  }
 0x711   :  { %v12706_v21 = vpop.f32.mrf.mxu1  ;;  %6438 = vmatprep.subr.bf16.mxu1 %v11738_v17 }
 0x713   :  { %v4387_v25 = vpop.f32.mrf.mxu1 }
 0x714   :  { %6439 = vmatpush1.bf16.msra.mxu1 %v11736_v20 }
 0x715   :  { %v4388_v36 = vpop.f32.mrf.mxu1  ;;  %6440 = vmatprep.subr.bf16.mxu1 %v11741_v22 }
 0x716   :  { %v11795_v36 = vld [vmem:[#allocation2 + $0x16b4] ss:$8 sps:$4 sm:$0xff]  }
 0x718   :  { %6441 = vmatpush1.bf16.msra.mxu1 %v11739_v26  ;;  %v11792_v26 = vld [vmem:[#allocation2 + $0x16c4] ss:$8 sps:$4 sm:$0xff]  }
 0x719   :  { %6442 = vmatprep.subr.bf16.mxu1 %v11744_v27  ;;  %v11793_v27 = vld [vmem:[#allocation2 + $0x16b0] ss:$8 sps:$4 sm:$0xff]  }
 0x71c   :  { %6443 = vmatpush1.bf16.msra.mxu1 %v11742_v29  ;;  %v11796_v29 = vld [vmem:[#allocation2 + $0x16a0] ss:$8 sps:$4 sm:$0xff]  }
 0x71d   :  { %6444 = vmatprep.subr.bf16.mxu1 %v11747_v54  ;;  %v11799_v54 = vld [vmem:[#allocation2 + $0x1690] ss:$8 sps:$4 sm:$0xff]  }
 0x720   :  { %6445 = vmatpush1.bf16.msra.mxu1 %v11745_v48  ;;  %v11804_v48 = vld [vmem:[#allocation2 + $0x1684] ss:$8 sps:$4 sm:$0xff]  }
 0x721   :  { %6446 = vmatprep.subr.bf16.mxu1 %v11750_v38  ;;  %v11802_v38 = vld [vmem:[#allocation2 + $0x1680] ss:$8 sps:$4 sm:$0xff]  }
 0x724   :  { %6447 = vmatpush1.bf16.msra.mxu1 %v11748_v41  ;;  %v11807_v41 = vld [vmem:[#allocation2 + $0x1774] ss:$8 sps:$4 sm:$0xff]  }
 0x725   :  { %6448 = vmatprep.subr.bf16.mxu1 %v11753_v50  ;;  %v11805_v50 = vld [vmem:[#allocation2 + $0x1770] ss:$8 sps:$4 sm:$0xff]  }
 0x728   :  { %6449 = vmatpush1.bf16.msra.mxu1 %v11751_v9  ;;  %v11810_v9 = vld [vmem:[#allocation2 + $0x1764] ss:$8 sps:$4 sm:$0xff]  }
 0x729   :  { %6450 = vmatprep.subr.bf16.mxu1 %v11756_v43  ;;  %v11808_v43 = vld [vmem:[#allocation2 + $0x1760] ss:$8 sps:$4 sm:$0xff]  }
 0x72c   :  { %6451 = vmatpush1.bf16.msra.mxu1 %v11754_v52  ;;  %v11813_v52 = vld [vmem:[#allocation2 + $0x1754] ss:$8 sps:$4 sm:$0xff]  }
 0x72d   :  { %6452 = vmatprep.subr.bf16.mxu1 %v11759_v46  ;;  %v11811_v46 = vld [vmem:[#allocation2 + $0x1750] ss:$8 sps:$4 sm:$0xff]  }
 0x730   :  { %6453 = vmatpush2.bf16.msra.mxu1 %v11757_v34  ;;  %v11818_v34 = vld [vmem:[#allocation2 + $0x1744] ss:$8 sps:$4 sm:$0xff]  }
 0x731   :  { %6454 = vmatprep.subr.bf16.mxu1 %v11762_v39  ;;  %v11816_v39 = vld [vmem:[#allocation2 + $0x1740] ss:$8 sps:$4 sm:$0xff]  }
 0x734   :  { %6455 = vmatpush2.bf16.msra.mxu1 %v11760_v49  ;;  %v11823_v49 = vld [vmem:[#allocation2 + $0x1734] ss:$8 sps:$4 sm:$0xff]  }
 0x735   :  { %6456 = vmatprep.subr.bf16.mxu1 %v11765_v51  ;;  %v11821_v51 = vld [vmem:[#allocation2 + $0x1730] ss:$8 sps:$4 sm:$0xff]  }
 0x738   :  { %6457 = vmatpush2.bf16.msra.mxu1 %v11763_v14  ;;  %v11828_v14 = vld [vmem:[#allocation2 + $0x1724] ss:$8 sps:$4 sm:$0xff]  }
 0x739   :  { %6458 = vmatprep.subr.bf16.mxu1 %v11768_v53  ;;  %v11826_v53 = vld [vmem:[#allocation2 + $0x1720] ss:$8 sps:$4 sm:$0xff]  }
 0x73c   :  { %6459 = vmatpush2.bf16.msra.mxu1 %v11766_v55  ;;  %v11833_v55 = vld [vmem:[#allocation2 + $0x1714] ss:$8 sps:$4 sm:$0xff]  }
 0x73d   :  { %6460 = vmatprep.subr.bf16.mxu1 %v11771_v56  ;;  %v4505_v56 = vadd.f32 %v12681_v60, %v12702_v62 }
 0x740   :  { %6461 = vmatpush2.bf16.msra.mxu1 %v11769_v57  ;;  %v11831_v57 = vld [vmem:[#allocation2 + $0x1710] ss:$8 sps:$4 sm:$0xff]  }
 0x741   :  { %6462 = vmatprep.subr.bf16.mxu1 %v11774_v58  ;;  %v11838_v58 = vld [vmem:[#allocation2 + $0x1704] ss:$8 sps:$4 sm:$0xff]  }
 0x744   :  { %6463 = vmatpush2.bf16.msra.mxu1 %v11772_v61  ;;  %v4507_v61 = vadd.f32 %v12683_v3, %v12706_v21 }
 0x745   :  { %6464 = vmatprep.subr.bf16.mxu1 %v11777_v63  ;;  %v4744_v63 = vadd.f32 %v12687_v12, %v4505_v56  ;;  %v11883_v56 = vld [vmem:[#allocation2 + $0x13b4] ss:$8 sps:$4 sm:$0xff]  }
 0x748   :  { %6465 = vmatpush2.bf16.msra.mxu1 %v11775_v5  ;;  %v11836_v5 = vld [vmem:[#allocation2 + $0x1700] ss:$8 sps:$4 sm:$0xff]  }
 0x749   :  { %6466 = vmatprep.subr.bf16.mxu1 %v11780_v7 }
 0x74c   :  { %6467 = vmatpush2.bf16.msra.mxu1 %v11778_v8  ;;  %v4745_v8 = vadd.f32 %v12689_v47, %v4507_v61  ;;  %v11884_v61 = vld [vmem:[#allocation2 + $0x13a0] ss:$8 sps:$4 sm:$0xff]  }
 0x74d   :  { %6906 = vmatprep.subr.bf16.mxu1 %v11783_v10  ;;  %v5452_v10 = vld [vmem:[#allocation6 + $0x5] ss:$8 sm:$0x3] }
 0x74e   :  { %v5457_v62 = vrot.slane %v5452_v10, %v12554_v1  ;;  %v5461_v21 = vrot.slane %v5452_v10, %v12556_v2  ;;  %v11892_v10 = vld [vmem:[#allocation2 + $0x1384] ss:$8 sps:$4 sm:$0xff]  }
 0x74f   :  { %v12708_v17 = vpop.f32.mrf.mxu1  ;;  %6469 = vmatmul.mubr.bf16.vlgmr.msra.gmra.mxu1 %v12604_v37 }
 0x750   :  { %6907 = vmatpush1.bf16.msra.mxu1 %v11781_v11  ;;  %6938 = vmatprep.mubr.bf16.mxu1 %v12674_v44  ;;  %v4979_v7 = vadd.f32 %v12708_v17, %v4744_v63  ;;  %v11889_v63 = vld [vmem:[#allocation2 + $0x1394] ss:$8 sps:$4 sm:$0xff]  }
 0x751   :  { %v12712_v20 = vpop.f32.mrf.mxu1  ;;  %6908 = vmatprep.subr.bf16.mxu1 %v11786_v13 }
 0x752   :  { %v4980_v11 = vadd.f32 %v12712_v20, %v4745_v8  ;;  %v5214_v60 = vadd.f32 %v12693_v30, %v4979_v7  ;;  %v11845_v30 = vld [vmem:[#allocation2 + $0x1270] ss:$8 sps:$4 sm:$0xff]  }
 0x753   :  { %v4976_v22 = vpop.f32.mrf.mxu1  ;;  %v11887_v7 = vld [vmem:[#allocation2 + $0x1390] ss:$8 sps:$4 sm:$0xff]  }
 0x754   :  { %6909 = vmatpush1.bf16.msra.mxu1 %v11784_v59  ;;  %v5215_v12 = vadd.f32 %v12695_v35, %v4980_v11  ;;  %v11848_v35 = vld [vmem:[#allocation2 + $0x1260] ss:$8 sps:$4 sm:$0xff]  }
 0x755   :  { %v4977_v25 = vpop.f32.mrf.mxu1  ;;  %6910 = vmatprep.subr.bf16.mxu1 %v11789_v42 }
 0x758   :  { %6911 = vmatpush1.bf16.msra.mxu1 %v11787_v24 }
 0x759   :  { %6912 = vmatprep.subr.bf16.mxu1 %v11792_v26 }
 0x75c   :  { %6913 = vmatpush1.bf16.msra.mxu1 %v11790_v23 }
 0x75d   :  { %6914 = vmatprep.subr.bf16.mxu1 %v11795_v36  ;;  %v11850_v36 = vld [vmem:[#allocation2 + $0x1264] ss:$8 sps:$4 sm:$0xff]  }
 0x760   :  { %6915 = vmatpush1.bf16.msra.mxu1 %v11793_v27  ;;  %v11853_v27 = vld [vmem:[#allocation2 + $0x1254] ss:$8 sps:$4 sm:$0xff]  }
 0x761   :  { %6916 = vmatprep.subr.bf16.mxu1 %v11798_v28  ;;  %v11851_v28 = vld [vmem:[#allocation2 + $0x1250] ss:$8 sps:$4 sm:$0xff]  }
 0x764   :  { %6917 = vmatpush1.bf16.msra.mxu1 %v11796_v29  ;;  %v11856_v29 = vld [vmem:[#allocation2 + $0x1244] ss:$8 sps:$4 sm:$0xff]  }
 0x765   :  { %6918 = vmatprep.subr.bf16.mxu1 %v11801_v33  ;;  %v11854_v33 = vld [vmem:[#allocation2 + $0x1240] ss:$8 sps:$4 sm:$0xff]  }
 0x768   :  { %6919 = vmatpush1.bf16.msra.mxu1 %v11799_v54  ;;  %v11859_v54 = vld [vmem:[#allocation2 + $0x1234] ss:$8 sps:$4 sm:$0xff]  }
 0x769   :  { %6920 = vmatprep.subr.bf16.mxu1 %v11804_v48  ;;  %v11857_v48 = vld [vmem:[#allocation2 + $0x1230] ss:$8 sps:$4 sm:$0xff]  }
 0x76c   :  { %6921 = vmatpush1.bf16.msra.mxu1 %v11802_v38  ;;  %v11862_v38 = vld [vmem:[#allocation2 + $0x1224] ss:$8 sps:$4 sm:$0xff]  }
 0x76d   :  { %6922 = vmatprep.subr.bf16.mxu1 %v11807_v41  ;;  %v11860_v41 = vld [vmem:[#allocation2 + $0x1220] ss:$8 sps:$4 sm:$0xff]  }
 0x770   :  { %6923 = vmatpush2.bf16.msra.mxu1 %v11805_v50  ;;  %v11865_v50 = vld [vmem:[#allocation2 + $0x1214] ss:$8 sps:$4 sm:$0xff]  }
 0x771   :  { %6924 = vmatprep.subr.bf16.mxu1 %v11810_v9  ;;  %v11863_v9 = vld [vmem:[#allocation2 + $0x1210] ss:$8 sps:$4 sm:$0xff]  }
 0x774   :  { %6925 = vmatpush2.bf16.msra.mxu1 %v11808_v43  ;;  %v11868_v43 = vld [vmem:[#allocation2 + $0x1204] ss:$8 sps:$4 sm:$0xff]  }
 0x775   :  { %6926 = vmatprep.subr.bf16.mxu1 %v11813_v52  ;;  %v11866_v52 = vld [vmem:[#allocation2 + $0x1200] ss:$8 sps:$4 sm:$0xff]  }
 0x778   :  { %6927 = vmatpush2.bf16.msra.mxu1 %v11811_v46  ;;  %v11871_v46 = vld [vmem:[#allocation2 + $0x13f4] ss:$8 sps:$4 sm:$0xff]  }
 0x779   :  { %6928 = vmatprep.subr.bf16.mxu1 %v11818_v34  ;;  %v11869_v34 = vld [vmem:[#allocation2 + $0x13f0] ss:$8 sps:$4 sm:$0xff]  }
 0x77c   :  { %6929 = vmatpush2.bf16.msra.mxu1 %v11816_v39  ;;  %v11874_v39 = vld [vmem:[#allocation2 + $0x13e4] ss:$8 sps:$4 sm:$0xff]  }
 0x77d   :  { %6930 = vmatprep.subr.bf16.mxu1 %v11823_v49  ;;  %v11872_v49 = vld [vmem:[#allocation2 + $0x13e0] ss:$8 sps:$4 sm:$0xff]  }
 0x780   :  { %6931 = vmatpush2.bf16.msra.mxu1 %v11821_v51  ;;  %v11877_v51 = vld [vmem:[#allocation2 + $0x13d4] ss:$8 sps:$4 sm:$0xff]  }
 0x781   :  { %6932 = vmatprep.subr.bf16.mxu1 %v11828_v14  ;;  %v11875_v14 = vld [vmem:[#allocation2 + $0x13d0] ss:$8 sps:$4 sm:$0xff]  }
 0x784   :  { %6933 = vmatpush2.bf16.msra.mxu1 %v11826_v53  ;;  %v11880_v53 = vld [vmem:[#allocation2 + $0x13c4] ss:$8 sps:$4 sm:$0xff]  }
 0x785   :  { %6934 = vmatprep.subr.bf16.mxu1 %v11833_v55  ;;  %v11878_v55 = vld [vmem:[#allocation2 + $0x13c0] ss:$8 sps:$4 sm:$0xff]  }
 0x788   :  { %6935 = vmatpush2.bf16.msra.mxu1 %v11831_v57  ;;  %v11881_v57 = vld [vmem:[#allocation2 + $0x13b0] ss:$8 sps:$4 sm:$0xff]  }
 0x789   :  { %6936 = vmatprep.subr.bf16.mxu1 %v11838_v58  ;;  %v11886_v58 = vld [vmem:[#allocation2 + $0x13a4] ss:$8 sps:$4 sm:$0xff]  }
 0x78c   :  { %6937 = vmatpush2.bf16.msra.mxu1 %v11836_v5 }
 0x78f   :  { %v5442_v13 = vpop.f32.mrf.mxu1  ;;  %6939 = vmatmul.mubr.bf16.vlgmr.msra.gmra.mxu1 %v12676_v32 }
 0x790   :  { %v5449_v3 = vadd.f32 %v5442_v13, %v5214_v60  ;;  %v11890_v60 = vld [vmem:[#allocation2 + $0x1380] ss:$8 sps:$4 sm:$0xff]   ;;  %v11895_v13 = vld [vmem:[#allocation2 + $0x1474] ss:$8 sps:$4 sm:$0xff]  }
 0x791   :  { %v5444_v59 = vpop.f32.mrf.mxu1 }
 0x792   :  { %v5464_v17 = vadd.f32 %v5457_v62, %v5449_v3  ;;  %v5450_v42 = vadd.f32 %v5444_v59, %v5215_v12  ;;  %v11893_v3 = vld [vmem:[#allocation2 + $0x1470] ss:$8 sps:$4 sm:$0xff]   ;;  %v11898_v12 = vld [vmem:[#allocation2 + $0x1464] ss:$8 sps:$4 sm:$0xff]   ;;  %v11901_v59 = vld [vmem:[#allocation2 + $0x1454] ss:$8 sps:$4 sm:$0xff]  }
 0x793   :  { %v5446_v47 = vpop.f32.mrf.mxu1 }
 0x794   :  { %v5465_v22 = vadd.f32 %v5461_v21, %v5450_v42  ;;  %v5466_v24 = vmax.f32 %v5464_v17, 0.0  ;;  %v11896_v21 = vld [vmem:[#allocation2 + $0x1460] ss:$8 sps:$4 sm:$0xff]   ;;  %v11899_v17 = vld [vmem:[#allocation2 + $0x1450] ss:$8 sps:$4 sm:$0xff]  }
 0x795   :  { %v5447_v20 = vpop.f32.mrf.mxu1  ;;  %v11904_v42 = vld [vmem:[#allocation2 + $0x1444] ss:$8 sps:$4 sm:$0xff]   ;;  %v11902_v47 = vld [vmem:[#allocation2 + $0x1440] ss:$8 sps:$4 sm:$0xff]  }
 0x796   :  { %v5467_v25 = vmax.f32 %v5465_v22, 0.0  ;;  %v12729_v23 = vpack.c.bf16 %v5466_v24, %v5466_v24  ;;  %v11907_v22 = vld [vmem:[#allocation2 + $0x1434] ss:$8 sps:$4 sm:$0xff]   ;;  %v11905_v24 = vld [vmem:[#allocation2 + $0x1430] ss:$8 sps:$4 sm:$0xff]  }
 0x797   :  { %v11910_v20 = vld [vmem:[#allocation2 + $0x1424] ss:$8 sps:$4 sm:$0xff]  }
 0x798   :  { %v12727_v26 = vpack.c.bf16 %v5467_v25, %v5467_v25  ;;  %v11908_v25 = vld [vmem:[#allocation2 + $0x1420] ss:$8 sps:$4 sm:$0xff]  }
 0x79a   :  { %5630 = vmatprep.mubr.bf16.mxu0 %v12727_v26 }
 0x79b   :  { %5631 = vmatmul.mubr.bf16.vlgmr.msra.gmra.mxu0 %v12729_v23 }
 0x79c   :  { %5969 = vmatpush1.bf16.msra.mxu0 %v11845_v30  ;;  %6000 = vmatprep.mubr.bf16.mxu0 %v12499_v0  ;;  %v11913_v30 = vld [vmem:[#allocation2 + $0x1414] ss:$8 sps:$4 sm:$0xff]  }
 0x79d   :  { %5970 = vmatprep.subr.bf16.mxu0 %v11850_v36  ;;  %v11911_v36 = vld [vmem:[#allocation2 + $0x1410] ss:$8 sps:$4 sm:$0xff]  }
 0x7a0   :  { %5971 = vmatpush1.bf16.msra.mxu0 %v11848_v35  ;;  %v11916_v35 = vld [vmem:[#allocation2 + $0x1404] ss:$8 sps:$4 sm:$0xff]  }
 0x7a1   :  { %5972 = vmatprep.subr.bf16.mxu0 %v11853_v27  ;;  %v11914_v27 = vld [vmem:[#allocation2 + $0x1400] ss:$8 sps:$4 sm:$0xff]  }
 0x7a4   :  { %5973 = vmatpush1.bf16.msra.mxu0 %v11851_v28  ;;  %v11919_v28 = vld [vmem:[#allocation2 + $0x15f4] ss:$8 sps:$4 sm:$0xff]  }
 0x7a5   :  { %5974 = vmatprep.subr.bf16.mxu0 %v11856_v29  ;;  %v11917_v29 = vld [vmem:[#allocation2 + $0x15f0] ss:$8 sps:$4 sm:$0xff]  }
 0x7a8   :  { %5975 = vmatpush1.bf16.msra.mxu0 %v11854_v33  ;;  %v11922_v33 = vld [vmem:[#allocation2 + $0x15e4] ss:$8 sps:$4 sm:$0xff]  }
 0x7a9   :  { %5976 = vmatprep.subr.bf16.mxu0 %v11859_v54  ;;  %v11920_v54 = vld [vmem:[#allocation2 + $0x15e0] ss:$8 sps:$4 sm:$0xff]  }
 0x7ac   :  { %5977 = vmatpush1.bf16.msra.mxu0 %v11857_v48  ;;  %v11925_v48 = vld [vmem:[#allocation2 + $0x15d4] ss:$8 sps:$4 sm:$0xff]  }
 0x7ad   :  { %5978 = vmatprep.subr.bf16.mxu0 %v11862_v38  ;;  %v11923_v38 = vld [vmem:[#allocation2 + $0x15d0] ss:$8 sps:$4 sm:$0xff]  }
 0x7b0   :  { %5979 = vmatpush1.bf16.msra.mxu0 %v11860_v41  ;;  %v11928_v41 = vld [vmem:[#allocation2 + $0x15c4] ss:$8 sps:$4 sm:$0xff]  }
 0x7b1   :  { %5980 = vmatprep.subr.bf16.mxu0 %v11865_v50  ;;  %v11926_v50 = vld [vmem:[#allocation2 + $0x15c0] ss:$8 sps:$4 sm:$0xff]  }
 0x7b4   :  { %5981 = vmatpush1.bf16.msra.mxu0 %v11863_v9  ;;  %v11931_v9 = vld [vmem:[#allocation2 + $0x15b4] ss:$8 sps:$4 sm:$0xff]  }
 0x7b5   :  { %5982 = vmatprep.subr.bf16.mxu0 %v11868_v43  ;;  %v11929_v43 = vld [vmem:[#allocation2 + $0x15b0] ss:$8 sps:$4 sm:$0xff]  }
 0x7b8   :  { %5983 = vmatpush1.bf16.msra.mxu0 %v11866_v52  ;;  %v11934_v52 = vld [vmem:[#allocation2 + $0x15a4] ss:$8 sps:$4 sm:$0xff]  }
 0x7b9   :  { %6201 = vmatprep.subr.bf16.mxu0 %v11871_v46  ;;  %v11932_v46 = vld [vmem:[#allocation2 + $0x15a0] ss:$8 sps:$4 sm:$0xff]  }
 0x7bb   :  { %6001 = vmatmul.mubr.bf16.vlgmr.msra.gmra.mxu0 %v12548_v31 }
 0x7bc   :  { %6202 = vmatpush1.bf16.msra.mxu0 %v11869_v34  ;;  %6233 = vmatprep.mubr.bf16.mxu0 %v12576_v4  ;;  %v11937_v34 = vld [vmem:[#allocation2 + $0x1594] ss:$8 sps:$4 sm:$0xff]  }
 0x7bd   :  { %6203 = vmatprep.subr.bf16.mxu0 %v11874_v39 }
 0x7c0   :  { %6204 = vmatpush1.bf16.msra.mxu0 %v11872_v49  ;;  %v11935_v49 = vld [vmem:[#allocation2 + $0x1590] ss:$8 sps:$4 sm:$0xff]  }
 0x7c1   :  { %6205 = vmatprep.subr.bf16.mxu0 %v11877_v51 }
 0x7c4   :  { %6206 = vmatpush1.bf16.msra.mxu0 %v11875_v14  ;;  %v11940_v14 = vld [vmem:[#allocation2 + $0x1584] ss:$8 sps:$4 sm:$0xff]  }
 0x7c5   :  { %6207 = vmatprep.subr.bf16.mxu0 %v11880_v53 }
 0x7c8   :  { %6208 = vmatpush1.bf16.msra.mxu0 %v11878_v55  ;;  %v11938_v55 = vld [vmem:[#allocation2 + $0x1580] ss:$8 sps:$4 sm:$0xff]  }
 0x7c9   :  { %6209 = vmatprep.subr.bf16.mxu0 %v11883_v56 }
 0x7cc   :  { %6210 = vmatpush1.bf16.msra.mxu0 %v11881_v57  ;;  %v11943_v57 = vld [vmem:[#allocation2 + $0x1674] ss:$8 sps:$4 sm:$0xff]  }
 0x7cd   :  { %6211 = vmatprep.subr.bf16.mxu0 %v11886_v58  ;;  %v11941_v58 = vld [vmem:[#allocation2 + $0x1670] ss:$8 sps:$4 sm:$0xff]  }
 0x7cf   :  { %v12736_v5 = vpop.f32.mrf.mxu1 }
 0x7d0   :  { %6212 = vmatpush1.bf16.msra.mxu0 %v11884_v61  ;;  %v11946_v61 = vld [vmem:[#allocation2 + $0x1664] ss:$8 sps:$4 sm:$0xff]  }
 0x7d1   :  { %v12738_v8 = vpop.f32.mrf.mxu1  ;;  %6213 = vmatprep.subr.bf16.mxu0 %v11889_v63  ;;  %v11944_v63 = vld [vmem:[#allocation2 + $0x1660] ss:$8 sps:$4 sm:$0xff]  }
 0x7d3   :  { %v5885_v11 = vpop.f32.mrf.mxu1 }
 0x7d4   :  { %6214 = vmatpush1.bf16.msra.mxu0 %v11887_v7  ;;  %v11949_v7 = vld [vmem:[#allocation2 + $0x1654] ss:$8 sps:$4 sm:$0xff]   ;;  %v11952_v11 = vld [vmem:[#allocation2 + $0x1644] ss:$8 sps:$4 sm:$0xff]  }
 0x7d5   :  { %v5886_v62 = vpop.f32.mrf.mxu1  ;;  %6215 = vmatprep.subr.bf16.mxu0 %v11892_v10  ;;  %v11947_v10 = vld [vmem:[#allocation2 + $0x1650] ss:$8 sps:$4 sm:$0xff]  }
 0x7d6   :  { %v11955_v62 = vld [vmem:[#allocation2 + $0x1634] ss:$8 sps:$4 sm:$0xff]  }
 0x7d8   :  { %6216 = vmatpush1.bf16.msra.mxu0 %v11890_v60  ;;  %v11950_v60 = vld [vmem:[#allocation2 + $0x1640] ss:$8 sps:$4 sm:$0xff]  }
 0x7d9   :  { %6217 = vmatprep.subr.bf16.mxu0 %v11895_v13  ;;  %v11953_v13 = vld [vmem:[#allocation2 + $0x1630] ss:$8 sps:$4 sm:$0xff]  }
 0x7dc   :  { %6218 = vmatpush2.bf16.msra.mxu0 %v11893_v3  ;;  %v11958_v3 = vld [vmem:[#allocation2 + $0x1624] ss:$8 sps:$4 sm:$0xff]  }
 0x7dd   :  { %6219 = vmatprep.subr.bf16.mxu0 %v11898_v12  ;;  %v11956_v12 = vld [vmem:[#allocation2 + $0x1620] ss:$8 sps:$4 sm:$0xff]  }
 0x7e0   :  { %6220 = vmatpush2.bf16.msra.mxu0 %v11896_v21  ;;  %v11961_v21 = vld [vmem:[#allocation2 + $0x1614] ss:$8 sps:$4 sm:$0xff]  }
 0x7e1   :  { %6221 = vmatprep.subr.bf16.mxu0 %v11901_v59  ;;  %v11959_v59 = vld [vmem:[#allocation2 + $0x1610] ss:$8 sps:$4 sm:$0xff]  }
 0x7e4   :  { %6222 = vmatpush2.bf16.msra.mxu0 %v11899_v17  ;;  %v11964_v17 = vld [vmem:[#allocation2 + $0x1604] ss:$8 sps:$4 sm:$0xff]  }
 0x7e5   :  { %6223 = vmatprep.subr.bf16.mxu0 %v11904_v42  ;;  %v11962_v42 = vld [vmem:[#allocation2 + $0x1600] ss:$8 sps:$4 sm:$0xff]  }
 0x7e8   :  { %6224 = vmatpush2.bf16.msra.mxu0 %v11902_v47  ;;  %v11967_v47 = vld [vmem:[#allocation2 + $0x17f4] ss:$8 sps:$4 sm:$0xff]  }
 0x7e9   :  { %6225 = vmatprep.subr.bf16.mxu0 %v11907_v22  ;;  %v11965_v22 = vld [vmem:[#allocation2 + $0x17f0] ss:$8 sps:$4 sm:$0xff]  }
 0x7ec   :  { %6226 = vmatpush2.bf16.msra.mxu0 %v11905_v24  ;;  %v11970_v24 = vld [vmem:[#allocation2 + $0x17e4] ss:$8 sps:$4 sm:$0xff]  }
 0x7ed   :  { %6227 = vmatprep.subr.bf16.mxu0 %v11910_v20  ;;  %v11968_v20 = vld [vmem:[#allocation2 + $0x17e0] ss:$8 sps:$4 sm:$0xff]  }
 0x7f0   :  { %6228 = vmatpush2.bf16.msra.mxu0 %v11908_v25  ;;  %v11973_v25 = vld [vmem:[#allocation2 + $0x17d4] ss:$8 sps:$4 sm:$0xff]  }
 0x7f1   :  { %6229 = vmatprep.subr.bf16.mxu0 %v11913_v30  ;;  %v11971_v30 = vld [vmem:[#allocation2 + $0x17d0] ss:$8 sps:$4 sm:$0xff]  }
 0x7f4   :  { %6230 = vmatpush2.bf16.msra.mxu0 %v11911_v36  ;;  %v11976_v36 = vld [vmem:[#allocation2 + $0x17c4] ss:$8 sps:$4 sm:$0xff]  }
 0x7f5   :  { %6231 = vmatprep.subr.bf16.mxu0 %v11916_v35  ;;  %v11974_v35 = vld [vmem:[#allocation2 + $0x17c0] ss:$8 sps:$4 sm:$0xff]  }
 0x7f8   :  { %6232 = vmatpush2.bf16.msra.mxu0 %v11914_v27  ;;  %v11979_v27 = vld [vmem:[#allocation2 + $0x17b4] ss:$8 sps:$4 sm:$0xff]  }
 0x7f9   :  { %6671 = vmatprep.subr.bf16.mxu0 %v11919_v28  ;;  %v11977_v28 = vld [vmem:[#allocation2 + $0x17b0] ss:$8 sps:$4 sm:$0xff]  }
 0x7fb   :  { %6234 = vmatmul.mubr.bf16.vlgmr.msra.gmra.mxu0 %v12578_v6 }
 0x7fc   :  { %6672 = vmatpush1.bf16.msra.mxu0 %v11917_v29  ;;  %6703 = vmatprep.mubr.bf16.mxu0 %v12633_v19  ;;  %v11982_v29 = vld [vmem:[#allocation2 + $0x17a4] ss:$8 sps:$4 sm:$0xff]  }
 0x7fd   :  { %6673 = vmatprep.subr.bf16.mxu0 %v11922_v33  ;;  %v11980_v33 = vld [vmem:[#allocation2 + $0x17a0] ss:$8 sps:$4 sm:$0xff]  }
 0x800   :  { %6674 = vmatpush1.bf16.msra.mxu0 %v11920_v54  ;;  %v11985_v54 = vld [vmem:[#allocation2 + $0x1794] ss:$8 sps:$4 sm:$0xff]  }
 0x801   :  { %6675 = vmatprep.subr.bf16.mxu0 %v11925_v48 }
 0x804   :  { %6676 = vmatpush1.bf16.msra.mxu0 %v11923_v38  ;;  %v11983_v38 = vld [vmem:[#allocation2 + $0x1790] ss:$8 sps:$4 sm:$0xff]  }
 0x805   :  { %6677 = vmatprep.subr.bf16.mxu0 %v11928_v41 }
 0x808   :  { %6678 = vmatpush1.bf16.msra.mxu0 %v11926_v50  ;;  %v11988_v50 = vld [vmem:[#allocation2 + $0x1784] ss:$8 sps:$4 sm:$0xff]  }
 0x809   :  { %6679 = vmatprep.subr.bf16.mxu0 %v11931_v9 }
 0x80c   :  { %6680 = vmatpush1.bf16.msra.mxu0 %v11929_v43  ;;  %v11986_v43 = vld [vmem:[#allocation2 + $0x1780] ss:$8 sps:$4 sm:$0xff]  }
 0x80d   :  { %6681 = vmatprep.subr.bf16.mxu0 %v11934_v52 }
 0x80f   :  { %v12742_v39 = vpop.f32.mrf.mxu1 }
 0x810   :  { %6682 = vmatpush1.bf16.msra.mxu0 %v11932_v46  ;;  %v11991_v46 = vld [vmem:[#allocation2 + $0x1874] ss:$8 sps:$4 sm:$0xff]  }
 0x811   :  { %v12744_v51 = vpop.f32.mrf.mxu1  ;;  %6683 = vmatprep.subr.bf16.mxu0 %v11937_v34  ;;  %v11989_v34 = vld [vmem:[#allocation2 + $0x1870] ss:$8 sps:$4 sm:$0xff]  }
 0x813   :  { %v6474_v53 = vpop.f32.mrf.mxu1 }
 0x814   :  { %6684 = vmatpush1.bf16.msra.mxu0 %v11935_v49  ;;  %v11994_v49 = vld [vmem:[#allocation2 + $0x1864] ss:$8 sps:$4 sm:$0xff]   ;;  %v11992_v53 = vld [vmem:[#allocation2 + $0x1860] ss:$8 sps:$4 sm:$0xff]  }
 0x815   :  { %v6475_v56 = vpop.f32.mrf.mxu1  ;;  %6685 = vmatprep.subr.bf16.mxu0 %v11940_v14 }
 0x816   :  { %v11997_v56 = vld [vmem:[#allocation2 + $0x1854] ss:$8 sps:$4 sm:$0xff]  }
 0x818   :  { %6686 = vmatpush1.bf16.msra.mxu0 %v11938_v55 }
 0x819   :  { %6687 = vmatprep.subr.bf16.mxu0 %v11943_v57 }
 0x81c   :  { %6688 = vmatpush2.bf16.msra.mxu0 %v11941_v58 }
 0x81d   :  { %6689 = vmatprep.subr.bf16.mxu0 %v11946_v61 }
 0x820   :  { %6690 = vmatpush2.bf16.msra.mxu0 %v11944_v63  ;;  %v11995_v63 = vld [vmem:[#allocation2 + $0x1850] ss:$8 sps:$4 sm:$0xff]  }
 0x821   :  { %6691 = vmatprep.subr.bf16.mxu0 %v11949_v7 }
 0x824   :  { %6692 = vmatpush2.bf16.msra.mxu0 %v11947_v10  ;;  %v12000_v10 = vld [vmem:[#allocation2 + $0x1844] ss:$8 sps:$4 sm:$0xff]  }
 0x825   :  { %6693 = vmatprep.subr.bf16.mxu0 %v11952_v11  ;;  %v11998_v11 = vld [vmem:[#allocation2 + $0x1840] ss:$8 sps:$4 sm:$0xff]  }
 0x828   :  { %6694 = vmatpush2.bf16.msra.mxu0 %v11950_v60  ;;  %v12003_v60 = vld [vmem:[#allocation2 + $0x1834] ss:$8 sps:$4 sm:$0xff]  }
 0x829   :  { %6695 = vmatprep.subr.bf16.mxu0 %v11955_v62  ;;  %v12001_v62 = vld [vmem:[#allocation2 + $0x1830] ss:$8 sps:$4 sm:$0xff]  }
 0x82c   :  { %6696 = vmatpush2.bf16.msra.mxu0 %v11953_v13  ;;  %v12006_v13 = vld [vmem:[#allocation2 + $0x1824] ss:$8 sps:$4 sm:$0xff]  }
 0x82d   :  { %6697 = vmatprep.subr.bf16.mxu0 %v11958_v3  ;;  %v12004_v3 = vld [vmem:[#allocation2 + $0x1820] ss:$8 sps:$4 sm:$0xff]  }
 0x830   :  { %6698 = vmatpush2.bf16.msra.mxu0 %v11956_v12  ;;  %v12009_v12 = vld [vmem:[#allocation2 + $0x1814] ss:$8 sps:$4 sm:$0xff]  }
 0x831   :  { %6699 = vmatprep.subr.bf16.mxu0 %v11961_v21  ;;  %v12012_v21 = vld [vmem:[#allocation2 + $0x1804] ss:$8 sps:$4 sm:$0xff]  }
 0x834   :  { %6700 = vmatpush2.bf16.msra.mxu0 %v11959_v59  ;;  %v12010_v59 = vld [vmem:[#allocation2 + $0x1800] ss:$8 sps:$4 sm:$0xff]  }
 0x835   :  { %6701 = vmatprep.subr.bf16.mxu0 %v11964_v17  ;;  %v12015_v17 = vld [vmem:[#allocation2 + $0x18f4] ss:$8 sps:$4 sm:$0xff]  }
 0x838   :  { %6702 = vmatpush2.bf16.msra.mxu0 %v11962_v42  ;;  %v12013_v42 = vld [vmem:[#allocation2 + $0x18f0] ss:$8 sps:$4 sm:$0xff]  }
 0x839   :  { %7141 = vmatprep.subr.bf16.mxu0 %v11967_v47  ;;  %v12018_v47 = vld [vmem:[#allocation2 + $0x18e4] ss:$8 sps:$4 sm:$0xff]  }
 0x83b   :  { %6704 = vmatmul.mubr.bf16.vlgmr.msra.gmra.mxu0 %v12635_v40 }
 0x83c   :  { %7142 = vmatpush1.bf16.msra.mxu0 %v11965_v22  ;;  %7173 = vmatprep.mubr.bf16.mxu0 %v12727_v26 }
 0x83d   :  { %7143 = vmatprep.subr.bf16.mxu0 %v11970_v24  ;;  %v12016_v24 = vld [vmem:[#allocation2 + $0x18e0] ss:$8 sps:$4 sm:$0xff]  }
 0x840   :  { %7144 = vmatpush1.bf16.msra.mxu0 %v11968_v20 }
 0x841   :  { %7145 = vmatprep.subr.bf16.mxu0 %v11973_v25  ;;  %v12021_v25 = vld [vmem:[#allocation2 + $0x18d4] ss:$8 sps:$4 sm:$0xff]  }
 0x844   :  { %7146 = vmatpush1.bf16.msra.mxu0 %v11971_v30 }
 0x845   :  { %7147 = vmatprep.subr.bf16.mxu0 %v11976_v36  ;;  %v12019_v36 = vld [vmem:[#allocation2 + $0x18d0] ss:$8 sps:$4 sm:$0xff]  }
 0x848   :  { %7148 = vmatpush1.bf16.msra.mxu0 %v11974_v35 }
 0x849   :  { %7149 = vmatprep.subr.bf16.mxu0 %v11979_v27  ;;  %v12024_v27 = vld [vmem:[#allocation2 + $0x18c4] ss:$8 sps:$4 sm:$0xff]  }
 0x84c   :  { %7150 = vmatpush1.bf16.msra.mxu0 %v11977_v28  ;;  %v12022_v28 = vld [vmem:[#allocation2 + $0x18c0] ss:$8 sps:$4 sm:$0xff]  }
 0x84d   :  { %7151 = vmatprep.subr.bf16.mxu0 %v11982_v29  ;;  %v12027_v29 = vld [vmem:[#allocation2 + $0x18b4] ss:$8 sps:$4 sm:$0xff]  }
 0x84f   :  { %v12748_v48 = vpop.f32.mrf.mxu1 }
 0x850   :  { %7152 = vmatpush1.bf16.msra.mxu0 %v11980_v33  ;;  %v12025_v33 = vld [vmem:[#allocation2 + $0x18b0] ss:$8 sps:$4 sm:$0xff]  }
 0x851   :  { %v12750_v41 = vpop.f32.mrf.mxu1  ;;  %7153 = vmatprep.subr.bf16.mxu0 %v11985_v54  ;;  %v12030_v54 = vld [vmem:[#allocation2 + $0x18a4] ss:$8 sps:$4 sm:$0xff]  }
 0x853   :  { %v6944_v9 = vpop.f32.mrf.mxu1 }
 0x854   :  { %7154 = vmatpush1.bf16.msra.mxu0 %v11983_v38  ;;  %v12033_v38 = vld [vmem:[#allocation2 + $0x1894] ss:$8 sps:$4 sm:$0xff]   ;;  %v12036_v9 = vld [vmem:[#allocation2 + $0x1884] ss:$8 sps:$4 sm:$0xff]  }
 0x855   :  { %v6945_v52 = vpop.f32.mrf.mxu1  ;;  %7155 = vmatprep.subr.bf16.mxu0 %v11988_v50  ;;  %v12031_v50 = vld [vmem:[#allocation2 + $0x1890] ss:$8 sps:$4 sm:$0xff]  }
 0x856   :  { %v12039_v52 = vld [vmem:[#allocation2 + $0x1a74] ss:$8 sps:$4 sm:$0xff]  }
 0x858   :  { %7156 = vmatpush1.bf16.msra.mxu0 %v11986_v43  ;;  %v12034_v43 = vld [vmem:[#allocation2 + $0x1880] ss:$8 sps:$4 sm:$0xff]  }
 0x859   :  { %7157 = vmatprep.subr.bf16.mxu0 %v11991_v46  ;;  %v12037_v46 = vld [vmem:[#allocation2 + $0x1a70] ss:$8 sps:$4 sm:$0xff]  }
 0x85b   :  { %v10652_v14 = vpop.f32.mrf.mxu0 }
 0x85c   :  { %7158 = vmatpush2.bf16.msra.mxu0 %v11989_v34  ;;  %v12042_v34 = vld [vmem:[#allocation2 + $0x1a64] ss:$8 sps:$4 sm:$0xff]  }
 0x85d   :  { %v10653_v55 = vpop.f32.mrf.mxu0  ;;  %7159 = vmatprep.subr.bf16.mxu0 %v11994_v49  ;;  %v12040_v49 = vld [vmem:[#allocation2 + $0x1a60] ss:$8 sps:$4 sm:$0xff]  }
 0x85e   :  { %v10654_v57 = vadd.f32 %v10653_v55, %v10652_v14  ;;  %v12045_v14 = vld [vmem:[#allocation2 + $0x1a54] ss:$8 sps:$4 sm:$0xff]   ;;  %v12048_v55 = vld [vmem:[#allocation2 + $0x1a44] ss:$8 sps:$4 sm:$0xff]  }
 0x85f   :  { %v10655_v58 = vpop.f32.mrf.mxu0 }
 0x860   :  { %v12753_v61 = vadd.f32 %v10654_v57, %v12700_v18  ;;  %7160 = vmatpush2.bf16.msra.mxu0 %v11992_v53  ;;  %v12007_v18 = vld [vmem:[#allocation2 + $0x1810] ss:$8 sps:$4 sm:$0xff]  }
 0x861   :  { %v10656_v7 = vpop.f32.mrf.mxu0  ;;  %7161 = vmatprep.subr.bf16.mxu0 %v11997_v56  ;;  %v12043_v53 = vld [vmem:[#allocation2 + $0x1a50] ss:$8 sps:$4 sm:$0xff]   ;;  %v12046_v56 = vld [vmem:[#allocation2 + $0x1a40] ss:$8 sps:$4 sm:$0xff]  }
 0x862   :  { %v12142_v57 = vld [vmem:[#allocation4 + $0x3b8] sm:$0xff]   ;;  %v12147_v7 = vld [vmem:[#allocation4 + $0x3b0] sm:$0xff]  }
 0x863   :  { %v12143_v58 = vld [vmem:[#allocation4 + $0x378] sm:$0xff]   ;;  %10658 = vmatprep.subr.bf16.mxu1 %v12142_v57 }
 0x864   :  { %7162 = vmatpush2.bf16.msra.mxu0 %v11995_v63  ;;  %v12051_v63 = vld [vmem:[#allocation2 + $0x1a34] ss:$8 sps:$4 sm:$0xff]   ;;  %10659 = vmatpush3.bf16.msra.mxu1 %v12143_v58  ;;  %v12079_v57 = vld [vmem:[#allocation2 + $0x1a90] ss:$8 sps:$4 sm:$0xff]   ;;  %v12084_v58 = vld [vmem:[#allocation2 + $0x1a84] ss:$8 sps:$4 sm:$0xff]  }
 0x865   :  { %7163 = vmatprep.subr.bf16.mxu0 %v12000_v10  ;;  %v12148_v10 = vld [vmem:[#allocation4 + $0x370] sm:$0xff]   ;;  %10660 = vmatprep.subr.bf16.mxu1 %v12147_v7 }
 0x866   :  { %v12085_v7 = vld [vmem:[#allocation2 + $0x1c70] ss:$8 sps:$4 sm:$0xff]  }
 0x868   :  { %7164 = vmatpush2.bf16.msra.mxu0 %v11998_v11  ;;  %10661 = vmatpush3.bf16.msra.mxu1 %v12148_v10  ;;  %v12052_v11 = vld [vmem:[#allocation2 + $0x1a20] ss:$8 sps:$4 sm:$0xff]   ;;  %v12090_v10 = vld [vmem:[#allocation2 + $0x1c64] ss:$8 sps:$4 sm:$0xff]  }
 0x869   :  { %7165 = vmatprep.subr.bf16.mxu0 %v12003_v60  ;;  %v12152_v60 = vld [vmem:[#allocation4 + $0x3a8] sm:$0xff]  }
 0x86a   :  { %10662 = vmatprep.subr.bf16.mxu1 %v12152_v60  ;;  %v12091_v60 = vld [vmem:[#allocation2 + $0x1c50] ss:$8 sps:$4 sm:$0xff]  }
 0x86c   :  { %7166 = vmatpush2.bf16.msra.mxu0 %v12001_v62  ;;  %v12153_v62 = vld [vmem:[#allocation4 + $0x368] sm:$0xff]  }
 0x86d   :  { %7167 = vmatprep.subr.bf16.mxu0 %v12006_v13  ;;  %v12057_v13 = vld [vmem:[#allocation2 + $0x1a14] ss:$8 sps:$4 sm:$0xff]   ;;  %10663 = vmatpush3.bf16.msra.mxu1 %v12153_v62  ;;  %v12096_v62 = vld [vmem:[#allocation2 + $0x1c44] ss:$8 sps:$4 sm:$0xff]  }
 0x870   :  { %7168 = vmatpush2.bf16.msra.mxu0 %v12004_v3  ;;  %v12055_v3 = vld [vmem:[#allocation2 + $0x1a10] ss:$8 sps:$4 sm:$0xff]  }
 0x871   :  { %7169 = vmatprep.subr.bf16.mxu0 %v12009_v12  ;;  %v12157_v12 = vld [vmem:[#allocation4 + $0x3a0] sm:$0xff]  }
 0x872   :  { %10664 = vmatprep.subr.bf16.mxu1 %v12157_v12  ;;  %v12097_v12 = vld [vmem:[#allocation2 + $0x1c30] ss:$8 sps:$4 sm:$0xff]  }
 0x874   :  { %7170 = vmatpush2.bf16.msra.mxu0 %v12007_v18  ;;  %v12158_v18 = vld [vmem:[#allocation4 + $0x360] sm:$0xff]  }
 0x875   :  { %7171 = vmatprep.subr.bf16.mxu0 %v12012_v21  ;;  %v12060_v21 = vld [vmem:[#allocation2 + $0x1a04] ss:$8 sps:$4 sm:$0xff]   ;;  %10665 = vmatpush3.bf16.msra.mxu1 %v12158_v18 }
 0x876   :  { %v12102_v18 = vld [vmem:[#allocation2 + $0x1c24] ss:$8 sps:$4 sm:$0xff]  }
 0x878   :  { %7172 = vmatpush2.bf16.msra.mxu0 %v12010_v59  ;;  %v12058_v59 = vld [vmem:[#allocation2 + $0x1a00] ss:$8 sps:$4 sm:$0xff]  }
 0x879   :  { %7701 = vmatprep.subr.bf16.mxu0 %v12015_v17  ;;  %v12162_v17 = vld [vmem:[#allocation4 + $0x398] sm:$0xff]  }
 0x87a   :  { %10666 = vmatprep.subr.bf16.mxu1 %v12162_v17  ;;  %v12106_v17 = vld [vmem:[#allocation2 + $0x1c00] ss:$8 sps:$4 sm:$0xff]  }
 0x87b   :  { %v12755_v22 = vpop.f32.mrf.mxu0  ;;  %7174 = vmatmul.mubr.bf16.vlgmr.msra.gmra.mxu0 %v12729_v23 }
 0x87c   :  { %7702 = vmatpush1.bf16.msra.mxu0 %v12013_v42  ;;  %7733 = vmatprep.mubr.bf16.mxu0 %v12499_v0  ;;  %v12028_v0 = vld [vmem:[#allocation2 + $0x18a0] ss:$8 sps:$4 sm:$0xff]   ;;  %v12163_v42 = vld [vmem:[#allocation4 + $0x358] sm:$0xff]  }
 0x87d   :  { %v12759_v20 = vpop.f32.mrf.mxu0  ;;  %7703 = vmatprep.subr.bf16.mxu0 %v12018_v47  ;;  %v12063_v47 = vld [vmem:[#allocation2 + $0x1af4] ss:$8 sps:$4 sm:$0xff]   ;;  %10667 = vmatpush3.bf16.msra.mxu1 %v12163_v42 }
 0x87e   :  { %v12111_v42 = vld [vmem:[#allocation2 + $0x1cf4] ss:$8 sps:$4 sm:$0xff]  }
 0x87f   :  { %v6006_v30 = vpop.f32.mrf.mxu0 }
 0x880   :  { %7704 = vmatpush1.bf16.msra.mxu0 %v12016_v24  ;;  %v12061_v24 = vld [vmem:[#allocation2 + $0x1af0] ss:$8 sps:$4 sm:$0xff]   ;;  %v12066_v30 = vld [vmem:[#allocation2 + $0x1ae4] ss:$8 sps:$4 sm:$0xff]  }
 0x881   :  { %v6007_v35 = vpop.f32.mrf.mxu0  ;;  %7705 = vmatprep.subr.bf16.mxu0 %v12021_v25  ;;  %v12167_v25 = vld [vmem:[#allocation4 + $0x390] sm:$0xff]  }
 0x882   :  { %v6003_v35 = vadd.f32 %v12755_v22, %v12736_v5  ;;  %10668 = vmatprep.subr.bf16.mxu1 %v12167_v25  ;;  %v12067_v5 = vld [vmem:[#allocation2 + $0x1ad0] ss:$8 sps:$4 sm:$0xff]   ;;  %v12177_v22 = vld [vmem:[#allocation4 + $0x380] sm:$0xff]  }
 0x884   :  { %7706 = vmatpush1.bf16.msra.mxu0 %v12019_v36  ;;  %v12168_v36 = vld [vmem:[#allocation4 + $0x350] sm:$0xff]  }
 0x885   :  { %7707 = vmatprep.subr.bf16.mxu0 %v12024_v27  ;;  %10669 = vmatpush3.bf16.msra.mxu1 %v12168_v36 }
 0x888   :  { %7708 = vmatpush1.bf16.msra.mxu0 %v12022_v28  ;;  %v6005_v28 = vadd.f32 %v12759_v20, %v12738_v8  ;;  %v12072_v8 = vld [vmem:[#allocation2 + $0x1ac4] ss:$8 sps:$4 sm:$0xff]  }
 0x889   :  { %7709 = vmatprep.subr.bf16.mxu0 %v12027_v29  ;;  %v12178_v20 = vld [vmem:[#allocation4 + $0x340] sm:$0xff]  }
 0x88c   :  { %7710 = vmatpush1.bf16.msra.mxu0 %v12025_v33  ;;  %v12064_v33 = vld [vmem:[#allocation2 + $0x1ae0] ss:$8 sps:$4 sm:$0xff]  }
 0x88d   :  { %7711 = vmatprep.subr.bf16.mxu0 %v12030_v54  ;;  %v12172_v54 = vld [vmem:[#allocation4 + $0x388] sm:$0xff]  }
 0x88e   :  { %10670 = vmatprep.subr.bf16.mxu1 %v12172_v54  ;;  %v12120_v54 = vld [vmem:[#allocation2 + $0x1cc4] ss:$8 sps:$4 sm:$0xff]  }
 0x890   :  { %7712 = vmatpush1.bf16.msra.mxu0 %v12028_v0 }
 0x891   :  { %7713 = vmatprep.subr.bf16.mxu0 %v12033_v38  ;;  %v12069_v38 = vld [vmem:[#allocation2 + $0x1ad4] ss:$8 sps:$4 sm:$0xff]  }
 0x894   :  { %7714 = vmatpush1.bf16.msra.mxu0 %v12031_v50  ;;  %v12173_v50 = vld [vmem:[#allocation4 + $0x348] sm:$0xff]  }
 0x895   :  { %7715 = vmatprep.subr.bf16.mxu0 %v12036_v9  ;;  %10671 = vmatpush3.bf16.msra.mxu1 %v12173_v50  ;;  %v12121_v50 = vld [vmem:[#allocation2 + $0x1cb0] ss:$8 sps:$4 sm:$0xff]  }
 0x896   :  { %10672 = vmatprep.subr.bf16.mxu1 %v12177_v22  ;;  %v12129_v22 = vld [vmem:[#allocation2 + $0x1c94] ss:$8 sps:$4 sm:$0xff]  }
 0x898   :  { %7716 = vmatpush1.bf16.msra.mxu0 %v12034_v43 }
 0x899   :  { %7934 = vmatprep.subr.bf16.mxu0 %v12039_v52  ;;  %10673 = vmatpush3.bf16.msra.mxu1 %v12178_v20  ;;  %v12130_v20 = vld [vmem:[#allocation2 + $0x1c80] ss:$8 sps:$4 sm:$0xff]  }
 0x89b   :  { %7734 = vmatmul.mubr.bf16.vlgmr.msra.gmra.mxu0 %v12548_v31  ;;  %v12049_v31 = vld [vmem:[#allocation2 + $0x1a30] ss:$8 sps:$4 sm:$0xff]  }
 0x89c   :  { %7935 = vmatpush1.bf16.msra.mxu0 %v12037_v46  ;;  %7966 = vmatprep.mubr.bf16.mxu0 %v12576_v4  ;;  %v12054_v4 = vld [vmem:[#allocation2 + $0x1a24] ss:$8 sps:$4 sm:$0xff]   ;;  %v12070_v46 = vld [vmem:[#allocation2 + $0x1ac0] ss:$8 sps:$4 sm:$0xff]  }
 0x89d   :  { %7936 = vmatprep.subr.bf16.mxu0 %v12042_v34  ;;  %v12184_v34 = vld [vmem:[#allocation2 + $0x1974] ss:$8 sps:$4 sm:$0xff]  }
 0x89e   :  { %7580 = vmatprep.subr.bf16.mxu1 %v12184_v34  ;;  %v12133_v34 = vld [vmem:[#allocation2 + $0x1e70] ss:$8 sps:$4 sm:$0xff]  }
 0x8a0   :  { %7937 = vmatpush1.bf16.msra.mxu0 %v12040_v49  ;;  %v12075_v49 = vld [vmem:[#allocation2 + $0x1ab4] ss:$8 sps:$4 sm:$0xff]  }
 0x8a1   :  { %7938 = vmatprep.subr.bf16.mxu0 %v12045_v14  ;;  %v12073_v14 = vld [vmem:[#allocation2 + $0x1ab0] ss:$8 sps:$4 sm:$0xff]  }
 0x8a4   :  { %7939 = vmatpush1.bf16.msra.mxu0 %v12043_v53  ;;  %v12078_v53 = vld [vmem:[#allocation2 + $0x1aa4] ss:$8 sps:$4 sm:$0xff]  }
 0x8a5   :  { %7940 = vmatprep.subr.bf16.mxu0 %v12048_v55  ;;  %v12076_v55 = vld [vmem:[#allocation2 + $0x1aa0] ss:$8 sps:$4 sm:$0xff]  }
 0x8a8   :  { %7941 = vmatpush1.bf16.msra.mxu0 %v12046_v56  ;;  %v12081_v56 = vld [vmem:[#allocation2 + $0x1a94] ss:$8 sps:$4 sm:$0xff]  }
 0x8a9   :  { %7942 = vmatprep.subr.bf16.mxu0 %v12051_v63  ;;  %v12082_v63 = vld [vmem:[#allocation2 + $0x1a80] ss:$8 sps:$4 sm:$0xff]  }
 0x8ac   :  { %7943 = vmatpush1.bf16.msra.mxu0 %v12049_v31  ;;  %v12087_v31 = vld [vmem:[#allocation2 + $0x1c74] ss:$8 sps:$4 sm:$0xff]  }
 0x8ad   :  { %7944 = vmatprep.subr.bf16.mxu0 %v12054_v4  ;;  %v12088_v4 = vld [vmem:[#allocation2 + $0x1c60] ss:$8 sps:$4 sm:$0xff]  }
 0x8b0   :  { %7945 = vmatpush1.bf16.msra.mxu0 %v12052_v11  ;;  %v12093_v11 = vld [vmem:[#allocation2 + $0x1c54] ss:$8 sps:$4 sm:$0xff]  }
 0x8b1   :  { %7946 = vmatprep.subr.bf16.mxu0 %v12057_v13  ;;  %v12094_v13 = vld [vmem:[#allocation2 + $0x1c40] ss:$8 sps:$4 sm:$0xff]  }
 0x8b4   :  { %7947 = vmatpush1.bf16.msra.mxu0 %v12055_v3  ;;  %v12099_v3 = vld [vmem:[#allocation2 + $0x1c34] ss:$8 sps:$4 sm:$0xff]  }
 0x8b5   :  { %7948 = vmatprep.subr.bf16.mxu0 %v12060_v21  ;;  %v12105_v21 = vld [vmem:[#allocation2 + $0x1c14] ss:$8 sps:$4 sm:$0xff]  }
 0x8b8   :  { %7949 = vmatpush1.bf16.msra.mxu0 %v12058_v59  ;;  %v12108_v59 = vld [vmem:[#allocation2 + $0x1c04] ss:$8 sps:$4 sm:$0xff]  }
 0x8b9   :  { %7950 = vmatprep.subr.bf16.mxu0 %v12063_v47  ;;  %v12109_v47 = vld [vmem:[#allocation2 + $0x1cf0] ss:$8 sps:$4 sm:$0xff]  }
 0x8bb   :  { %v6235_v27 = vpop.f32.mrf.mxu0 }
 0x8bc   :  { %v12767_v29 = vadd.f32 %v6235_v27, %v6003_v35  ;;  %7951 = vmatpush2.bf16.msra.mxu0 %v12061_v24  ;;  %v12114_v24 = vld [vmem:[#allocation2 + $0x1ce4] ss:$8 sps:$4 sm:$0xff]   ;;  %v12117_v35 = vld [vmem:[#allocation2 + $0x1cd4] ss:$8 sps:$4 sm:$0xff]  }
 0x8bd   :  { %v6237_v0 = vpop.f32.mrf.mxu0  ;;  %7952 = vmatprep.subr.bf16.mxu0 %v12066_v30  ;;  %v12112_v30 = vld [vmem:[#allocation2 + $0x1ce0] ss:$8 sps:$4 sm:$0xff]  }
 0x8be   :  { %v12769_v9 = vadd.f32 %v6237_v0, %v6005_v28  ;;  %v12115_v28 = vld [vmem:[#allocation2 + $0x1cd0] ss:$8 sps:$4 sm:$0xff]   ;;  %v12118_v0 = vld [vmem:[#allocation2 + $0x1cc0] ss:$8 sps:$4 sm:$0xff]  }
 0x8bf   :  { %v6239_v43 = vpop.f32.mrf.mxu0 }
 0x8c0   :  { %7953 = vmatpush2.bf16.msra.mxu0 %v12064_v33  ;;  %v12126_v43 = vld [vmem:[#allocation2 + $0x1ca4] ss:$8 sps:$4 sm:$0xff]  }
 0x8c1   :  { %v6240_v52 = vpop.f32.mrf.mxu0  ;;  %7954 = vmatprep.subr.bf16.mxu0 %v12069_v38  ;;  %v12123_v38 = vld [vmem:[#allocation2 + $0x1cb4] ss:$8 sps:$4 sm:$0xff]  }
 0x8c2   :  { %v12127_v52 = vld [vmem:[#allocation2 + $0x1c90] ss:$8 sps:$4 sm:$0xff]  }
 0x8c4   :  { %7955 = vmatpush2.bf16.msra.mxu0 %v12067_v5  ;;  %v12124_v5 = vld [vmem:[#allocation2 + $0x1ca0] ss:$8 sps:$4 sm:$0xff]  }
 0x8c5   :  { %7956 = vmatprep.subr.bf16.mxu0 %v12072_v8  ;;  %v12132_v8 = vld [vmem:[#allocation2 + $0x1c84] ss:$8 sps:$4 sm:$0xff]  }
 0x8c8   :  { %7957 = vmatpush2.bf16.msra.mxu0 %v12070_v46  ;;  %v12135_v46 = vld [vmem:[#allocation2 + $0x1e74] ss:$8 sps:$4 sm:$0xff]  }
 0x8c9   :  { %7958 = vmatprep.subr.bf16.mxu0 %v12075_v49  ;;  %v12138_v49 = vld [vmem:[#allocation2 + $0x1e64] ss:$8 sps:$4 sm:$0xff]  }
 0x8cc   :  { %7959 = vmatpush2.bf16.msra.mxu0 %v12073_v14  ;;  %v12136_v14 = vld [vmem:[#allocation2 + $0x1e60] ss:$8 sps:$4 sm:$0xff]  }
 0x8cd   :  { %7960 = vmatprep.subr.bf16.mxu0 %v12078_v53  ;;  %v12141_v53 = vld [vmem:[#allocation2 + $0x1e54] ss:$8 sps:$4 sm:$0xff]  }
 0x8d0   :  { %7961 = vmatpush2.bf16.msra.mxu0 %v12076_v55  ;;  %v12139_v55 = vld [vmem:[#allocation2 + $0x1e50] ss:$8 sps:$4 sm:$0xff]  }
 0x8d1   :  { %7962 = vmatprep.subr.bf16.mxu0 %v12081_v56  ;;  %v12146_v56 = vld [vmem:[#allocation2 + $0x1e44] ss:$8 sps:$4 sm:$0xff]  }
 0x8d4   :  { %7963 = vmatpush2.bf16.msra.mxu0 %v12079_v57  ;;  %v12144_v57 = vld [vmem:[#allocation2 + $0x1e40] ss:$8 sps:$4 sm:$0xff]  }
 0x8d5   :  { %7964 = vmatprep.subr.bf16.mxu0 %v12084_v58  ;;  %v12151_v58 = vld [vmem:[#allocation2 + $0x1e34] ss:$8 sps:$4 sm:$0xff]  }
 0x8d8   :  { %7965 = vmatpush2.bf16.msra.mxu0 %v12082_v63  ;;  %v12149_v63 = vld [vmem:[#allocation2 + $0x1e30] ss:$8 sps:$4 sm:$0xff]  }
 0x8d9   :  { %8404 = vmatprep.subr.bf16.mxu0 %v12087_v31  ;;  %v12156_v31 = vld [vmem:[#allocation2 + $0x1e24] ss:$8 sps:$4 sm:$0xff]  }
 0x8db   :  { %7967 = vmatmul.mubr.bf16.vlgmr.msra.gmra.mxu0 %v12578_v6  ;;  %v12100_v6 = vld [vmem:[#allocation2 + $0x1c20] ss:$8 sps:$4 sm:$0xff]  }
 0x8dc   :  { %8405 = vmatpush1.bf16.msra.mxu0 %v12085_v7  ;;  %8436 = vmatprep.mubr.bf16.mxu0 %v12633_v19  ;;  %v12103_v19 = vld [vmem:[#allocation2 + $0x1c10] ss:$8 sps:$4 sm:$0xff]   ;;  %v12161_v7 = vld [vmem:[#allocation2 + $0x1e14] ss:$8 sps:$4 sm:$0xff]  }
 0x8dd   :  { %8406 = vmatprep.subr.bf16.mxu0 %v12090_v10  ;;  %v12166_v10 = vld [vmem:[#allocation2 + $0x1e04] ss:$8 sps:$4 sm:$0xff]  }
 0x8e0   :  { %8407 = vmatpush1.bf16.msra.mxu0 %v12088_v4  ;;  %v6477_v4 = vadd.f32 %v12742_v39, %v12767_v29 }
 0x8e1   :  { %8408 = vmatprep.subr.bf16.mxu0 %v12093_v11  ;;  %v12164_v11 = vld [vmem:[#allocation2 + $0x1e00] ss:$8 sps:$4 sm:$0xff]  }
 0x8e4   :  { %8409 = vmatpush1.bf16.msra.mxu0 %v12091_v60  ;;  %v12171_v60 = vld [vmem:[#allocation2 + $0x1ef4] ss:$8 sps:$4 sm:$0xff]  }
 0x8e5   :  { %8410 = vmatprep.subr.bf16.mxu0 %v12096_v62 }
 0x8e8   :  { %8411 = vmatpush1.bf16.msra.mxu0 %v12094_v13  ;;  %v6478_v13 = vadd.f32 %v12744_v51, %v12769_v9  ;;  %v12181_v9 = vld [vmem:[#allocation2 + $0x1ed4] ss:$8 sps:$4 sm:$0xff]  }
 0x8e9   :  { %8412 = vmatprep.subr.bf16.mxu0 %v12099_v3  ;;  %v7185_v3 = vld [vmem:[#allocation6 + $0x6] ss:$8 sm:$0x3] }
 0x8ea   :  { %v7190_v39 = vrot.slane %v7185_v3, %v12554_v1 }
 0x8ec   :  { %8413 = vmatpush1.bf16.msra.mxu0 %v12097_v12 }
 0x8ed   :  { %8414 = vmatprep.subr.bf16.mxu0 %v12102_v18  ;;  %v12169_v18 = vld [vmem:[#allocation2 + $0x1ef0] ss:$8 sps:$4 sm:$0xff]  }
 0x8f0   :  { %8415 = vmatpush1.bf16.msra.mxu0 %v12100_v6  ;;  %v12176_v6 = vld [vmem:[#allocation2 + $0x1ee4] ss:$8 sps:$4 sm:$0xff]  }
 0x8f1   :  { %8416 = vmatprep.subr.bf16.mxu0 %v12105_v21 }
 0x8f4   :  { %8417 = vmatpush1.bf16.msra.mxu0 %v12103_v19 }
 0x8f5   :  { %8418 = vmatprep.subr.bf16.mxu0 %v12108_v59 }
 0x8f8   :  { %8419 = vmatpush1.bf16.msra.mxu0 %v12106_v17  ;;  %v7194_v17 = vrot.slane %v7185_v3, %v12556_v2  ;;  %v12224_v3 = vld [vmem:[#allocation2 + $0x19e0] ss:$8 sps:$4 sm:$0xff]  }
 0x8f9   :  { %8420 = vmatprep.subr.bf16.mxu0 %v12111_v42  ;;  %v12174_v42 = vld [vmem:[#allocation2 + $0x1ee0] ss:$8 sps:$4 sm:$0xff]  }
 0x8fb   :  { %v12773_v25 = vpop.f32.mrf.mxu0 }
 0x8fc   :  { %8421 = vmatpush2.bf16.msra.mxu0 %v12109_v47  ;;  %v6712_v62 = vadd.f32 %v12773_v25, %v6477_v4  ;;  %v12218_v4 = vld [vmem:[#allocation2 + $0x1900] ss:$8 sps:$4 sm:$0xff]  }
 0x8fd   :  { %v12775_v36 = vpop.f32.mrf.mxu0  ;;  %8422 = vmatprep.subr.bf16.mxu0 %v12114_v24 }
 0x8fe   :  { %v6713_v12 = vadd.f32 %v12775_v36, %v6478_v13  ;;  %v6947_v21 = vadd.f32 %v12748_v48, %v6712_v62  ;;  %v12179_v36 = vld [vmem:[#allocation2 + $0x1ed0] ss:$8 sps:$4 sm:$0xff]   ;;  %v12226_v13 = vld [vmem:[#allocation2 + $0x19e4] ss:$8 sps:$4 sm:$0xff]  }
 0x8ff   :  { %v6709_v27 = vpop.f32.mrf.mxu0  ;;  %v12221_v62 = vld [vmem:[#allocation2 + $0x19f0] ss:$8 sps:$4 sm:$0xff]  }
 0x900   :  { %8423 = vmatpush2.bf16.msra.mxu0 %v12112_v30  ;;  %v6948_v59 = vadd.f32 %v12750_v41, %v6713_v12  ;;  %v12187_v27 = vld [vmem:[#allocation2 + $0x1ec4] ss:$8 sps:$4 sm:$0xff]   ;;  %v12182_v41 = vld [vmem:[#allocation2 + $0x1970] ss:$8 sps:$4 sm:$0xff]   ;;  %v12229_v12 = vld [vmem:[#allocation2 + $0x19d4] ss:$8 sps:$4 sm:$0xff]  }
 0x901   :  { %v6710_v33 = vpop.f32.mrf.mxu0  ;;  %8424 = vmatprep.subr.bf16.mxu0 %v12117_v35 }
 0x904   :  { %8425 = vmatpush2.bf16.msra.mxu0 %v12115_v28 }
 0x905   :  { %8426 = vmatprep.subr.bf16.mxu0 %v12120_v54 }
 0x908   :  { %8427 = vmatpush2.bf16.msra.mxu0 %v12118_v0  ;;  %v12185_v0 = vld [vmem:[#allocation2 + $0x1ec0] ss:$8 sps:$4 sm:$0xff]  }
 0x909   :  { %8428 = vmatprep.subr.bf16.mxu0 %v12123_v38  ;;  %v12190_v38 = vld [vmem:[#allocation2 + $0x1964] ss:$8 sps:$4 sm:$0xff]  }
 0x90c   :  { %8429 = vmatpush2.bf16.msra.mxu0 %v12121_v50  ;;  %v12193_v50 = vld [vmem:[#allocation2 + $0x1eb4] ss:$8 sps:$4 sm:$0xff]  }
 0x90d   :  { %8430 = vmatprep.subr.bf16.mxu0 %v12126_v43  ;;  %v12188_v43 = vld [vmem:[#allocation2 + $0x1960] ss:$8 sps:$4 sm:$0xff]  }
 0x910   :  { %8431 = vmatpush2.bf16.msra.mxu0 %v12124_v5  ;;  %v12191_v5 = vld [vmem:[#allocation2 + $0x1eb0] ss:$8 sps:$4 sm:$0xff]  }
 0x911   :  { %8432 = vmatprep.subr.bf16.mxu0 %v12129_v22  ;;  %v12196_v22 = vld [vmem:[#allocation2 + $0x1954] ss:$8 sps:$4 sm:$0xff]  }
 0x914   :  { %8433 = vmatpush2.bf16.msra.mxu0 %v12127_v52  ;;  %v12199_v52 = vld [vmem:[#allocation2 + $0x1ea4] ss:$8 sps:$4 sm:$0xff]  }
 0x915   :  { %8434 = vmatprep.subr.bf16.mxu0 %v12132_v8  ;;  %v12194_v8 = vld [vmem:[#allocation2 + $0x1950] ss:$8 sps:$4 sm:$0xff]  }
 0x918   :  { %8435 = vmatpush2.bf16.msra.mxu0 %v12130_v20  ;;  %v12197_v20 = vld [vmem:[#allocation2 + $0x1ea0] ss:$8 sps:$4 sm:$0xff]  }
 0x919   :  { %8874 = vmatprep.subr.bf16.mxu0 %v12135_v46  ;;  %v12202_v46 = vld [vmem:[#allocation2 + $0x1944] ss:$8 sps:$4 sm:$0xff]  }
 0x91b   :  { %8437 = vmatmul.mubr.bf16.vlgmr.msra.gmra.mxu0 %v12635_v40  ;;  %v12154_v40 = vld [vmem:[#allocation2 + $0x1e20] ss:$8 sps:$4 sm:$0xff]  }
 0x91c   :  { %8875 = vmatpush1.bf16.msra.mxu0 %v12133_v34  ;;  %8906 = vmatprep.mubr.bf16.mxu0 %v12727_v26  ;;  %v12159_v26 = vld [vmem:[#allocation2 + $0x1e10] ss:$8 sps:$4 sm:$0xff]   ;;  %v12205_v34 = vld [vmem:[#allocation2 + $0x1e94] ss:$8 sps:$4 sm:$0xff]  }
 0x91d   :  { %8876 = vmatprep.subr.bf16.mxu0 %v12138_v49  ;;  %v12200_v49 = vld [vmem:[#allocation2 + $0x1940] ss:$8 sps:$4 sm:$0xff]  }
 0x920   :  { %8877 = vmatpush1.bf16.msra.mxu0 %v12136_v14  ;;  %v12208_v14 = vld [vmem:[#allocation2 + $0x1934] ss:$8 sps:$4 sm:$0xff]  }
 0x921   :  { %8878 = vmatprep.subr.bf16.mxu0 %v12141_v53  ;;  %v12211_v53 = vld [vmem:[#allocation2 + $0x1e84] ss:$8 sps:$4 sm:$0xff]  }
 0x924   :  { %8879 = vmatpush1.bf16.msra.mxu0 %v12139_v55  ;;  %v12206_v55 = vld [vmem:[#allocation2 + $0x1930] ss:$8 sps:$4 sm:$0xff]  }
 0x925   :  { %8880 = vmatprep.subr.bf16.mxu0 %v12146_v56  ;;  %v12209_v56 = vld [vmem:[#allocation2 + $0x1e80] ss:$8 sps:$4 sm:$0xff]  }
 0x928   :  { %8881 = vmatpush1.bf16.msra.mxu0 %v12144_v57  ;;  %v12214_v57 = vld [vmem:[#allocation2 + $0x1924] ss:$8 sps:$4 sm:$0xff]  }
 0x929   :  { %8882 = vmatprep.subr.bf16.mxu0 %v12151_v58  ;;  %v12212_v58 = vld [vmem:[#allocation2 + $0x1920] ss:$8 sps:$4 sm:$0xff]  }
 0x92c   :  { %8883 = vmatpush1.bf16.msra.mxu0 %v12149_v63  ;;  %v12217_v63 = vld [vmem:[#allocation2 + $0x1914] ss:$8 sps:$4 sm:$0xff]  }
 0x92d   :  { %8884 = vmatprep.subr.bf16.mxu0 %v12156_v31 }
 0x930   :  { %8885 = vmatpush1.bf16.msra.mxu0 %v12154_v40  ;;  %v12215_v40 = vld [vmem:[#allocation2 + $0x1910] ss:$8 sps:$4 sm:$0xff]  }
 0x931   :  { %8886 = vmatprep.subr.bf16.mxu0 %v12161_v7  ;;  %v12220_v7 = vld [vmem:[#allocation2 + $0x1904] ss:$8 sps:$4 sm:$0xff]  }
 0x934   :  { %8887 = vmatpush1.bf16.msra.mxu0 %v12159_v26 }
 0x935   :  { %8888 = vmatprep.subr.bf16.mxu0 %v12166_v10 }
 0x938   :  { %8889 = vmatpush1.bf16.msra.mxu0 %v12164_v11  ;;  %v12223_v11 = vld [vmem:[#allocation2 + $0x19f4] ss:$8 sps:$4 sm:$0xff]  }
 0x939   :  { %8890 = vmatprep.subr.bf16.mxu0 %v12171_v60 }
 0x93b   :  { %v7175_v29 = vpop.f32.mrf.mxu0 }
 0x93c   :  { %v7182_v19 = vadd.f32 %v7175_v29, %v6947_v21  ;;  %8891 = vmatpush2.bf16.msra.mxu0 %v12169_v18  ;;  %v12232_v18 = vld [vmem:[#allocation2 + $0x19c4] ss:$8 sps:$4 sm:$0xff]   ;;  %v12235_v21 = vld [vmem:[#allocation2 + $0x19b4] ss:$8 sps:$4 sm:$0xff]  }
 0x93d   :  { %v7177_v51 = vpop.f32.mrf.mxu0  ;;  %8892 = vmatprep.subr.bf16.mxu0 %v12176_v6  ;;  %v12230_v6 = vld [vmem:[#allocation2 + $0x19c0] ss:$8 sps:$4 sm:$0xff]   ;;  %v12238_v29 = vld [vmem:[#allocation2 + $0x19a4] ss:$8 sps:$4 sm:$0xff]  }
 0x93e   :  { %v7197_v47 = vadd.f32 %v7190_v39, %v7182_v19  ;;  %v7183_v24 = vadd.f32 %v7177_v51, %v6948_v59  ;;  %v12233_v39 = vld [vmem:[#allocation2 + $0x19b0] ss:$8 sps:$4 sm:$0xff]   ;;  %v12236_v19 = vld [vmem:[#allocation2 + $0x19a0] ss:$8 sps:$4 sm:$0xff]   ;;  %v12241_v59 = vld [vmem:[#allocation2 + $0x1994] ss:$8 sps:$4 sm:$0xff]  }
 0x93f   :  { %v7179_v25 = vpop.f32.mrf.mxu0  ;;  %v12242_v51 = vld [vmem:[#allocation2 + $0x1980] ss:$8 sps:$4 sm:$0xff]  }
 0x940   :  { %v7198_v30 = vadd.f32 %v7194_v17, %v7183_v24  ;;  %8893 = vmatpush2.bf16.msra.mxu0 %v12174_v42  ;;  %v7199_v48 = vmax.f32 %v7197_v47, 0.0  ;;  %v12239_v17 = vld [vmem:[#allocation2 + $0x1990] ss:$8 sps:$4 sm:$0xff]   ;;  %v12244_v42 = vld [vmem:[#allocation2 + $0x1984] ss:$8 sps:$4 sm:$0xff]  }
 0x941   :  { %v7180_v35 = vpop.f32.mrf.mxu0  ;;  %8894 = vmatprep.subr.bf16.mxu0 %v12181_v9  ;;  %v12247_v9 = vld [vmem:[#allocation2 + $0x1b74] ss:$8 sps:$4 sm:$0xff]   ;;  %v12245_v47 = vld [vmem:[#allocation2 + $0x1b70] ss:$8 sps:$4 sm:$0xff]   ;;  %v12250_v24 = vld [vmem:[#allocation2 + $0x1b64] ss:$8 sps:$4 sm:$0xff]  }
 0x942   :  { %v7200_v28 = vmax.f32 %v7198_v30, 0.0  ;;  %v12791_v54 = vpack.c.bf16 %v7199_v48, %v7199_v48  ;;  %v12248_v25 = vld [vmem:[#allocation2 + $0x1b60] ss:$8 sps:$4 sm:$0xff]   ;;  %v12253_v30 = vld [vmem:[#allocation2 + $0x1b54] ss:$8 sps:$4 sm:$0xff]  }
 0x943   :  { %v12256_v48 = vld [vmem:[#allocation2 + $0x1b44] ss:$8 sps:$4 sm:$0xff]   ;;  %v12254_v35 = vld [vmem:[#allocation2 + $0x1b40] ss:$8 sps:$4 sm:$0xff]  }
 0x944   :  { %v12789_v33 = vpack.c.bf16 %v7200_v28, %v7200_v28  ;;  %8895 = vmatpush2.bf16.msra.mxu0 %v12179_v36  ;;  %v12251_v36 = vld [vmem:[#allocation2 + $0x1b50] ss:$8 sps:$4 sm:$0xff]  }
 0x945   :  { %8896 = vmatprep.subr.bf16.mxu0 %v12187_v27  ;;  %v12259_v27 = vld [vmem:[#allocation2 + $0x1b34] ss:$8 sps:$4 sm:$0xff]   ;;  %v12257_v28 = vld [vmem:[#allocation2 + $0x1b30] ss:$8 sps:$4 sm:$0xff]  }
 0x946   :  { %7363 = vmatprep.mubr.bf16.mxu1 %v12789_v33 }
 0x947   :  { %7364 = vmatmul.mubr.bf16.vlgmr.msra.gmra.mxu1 %v12791_v54 }
 0x948   :  { %7581 = vmatpush1.bf16.msra.mxu1 %v12182_v41  ;;  %7612 = vmatprep.mubr.bf16.mxu1 %v12560_v15  ;;  %v12203_v15 = vld [vmem:[#allocation2 + $0x1e90] ss:$8 sps:$4 sm:$0xff]   ;;  %v12262_v41 = vld [vmem:[#allocation2 + $0x1b24] ss:$8 sps:$4 sm:$0xff]  }
 0x949   :  { %8897 = vmatpush2.bf16.msra.mxu0 %v12185_v0  ;;  %7582 = vmatprep.subr.bf16.mxu1 %v12190_v38  ;;  %v12265_v0 = vld [vmem:[#allocation2 + $0x1b14] ss:$8 sps:$4 sm:$0xff]   ;;  %v12263_v38 = vld [vmem:[#allocation2 + $0x1b10] ss:$8 sps:$4 sm:$0xff]  }
 0x94a   :  { %8898 = vmatprep.subr.bf16.mxu0 %v12193_v50 }
 0x94c   :  { %7583 = vmatpush1.bf16.msra.mxu1 %v12188_v43  ;;  %v12268_v43 = vld [vmem:[#allocation2 + $0x1b04] ss:$8 sps:$4 sm:$0xff]  }
 0x94d   :  { %8899 = vmatpush2.bf16.msra.mxu0 %v12191_v5  ;;  %7584 = vmatprep.subr.bf16.mxu1 %v12196_v22  ;;  %v12266_v22 = vld [vmem:[#allocation2 + $0x1b00] ss:$8 sps:$4 sm:$0xff]  }
 0x94e   :  { %8900 = vmatprep.subr.bf16.mxu0 %v12199_v52 }
 0x950   :  { %7585 = vmatpush1.bf16.msra.mxu1 %v12194_v8  ;;  %v12271_v8 = vld [vmem:[#allocation2 + $0x1bf4] ss:$8 sps:$4 sm:$0xff]  }
 0x951   :  { %8901 = vmatpush2.bf16.msra.mxu0 %v12197_v20  ;;  %7586 = vmatprep.subr.bf16.mxu1 %v12202_v46  ;;  %v12269_v20 = vld [vmem:[#allocation2 + $0x1bf0] ss:$8 sps:$4 sm:$0xff]   ;;  %v12274_v46 = vld [vmem:[#allocation2 + $0x1be4] ss:$8 sps:$4 sm:$0xff]  }
 0x952   :  { %8902 = vmatprep.subr.bf16.mxu0 %v12205_v34  ;;  %v12272_v34 = vld [vmem:[#allocation2 + $0x1be0] ss:$8 sps:$4 sm:$0xff]  }
 0x954   :  { %7587 = vmatpush1.bf16.msra.mxu1 %v12200_v49  ;;  %v12277_v49 = vld [vmem:[#allocation2 + $0x1bd4] ss:$8 sps:$4 sm:$0xff]  }
 0x955   :  { %8903 = vmatpush2.bf16.msra.mxu0 %v12203_v15  ;;  %7588 = vmatprep.subr.bf16.mxu1 %v12208_v14  ;;  %v12275_v15 = vld [vmem:[#allocation2 + $0x1bd0] ss:$8 sps:$4 sm:$0xff]   ;;  %v12280_v14 = vld [vmem:[#allocation2 + $0x1bc4] ss:$8 sps:$4 sm:$0xff]  }
 0x956   :  { %8904 = vmatprep.subr.bf16.mxu0 %v12211_v53  ;;  %v12278_v53 = vld [vmem:[#allocation2 + $0x1bc0] ss:$8 sps:$4 sm:$0xff]  }
 0x958   :  { %7589 = vmatpush1.bf16.msra.mxu1 %v12206_v55  ;;  %v12283_v55 = vld [vmem:[#allocation2 + $0x1bb4] ss:$8 sps:$4 sm:$0xff]  }
 0x959   :  { %8905 = vmatpush2.bf16.msra.mxu0 %v12209_v56  ;;  %7590 = vmatprep.subr.bf16.mxu1 %v12214_v57  ;;  %v12281_v56 = vld [vmem:[#allocation2 + $0x1bb0] ss:$8 sps:$4 sm:$0xff]   ;;  %v12286_v57 = vld [vmem:[#allocation2 + $0x1ba4] ss:$8 sps:$4 sm:$0xff]  }
 0x95b   :  { %v12796_v31 = vpop.f32.mrf.mxu0 }
 0x95c   :  { %7591 = vmatpush1.bf16.msra.mxu1 %v12212_v58  ;;  %8907 = vmatmul.mubr.bf16.vlgmr.msra.gmra.mxu0 %v12729_v23  ;;  %v12227_v23 = vld [vmem:[#allocation2 + $0x19d0] ss:$8 sps:$4 sm:$0xff]   ;;  %v12284_v58 = vld [vmem:[#allocation2 + $0x1ba0] ss:$8 sps:$4 sm:$0xff]  }
 0x95d   :  { %7592 = vmatprep.subr.bf16.mxu1 %v12217_v63  ;;  %v12799_v26 = vpop.f32.mrf.mxu0  ;;  %v12289_v63 = vld [vmem:[#allocation2 + $0x1b94] ss:$8 sps:$4 sm:$0xff]  }
 0x95f   :  { %v7739_v10 = vpop.f32.mrf.mxu0 }
 0x960   :  { %7593 = vmatpush1.bf16.msra.mxu1 %v12215_v40  ;;  %v12287_v40 = vld [vmem:[#allocation2 + $0x1b90] ss:$8 sps:$4 sm:$0xff]   ;;  %v12290_v10 = vld [vmem:[#allocation2 + $0x1b80] ss:$8 sps:$4 sm:$0xff]  }
 0x961   :  { %7594 = vmatprep.subr.bf16.mxu1 %v12220_v7  ;;  %v7740_v60 = vpop.f32.mrf.mxu0  ;;  %v12292_v7 = vld [vmem:[#allocation2 + $0x1b84] ss:$8 sps:$4 sm:$0xff]  }
 0x962   :  { %v12298_v60 = vld [vmem:[#allocation2 + $0x1d64] ss:$8 sps:$4 sm:$0xff]  }
 0x964   :  { %7595 = vmatpush1.bf16.msra.mxu1 %v12218_v4  ;;  %v12295_v4 = vld [vmem:[#allocation2 + $0x1d74] ss:$8 sps:$4 sm:$0xff]  }
 0x965   :  { %7596 = vmatprep.subr.bf16.mxu1 %v12223_v11  ;;  %v12293_v11 = vld [vmem:[#allocation2 + $0x1d70] ss:$8 sps:$4 sm:$0xff]  }
 0x968   :  { %7597 = vmatpush2.bf16.msra.mxu1 %v12221_v62  ;;  %v12296_v62 = vld [vmem:[#allocation2 + $0x1d60] ss:$8 sps:$4 sm:$0xff]  }
 0x969   :  { %7598 = vmatprep.subr.bf16.mxu1 %v12226_v13  ;;  %v12301_v13 = vld [vmem:[#allocation2 + $0x1d54] ss:$8 sps:$4 sm:$0xff]  }
 0x96c   :  { %7599 = vmatpush2.bf16.msra.mxu1 %v12224_v3  ;;  %v12299_v3 = vld [vmem:[#allocation2 + $0x1d50] ss:$8 sps:$4 sm:$0xff]  }
 0x96d   :  { %7600 = vmatprep.subr.bf16.mxu1 %v12229_v12  ;;  %v12304_v12 = vld [vmem:[#allocation2 + $0x1d44] ss:$8 sps:$4 sm:$0xff]  }
 0x970   :  { %7601 = vmatpush2.bf16.msra.mxu1 %v12227_v23  ;;  %v12302_v23 = vld [vmem:[#allocation2 + $0x1d40] ss:$8 sps:$4 sm:$0xff]  }
 0x971   :  { %7602 = vmatprep.subr.bf16.mxu1 %v12232_v18  ;;  %v12307_v18 = vld [vmem:[#allocation2 + $0x1d34] ss:$8 sps:$4 sm:$0xff]  }
 0x974   :  { %7603 = vmatpush2.bf16.msra.mxu1 %v12230_v6  ;;  %v12305_v6 = vld [vmem:[#allocation2 + $0x1d30] ss:$8 sps:$4 sm:$0xff]  }
 0x975   :  { %7604 = vmatprep.subr.bf16.mxu1 %v12235_v21  ;;  %v12310_v21 = vld [vmem:[#allocation2 + $0x1d24] ss:$8 sps:$4 sm:$0xff]  }
 0x978   :  { %7605 = vmatpush2.bf16.msra.mxu1 %v12233_v39  ;;  %v12313_v39 = vld [vmem:[#allocation2 + $0x1d14] ss:$8 sps:$4 sm:$0xff]  }
 0x979   :  { %7606 = vmatprep.subr.bf16.mxu1 %v12238_v29  ;;  %v12311_v29 = vld [vmem:[#allocation2 + $0x1d10] ss:$8 sps:$4 sm:$0xff]  }
 0x97c   :  { %7607 = vmatpush2.bf16.msra.mxu1 %v12236_v19 }
 0x97d   :  { %7608 = vmatprep.subr.bf16.mxu1 %v12241_v59  ;;  %v12316_v59 = vld [vmem:[#allocation2 + $0x1d04] ss:$8 sps:$4 sm:$0xff]  }
 0x980   :  { %7609 = vmatpush2.bf16.msra.mxu1 %v12239_v17 }
 0x981   :  { %7610 = vmatprep.subr.bf16.mxu1 %v12244_v42  ;;  %v12314_v42 = vld [vmem:[#allocation2 + $0x1d00] ss:$8 sps:$4 sm:$0xff]  }
 0x984   :  { %7611 = vmatpush2.bf16.msra.mxu1 %v12242_v51 }
 0x985   :  { %8169 = vmatprep.subr.bf16.mxu1 %v12247_v9  ;;  %v12319_v9 = vld [vmem:[#allocation2 + $0x1df4] ss:$8 sps:$4 sm:$0xff]  }
 0x987   :  { %7613 = vmatmul.mubr.bf16.vlgmr.msra.gmra.mxu1 %v12562_v16  ;;  %v12260_v16 = vld [vmem:[#allocation2 + $0x1b20] ss:$8 sps:$4 sm:$0xff]  }
 0x988   :  { %8170 = vmatpush1.bf16.msra.mxu1 %v12245_v47  ;;  %8201 = vmatprep.mubr.bf16.mxu1 %v12602_v45  ;;  %v12317_v47 = vld [vmem:[#allocation2 + $0x1df0] ss:$8 sps:$4 sm:$0xff]  }
 0x989   :  { %8171 = vmatprep.subr.bf16.mxu1 %v12250_v24  ;;  %v12322_v24 = vld [vmem:[#allocation2 + $0x1de4] ss:$8 sps:$4 sm:$0xff]  }
 0x98c   :  { %8172 = vmatpush1.bf16.msra.mxu1 %v12248_v25  ;;  %v12320_v25 = vld [vmem:[#allocation2 + $0x1de0] ss:$8 sps:$4 sm:$0xff]  }
 0x98d   :  { %8173 = vmatprep.subr.bf16.mxu1 %v12253_v30  ;;  %v12325_v30 = vld [vmem:[#allocation2 + $0x1dd4] ss:$8 sps:$4 sm:$0xff]  }
 0x990   :  { %8174 = vmatpush1.bf16.msra.mxu1 %v12251_v36  ;;  %v12323_v36 = vld [vmem:[#allocation2 + $0x1dd0] ss:$8 sps:$4 sm:$0xff]  }
 0x991   :  { %8175 = vmatprep.subr.bf16.mxu1 %v12256_v48  ;;  %v12328_v48 = vld [vmem:[#allocation2 + $0x1dc4] ss:$8 sps:$4 sm:$0xff]  }
 0x994   :  { %8176 = vmatpush1.bf16.msra.mxu1 %v12254_v35  ;;  %v12326_v35 = vld [vmem:[#allocation2 + $0x1dc0] ss:$8 sps:$4 sm:$0xff]  }
 0x995   :  { %8177 = vmatprep.subr.bf16.mxu1 %v12259_v27  ;;  %v12331_v27 = vld [vmem:[#allocation2 + $0x1db4] ss:$8 sps:$4 sm:$0xff]  }
 0x998   :  { %8178 = vmatpush1.bf16.msra.mxu1 %v12257_v28  ;;  %v12329_v28 = vld [vmem:[#allocation2 + $0x1db0] ss:$8 sps:$4 sm:$0xff]  }
 0x999   :  { %8179 = vmatprep.subr.bf16.mxu1 %v12262_v41  ;;  %v12334_v41 = vld [vmem:[#allocation2 + $0x1da4] ss:$8 sps:$4 sm:$0xff]  }
 0x99b   :  { %v12803_v45 = vpop.f32.mrf.mxu0 }
 0x99c   :  { %8180 = vmatpush1.bf16.msra.mxu1 %v12260_v16  ;;  %v12332_v16 = vld [vmem:[#allocation2 + $0x1da0] ss:$8 sps:$4 sm:$0xff]  }
 0x99d   :  { %v12805_v50 = vpop.f32.mrf.mxu0  ;;  %8181 = vmatprep.subr.bf16.mxu1 %v12265_v0  ;;  %v12337_v0 = vld [vmem:[#allocation2 + $0x1d94] ss:$8 sps:$4 sm:$0xff]  }
 0x99f   :  { %v7972_v5 = vpop.f32.mrf.mxu0 }
 0x9a0   :  { %8182 = vmatpush1.bf16.msra.mxu1 %v12263_v38  ;;  %v12335_v38 = vld [vmem:[#allocation2 + $0x1d90] ss:$8 sps:$4 sm:$0xff]   ;;  %v12338_v5 = vld [vmem:[#allocation2 + $0x1d80] ss:$8 sps:$4 sm:$0xff]  }
 0x9a1   :  { %v7973_v52 = vpop.f32.mrf.mxu0  ;;  %8183 = vmatprep.subr.bf16.mxu1 %v12268_v43  ;;  %v12340_v43 = vld [vmem:[#allocation2 + $0x1d84] ss:$8 sps:$4 sm:$0xff]  }
 0x9a2   :  { %v12341_v52 = vld [vmem:[#allocation2 + $0x1f70] ss:$8 sps:$4 sm:$0xff]  }
 0x9a4   :  { %8184 = vmatpush1.bf16.msra.mxu1 %v12266_v22  ;;  %v12343_v22 = vld [vmem:[#allocation2 + $0x1f74] ss:$8 sps:$4 sm:$0xff]  }
 0x9a5   :  { %8185 = vmatprep.subr.bf16.mxu1 %v12271_v8  ;;  %v12346_v8 = vld [vmem:[#allocation2 + $0x1f64] ss:$8 sps:$4 sm:$0xff]  }
 0x9a8   :  { %8186 = vmatpush2.bf16.msra.mxu1 %v12269_v20 }
 0x9a9   :  { %8187 = vmatprep.subr.bf16.mxu1 %v12274_v46  ;;  %v12344_v46 = vld [vmem:[#allocation2 + $0x1f60] ss:$8 sps:$4 sm:$0xff]  }
 0x9ac   :  { %8188 = vmatpush2.bf16.msra.mxu1 %v12272_v34 }
 0x9ad   :  { %8189 = vmatprep.subr.bf16.mxu1 %v12277_v49  ;;  %v12349_v49 = vld [vmem:[#allocation2 + $0x1f54] ss:$8 sps:$4 sm:$0xff]  }
 0x9b0   :  { %8190 = vmatpush2.bf16.msra.mxu1 %v12275_v15 }
 0x9b1   :  { %8191 = vmatprep.subr.bf16.mxu1 %v12280_v14 }
 0x9b4   :  { %8192 = vmatpush2.bf16.msra.mxu1 %v12278_v53 }
 0x9b5   :  { %8193 = vmatprep.subr.bf16.mxu1 %v12283_v55  ;;  %v12347_v55 = vld [vmem:[#allocation2 + $0x1f50] ss:$8 sps:$4 sm:$0xff]  }
 0x9b8   :  { %8194 = vmatpush2.bf16.msra.mxu1 %v12281_v56 }
 0x9b9   :  { %8195 = vmatprep.subr.bf16.mxu1 %v12286_v57  ;;  %v12352_v57 = vld [vmem:[#allocation2 + $0x1f44] ss:$8 sps:$4 sm:$0xff]  }
 0x9bc   :  { %8196 = vmatpush2.bf16.msra.mxu1 %v12284_v58  ;;  %v12355_v58 = vld [vmem:[#allocation2 + $0x1f34] ss:$8 sps:$4 sm:$0xff]  }
 0x9bd   :  { %8197 = vmatprep.subr.bf16.mxu1 %v12289_v63  ;;  %v12358_v63 = vld [vmem:[#allocation2 + $0x1f24] ss:$8 sps:$4 sm:$0xff]  }
 0x9c0   :  { %8198 = vmatpush2.bf16.msra.mxu1 %v12287_v40  ;;  %v12356_v40 = vld [vmem:[#allocation2 + $0x1f20] ss:$8 sps:$4 sm:$0xff]  }
 0x9c1   :  { %8199 = vmatprep.subr.bf16.mxu1 %v12292_v7  ;;  %v12361_v7 = vld [vmem:[#allocation2 + $0x1f14] ss:$8 sps:$4 sm:$0xff]  }
 0x9c4   :  { %8200 = vmatpush2.bf16.msra.mxu1 %v12290_v10 }
 0x9c5   :  { %8639 = vmatprep.subr.bf16.mxu1 %v12295_v4  ;;  %v12364_v4 = vld [vmem:[#allocation2 + $0x1f04] ss:$8 sps:$4 sm:$0xff]  }
 0x9c7   :  { %8202 = vmatmul.mubr.bf16.vlgmr.msra.gmra.mxu1 %v12604_v37  ;;  %v12308_v37 = vld [vmem:[#allocation2 + $0x1d20] ss:$8 sps:$4 sm:$0xff]  }
 0x9c8   :  { %8640 = vmatpush1.bf16.msra.mxu1 %v12293_v11  ;;  %8671 = vmatprep.mubr.bf16.mxu1 %v12674_v44 }
 0x9c9   :  { %8641 = vmatprep.subr.bf16.mxu1 %v12298_v60 }
 0x9cc   :  { %8642 = vmatpush1.bf16.msra.mxu1 %v12296_v62  ;;  %v12362_v62 = vld [vmem:[#allocation2 + $0x1f00] ss:$8 sps:$4 sm:$0xff]  }
 0x9cd   :  { %8643 = vmatprep.subr.bf16.mxu1 %v12301_v13  ;;  %v12367_v13 = vld [vmem:[#allocation2 + $0x1ff4] ss:$8 sps:$4 sm:$0xff]  }
 0x9d0   :  { %8644 = vmatpush1.bf16.msra.mxu1 %v12299_v3 }
 0x9d1   :  { %8645 = vmatprep.subr.bf16.mxu1 %v12304_v12  ;;  %v12365_v12 = vld [vmem:[#allocation2 + $0x1ff0] ss:$8 sps:$4 sm:$0xff]  }
 0x9d4   :  { %8646 = vmatpush1.bf16.msra.mxu1 %v12302_v23  ;;  %v12370_v23 = vld [vmem:[#allocation2 + $0x1fe4] ss:$8 sps:$4 sm:$0xff]  }
 0x9d5   :  { %8647 = vmatprep.subr.bf16.mxu1 %v12307_v18  ;;  %v12368_v18 = vld [vmem:[#allocation2 + $0x1fe0] ss:$8 sps:$4 sm:$0xff]  }
 0x9d8   :  { %8648 = vmatpush1.bf16.msra.mxu1 %v12305_v6  ;;  %v12373_v6 = vld [vmem:[#allocation2 + $0x1fd4] ss:$8 sps:$4 sm:$0xff]  }
 0x9d9   :  { %8649 = vmatprep.subr.bf16.mxu1 %v12310_v21  ;;  %v12371_v21 = vld [vmem:[#allocation2 + $0x1fd0] ss:$8 sps:$4 sm:$0xff]  }
 0x9db   :  { %v12809_v44 = vpop.f32.mrf.mxu0 }
 0x9dc   :  { %8650 = vmatpush1.bf16.msra.mxu1 %v12308_v37  ;;  %v12376_v37 = vld [vmem:[#allocation2 + $0x1fc4] ss:$8 sps:$4 sm:$0xff]  }
 0x9dd   :  { %v12811_v19 = vpop.f32.mrf.mxu0  ;;  %8651 = vmatprep.subr.bf16.mxu1 %v12313_v39  ;;  %v12374_v39 = vld [vmem:[#allocation2 + $0x1fc0] ss:$8 sps:$4 sm:$0xff]  }
 0x9df   :  { %v8442_v17 = vpop.f32.mrf.mxu0 }
 0x9e0   :  { %8652 = vmatpush1.bf16.msra.mxu1 %v12311_v29  ;;  %v12379_v29 = vld [vmem:[#allocation2 + $0x1fb4] ss:$8 sps:$4 sm:$0xff]   ;;  %v12382_v17 = vld [vmem:[#allocation2 + $0x1fa4] ss:$8 sps:$4 sm:$0xff]  }
 0x9e1   :  { %v8443_v51 = vpop.f32.mrf.mxu0  ;;  %8653 = vmatprep.subr.bf16.mxu1 %v12316_v59  ;;  %v12377_v59 = vld [vmem:[#allocation2 + $0x1fb0] ss:$8 sps:$4 sm:$0xff]  }
 0x9e2   :  { %v12385_v51 = vld [vmem:[#allocation2 + $0x1f94] ss:$8 sps:$4 sm:$0xff]  }
 0x9e4   :  { %8654 = vmatpush1.bf16.msra.mxu1 %v12314_v42  ;;  %v12380_v42 = vld [vmem:[#allocation2 + $0x1fa0] ss:$8 sps:$4 sm:$0xff]  }
 0x9e5   :  { %8655 = vmatprep.subr.bf16.mxu1 %v12319_v9  ;;  %v12383_v9 = vld [vmem:[#allocation2 + $0x1f90] ss:$8 sps:$4 sm:$0xff]  }
 0x9e8   :  { %8656 = vmatpush2.bf16.msra.mxu1 %v12317_v47  ;;  %v12388_v47 = vld [vmem:[#allocation2 + $0x1f84] ss:$8 sps:$4 sm:$0xff]  }
 0x9e9   :  { %8657 = vmatprep.subr.bf16.mxu1 %v12322_v24  ;;  %v12386_v24 = vld [vmem:[#allocation2 + $0x1f80] ss:$8 sps:$4 sm:$0xff]  }
 0x9ec   :  { %8658 = vmatpush2.bf16.msra.mxu1 %v12320_v25 }
 0x9ed   :  { %8659 = vmatprep.subr.bf16.mxu1 %v12325_v30 }
 0x9f0   :  { %8660 = vmatpush2.bf16.msra.mxu1 %v12323_v36 }
 0x9f1   :  { %8661 = vmatprep.subr.bf16.mxu1 %v12328_v48 }
 0x9f4   :  { %8662 = vmatpush2.bf16.msra.mxu1 %v12326_v35  ;;  %v12389_v35 = vld [vmem:[#allocation4 + $0x438] sm:$0xff]  }
 0x9f5   :  { %8663 = vmatprep.subr.bf16.mxu1 %v12331_v27  ;;  %v12390_v27 = vld [vmem:[#allocation4 + $0x3f8] sm:$0xff]   ;;  %10680 = vmatprep.subr.bf16.mxu0 %v12389_v35 }
 0x9f6   :  { %10681 = vmatpush3.bf16.msra.mxu0 %v12390_v27 }
 0x9f8   :  { %8664 = vmatpush2.bf16.msra.mxu1 %v12329_v28  ;;  %v12391_v28 = vld [vmem:[#allocation4 + $0x430] sm:$0xff]  }
 0x9f9   :  { %8665 = vmatprep.subr.bf16.mxu1 %v12334_v41  ;;  %v12392_v41 = vld [vmem:[#allocation4 + $0x3f0] sm:$0xff]   ;;  %10682 = vmatprep.subr.bf16.mxu0 %v12391_v28 }
 0x9fa   :  { %10683 = vmatpush3.bf16.msra.mxu0 %v12392_v41 }
 0x9fc   :  { %8666 = vmatpush2.bf16.msra.mxu1 %v12332_v16  ;;  %v12393_v16 = vld [vmem:[#allocation4 + $0x428] sm:$0xff]  }
 0x9fd   :  { %8667 = vmatprep.subr.bf16.mxu1 %v12337_v0  ;;  %v12394_v0 = vld [vmem:[#allocation4 + $0x3e8] sm:$0xff]   ;;  %10684 = vmatprep.subr.bf16.mxu0 %v12393_v16 }
 0x9fe   :  { %10685 = vmatpush3.bf16.msra.mxu0 %v12394_v0 }
 0xa00   :  { %8668 = vmatpush2.bf16.msra.mxu1 %v12335_v38  ;;  %v12395_v38 = vld [vmem:[#allocation4 + $0x420] sm:$0xff]  }
 0xa01   :  { %8669 = vmatprep.subr.bf16.mxu1 %v12340_v43  ;;  %v12396_v43 = vld [vmem:[#allocation4 + $0x3e0] sm:$0xff]   ;;  %10686 = vmatprep.subr.bf16.mxu0 %v12395_v38 }
 0xa02   :  { %10687 = vmatpush3.bf16.msra.mxu0 %v12396_v43 }
 0xa04   :  { %8670 = vmatpush2.bf16.msra.mxu1 %v12338_v5  ;;  %v12397_v5 = vld [vmem:[#allocation4 + $0x418] sm:$0xff]  }
 0xa05   :  { %9109 = vmatprep.subr.bf16.mxu1 %v12343_v22  ;;  %10688 = vmatprep.subr.bf16.mxu0 %v12397_v5 }
 0xa07   :  { %8672 = vmatmul.mubr.bf16.vlgmr.msra.gmra.mxu1 %v12676_v32  ;;  %v10674_v20 = vpop.f32.mrf.mxu1  ;;  %v12350_v32 = vld [vmem:[#allocation2 + $0x1f40] ss:$8 sps:$4 sm:$0xff]  }
 0xa08   :  { %9110 = vmatpush1.bf16.msra.mxu1 %v12341_v52  ;;  %9141 = vmatprep.mubr.bf16.mxu1 %v12789_v33  ;;  %v12353_v33 = vld [vmem:[#allocation2 + $0x1f30] ss:$8 sps:$4 sm:$0xff]  }
 0xa09   :  { %v10675_v34 = vpop.f32.mrf.mxu1  ;;  %9111 = vmatprep.subr.bf16.mxu1 %v12346_v8  ;;  %v12399_v8 = vld [vmem:[#allocation4 + $0x410] sm:$0xff]  }
 0xa0a   :  { %v10676_v15 = vadd.f32 %v10675_v34, %v10674_v20 }
 0xa0b   :  { %v10677_v14 = vpop.f32.mrf.mxu1 }
 0xa0c   :  { %v12816_v53 = vadd.f32 %v10676_v15, %v12753_v61  ;;  %9112 = vmatpush1.bf16.msra.mxu1 %v12344_v46  ;;  %v12359_v61 = vld [vmem:[#allocation2 + $0x1f10] ss:$8 sps:$4 sm:$0xff]  }
 0xa0d   :  { %v10678_v56 = vpop.f32.mrf.mxu1  ;;  %9113 = vmatprep.subr.bf16.mxu1 %v12349_v49  ;;  %v12400_v46 = vld [vmem:[#allocation4 + $0x3d0] sm:$0xff]  }
 0xa10   :  { %9114 = vmatpush1.bf16.msra.mxu1 %v12347_v55  ;;  %v12401_v55 = vld [vmem:[#allocation4 + $0x408] sm:$0xff]  }
 0xa11   :  { %9115 = vmatprep.subr.bf16.mxu1 %v12352_v57  ;;  %v12402_v57 = vld [vmem:[#allocation4 + $0x3c8] sm:$0xff]  }
 0xa14   :  { %9116 = vmatpush1.bf16.msra.mxu1 %v12350_v32 }
 0xa15   :  { %9117 = vmatprep.subr.bf16.mxu1 %v12355_v58  ;;  %v12403_v58 = vld [vmem:[#allocation4 + $0x400] sm:$0xff]  }
 0xa18   :  { %9118 = vmatpush1.bf16.msra.mxu1 %v12353_v33 }
 0xa19   :  { %9119 = vmatprep.subr.bf16.mxu1 %v12358_v63 }
 0xa1c   :  { %v12818_v10 = vpop.f32.mrf.mxu0  ;;  %9120 = vmatpush1.bf16.msra.mxu1 %v12356_v40 }
 0xa1d   :  { %9121 = vmatprep.subr.bf16.mxu1 %v12361_v7 }
 0xa1e   :  { %v12820_v11 = vpop.f32.mrf.mxu0 }
 0xa20   :  { %v8912_v60 = vpop.f32.mrf.mxu0  ;;  %9122 = vmatpush1.bf16.msra.mxu1 %v12359_v61 }
 0xa21   :  { %9123 = vmatprep.subr.bf16.mxu1 %v12364_v4  ;;  %v9153_v4 = vld [vmem:[#allocation6 + $0x7] ss:$8 sm:$0x3] }
 0xa22   :  { %v8913_v3 = vpop.f32.mrf.mxu0 }
 0xa24   :  { %9124 = vmatpush1.bf16.msra.mxu1 %v12362_v62 }
 0xa25   :  { %9125 = vmatprep.subr.bf16.mxu1 %v12367_v13  ;;  %v9158_v13 = vrot.slane %v9153_v4, %v12554_v1 }
 0xa28   :  { %9126 = vmatpush2.bf16.msra.mxu1 %v12365_v12 }
 0xa29   :  { %9127 = vmatprep.subr.bf16.mxu1 %v12370_v23 }
 0xa2c   :  { %9128 = vmatpush2.bf16.msra.mxu1 %v12368_v18  ;;  %v9162_v18 = vrot.slane %v9153_v4, %v12556_v2 }
 0xa2d   :  { %9129 = vmatprep.subr.bf16.mxu1 %v12373_v6 }
 0xa30   :  { %9130 = vmatpush2.bf16.msra.mxu1 %v12371_v21 }
 0xa31   :  { %9131 = vmatprep.subr.bf16.mxu1 %v12376_v37 }
 0xa34   :  { %9132 = vmatpush2.bf16.msra.mxu1 %v12374_v39 }
 0xa35   :  { %9133 = vmatprep.subr.bf16.mxu1 %v12379_v29 }
 0xa38   :  { %9134 = vmatpush2.bf16.msra.mxu1 %v12377_v59 }
 0xa39   :  { %9135 = vmatprep.subr.bf16.mxu1 %v12382_v17 }
 0xa3c   :  { %9136 = vmatpush2.bf16.msra.mxu1 %v12380_v42 }
 0xa3d   :  { %9137 = vmatprep.subr.bf16.mxu1 %v12385_v51 }
 0xa40   :  { %9138 = vmatpush2.bf16.msra.mxu1 %v12383_v9  ;;  %v10516_v9 = vld [vmem:[#allocation7] ss:$0 sm:$0xff] }
 0xa41   :  { %9139 = vmatprep.subr.bf16.mxu1 %v12388_v47 }
 0xa44   :  { %9140 = vmatpush2.bf16.msra.mxu1 %v12386_v24 }
 0xa47   :  { %v7614_v25 = vpop.f32.mrf.mxu1  ;;  %9142 = vmatmul.mubr.bf16.vlgmr.msra.gmra.mxu1 %v12791_v54  ;;  %v12398_v54 = vld [vmem:[#allocation4 + $0x3d8] sm:$0xff]  }
 0xa48   :  { %10689 = vmatpush3.bf16.msra.mxu0 %v12398_v54  ;;  %v7736_v22 = vadd.f32 %v12796_v31, %v7614_v25 }
 0xa49   :  { %v7616_v30 = vpop.f32.mrf.mxu1  ;;  %10690 = vmatprep.subr.bf16.mxu0 %v12399_v8 }
 0xa4a   :  { %v7738_v52 = vadd.f32 %v12799_v26, %v7616_v30  ;;  %v7975_v20 = vadd.f32 %v12803_v45, %v7736_v22  ;;  %v12404_v26 = vld [vmem:[#allocation4 + $0x3c0] sm:$0xff]  }
 0xa4b   :  { %v7618_v36 = vpop.f32.mrf.mxu1 }
 0xa4c   :  { %v7976_v15 = vadd.f32 %v12805_v50, %v7738_v52  ;;  %10691 = vmatpush3.bf16.msra.mxu0 %v12400_v46 }
 0xa4d   :  { %v7619_v48 = vpop.f32.mrf.mxu1  ;;  %10692 = vmatprep.subr.bf16.mxu0 %v12401_v55 }
 0xa50   :  { %10693 = vmatpush3.bf16.msra.mxu0 %v12402_v57 }
 0xa51   :  { %10694 = vmatprep.subr.bf16.mxu0 %v12403_v58 }
 0xa54   :  { %10695 = vmatpush3.bf16.msra.mxu0 %v12404_v26 }
 0xa87   :  { %v8203_v34 = vpop.f32.mrf.mxu1 }
 0xa88   :  { %v8210_v49 = vadd.f32 %v8203_v34, %v7975_v20 }
 0xa89   :  { %v8205_v14 = vpop.f32.mrf.mxu1 }
 0xa8a   :  { %v8211_v56 = vadd.f32 %v8205_v14, %v7976_v15  ;;  %v8445_v7 = vadd.f32 %v12809_v44, %v8210_v49 }
 0xa8b   :  { %v8207_v32 = vpop.f32.mrf.mxu1 }
 0xa8c   :  { %v8446_v61 = vadd.f32 %v12811_v19, %v8211_v56 }
 0xa8d   :  { %v8208_v31 = vpop.f32.mrf.mxu1 }
 0xac7   :  { %v8673_v45 = vpop.f32.mrf.mxu1 }
 0xac8   :  { %v8680_v50 = vadd.f32 %v8673_v45, %v8445_v7 }
 0xac9   :  { %v8675_v33 = vpop.f32.mrf.mxu1 }
 0xaca   :  { %v8681_v60 = vadd.f32 %v8675_v33, %v8446_v61  ;;  %v8915_v62 = vadd.f32 %v12818_v10, %v8680_v50 }
 0xacb   :  { %v8677_v63 = vpop.f32.mrf.mxu1 }
 0xacc   :  { %v8916_v23 = vadd.f32 %v12820_v11, %v8681_v60 }
 0xacd   :  { %v8678_v40 = vpop.f32.mrf.mxu1 }
 0xb07   :  { %v9143_v3 = vpop.f32.mrf.mxu1 }
 0xb08   :  { %v9150_v12 = vadd.f32 %v9143_v3, %v8915_v62 }
 0xb09   :  { %v9145_v6 = vpop.f32.mrf.mxu1 }
 0xb0a   :  { %v9165_v21 = vadd.f32 %v9158_v13, %v9150_v12  ;;  %v9151_v37 = vadd.f32 %v9145_v6, %v8916_v23 }
 0xb0b   :  { %v9147_v39 = vpop.f32.mrf.mxu1 }
 0xb0c   :  { %v9166_v44 = vadd.f32 %v9162_v18, %v9151_v37  ;;  %v9167_v29 = vmax.f32 %v9165_v21, 0.0 }
 0xb0d   :  { %v9148_v59 = vpop.f32.mrf.mxu1 }
 0xb0e   :  { %v9168_v19 = vmax.f32 %v9166_v44, 0.0  ;;  %v9169_v42 = vpack.c.bf16 %v9167_v29, %v9167_v29 }
 0xb10   :  { %v9170_v17 = vpack.c.bf16 %v9168_v19, %v9168_v19 }
 0xb12   :  { %9331 = vmatprep.mubr.bf16.mxu0 %v9170_v17 }
 0xb13   :  { %9332 = vmatmul.mubr.bf16.vlgmr.msra.gmra.mxu0 %v9169_v42 }
 0xbd3   :  { %v10696_v10 = vpop.f32.mrf.mxu0 }
 0xbd5   :  { %v10697_v1 = vpop.f32.mrf.mxu0 }
 0xbd6   :  { %v10698_v51 = vadd.f32 %v10697_v1, %v10696_v10 }
 0xbd7   :  { %v10699_v47 = vpop.f32.mrf.mxu0 }
 0xbd8   :  { %v9339_v11 = vadd.f32 %v10698_v51, %v12816_v53 }
 0xbd9   :  { %v10700_v2 = vpop.f32.mrf.mxu0 }
 0xbda   :  { %v9347_v24 = vadd.f32 %v10516_v9, %v9339_v11 }
 0xbdc   :  { %9348 = vst [vmem:[%s12842_s5] sm:$0xff] %v9347_v24 }
 0xbdd   :  { %9353 = vsyncpa [#allocation3], 1 }
 0xbde   :  { %9354 = vsyncpa [#allocation5], 1 }
 0xbdf   :  { %9355 = vsyncpa [#allocation8], 1 }

</bundles_post_ra>
